<compile_context>
chip_gen: v7x
topology: tpu7x:2x2x1
jax: 0.10.0
libtpu: 0.0.40
codegen_flags: <defaults>
</compile_context>

<pallas_src>
import functools

import jax
import jax.numpy as jnp
from jax import lax
from jax.experimental import pallas as pl
from jax.experimental.pallas import tpu as pltpu

# Full-precision f32 dots for the pure-JAX reference (and interpret-mode execution);
# without this, TPU default matmul precision adds ~1e-3 noise to the comparison.
jax.config.update("jax_default_matmul_precision", "highest")

EPS = 1e-5  # nn.LayerNorm default


def _layernorm(x, gamma, beta):
    mu = jnp.mean(x, axis=-1, keepdims=True)
    var = jnp.mean((x - mu) ** 2, axis=-1, keepdims=True)
    return (x - mu) * lax.rsqrt(var + EPS) * gamma + beta


def transformer_block_kernel(
    x_ref,                       # (T, K)  full sequence for this batch element
    wq_ref, bq_ref,              # (K, H*K) mm-dtype, (1, H*K) f32
    wk_ref, bk_ref,
    wv_ref, bv_ref,
    wu_ref, bu_ref,              # (H*K, K), (1, K)
    g1_ref, be1_ref,             # (1, K) layernorm1 (f32)
    w1_ref, bf1_ref,             # (K, 4K), (1, 4K)
    w2_ref, bf2_ref,             # (4K, K), (1, K)
    g2_ref, be2_ref,             # (1, K) layernorm2 (f32)
    o_ref,                       # (TQ, K)
    k_scratch, v_scratch,        # (T, H*K) mm-dtype, persist across query tiles
    *, heads, q_tile,
):
    qi = pl.program_id(1)
    T, K = x_ref.shape
    H = heads
    mm = k_scratch.dtype         # matmul operand dtype (bf16 fast path / f32 exact path)

    # ---- K/V projections: computed once per batch element, reused for qi > 0 ----
    @pl.when(qi == 0)
    def _():
        xs = x_ref[...].astype(mm)                                           # (T, K)
        k_scratch[...] = (jnp.dot(xs, wk_ref[...],
                                  preferred_element_type=jnp.float32)
                          + bk_ref[...]).astype(mm)
        v_scratch[...] = (jnp.dot(xs, wv_ref[...],
                                  preferred_element_type=jnp.float32)
                          + bv_ref[...]).astype(mm)

    # ---- query rows for this tile (sliced from the resident full-seq block) ----
    row0 = pl.multiple_of(qi * q_tile, q_tile)
    xq = x_ref[pl.ds(row0, q_tile), :]                                       # (TQ, K) f32
    q = (jnp.dot(xq.astype(mm), wq_ref[...],
                 preferred_element_type=jnp.float32) + bq_ref[...])          # (TQ, H*K)
    # Fold both K**-0.25 scalings (q and k) into one 1/sqrt(K) scaling of q.
    q = (q * (1.0 / (K ** 0.5))).astype(mm)

    # ---- per-head attention via static lane slices (no 3D transposes) ----
    heads_out = []
    for h in range(H):                                                       # H small, static
        sl = slice(h * K, (h + 1) * K)
        q_h = q[:, sl]                                                       # (TQ, K)
        k_h = k_scratch[:, sl]                                               # (T,  K)
        v_h = v_scratch[:, sl]                                               # (T,  K)
        # scores = q_h @ k_h.T  (contract last dims; no materialized transpose)
        s = lax.dot_general(q_h, k_h, (((1,), (1,)), ((), ())),
                            preferred_element_type=jnp.float32)              # (TQ, T) f32
        m = jnp.max(s, axis=-1, keepdims=True)
        e = jnp.exp(s - m)
        # Exact softmax normalization (f32 divide).  pl.reciprocal(approx=True) was the
        # dominant accuracy loss; re-enable only if un-normalized probs are acceptable.
        p = e / jnp.sum(e, axis=-1, keepdims=True)
        heads_out.append(jnp.dot(p.astype(mm), v_h,
                                 preferred_element_type=jnp.float32))        # (TQ, K)

    # Concat heads on lanes, then ONE unify matmul contracting the full H*K.
    attn = jnp.concatenate(heads_out, axis=-1).astype(mm)                    # (TQ, H*K)
    attn_out = jnp.dot(attn, wu_ref[...],
                       preferred_element_type=jnp.float32) + bu_ref[...]     # (TQ, K)

    # ---- residual + layernorm 1 (f32) ----
    y = _layernorm(attn_out + xq, g1_ref[...], be1_ref[...])

    # ---- feedforward ----
    h1 = jnp.maximum(
        jnp.dot(y.astype(mm), w1_ref[...],
                preferred_element_type=jnp.float32) + bf1_ref[...], 0.0)
    ff = jnp.dot(h1.astype(mm), w2_ref[...],
                 preferred_element_type=jnp.float32) + bf2_ref[...]

    # ---- residual + layernorm 2 ----
    o_ref[...] = _layernorm(ff + y, g2_ref[...], be2_ref[...]).astype(o_ref.dtype)


def _query_tile(t):
    """Largest convenient query tile that divides T and satisfies the (8,128) rule."""
    for cand in (256, 128, 64, 32, 16, 8):
        if t % cand == 0:
            return cand
    return t  # irregular/small T: single block equal to the full dim


def _weight_spec(shape):
    """Grid-invariant weight/bias block; single-buffered (constant index map) to save VMEM."""
    idx = lambda b, qi: (0, 0)
    try:
        return pl.BlockSpec(shape, idx, pipeline_mode=pl.Buffered(1))
    except TypeError:  # older jax without pipeline_mode: fall back to default buffering
        return pl.BlockSpec(shape, idx)


def _vmem_limit_bytes():
    """3/4 of physical VMEM: headroom on v7x (64 MiB/core), more room on v5e/v6e (128 MiB)."""
    try:
        cap = pltpu.get_tpu_info().vmem_capacity_bytes
    except Exception:
        cap = 128 * 1024 * 1024
    return int(cap) * 3 // 4


def transformer_block(x, params, heads, *, matmul_dtype=jnp.bfloat16):
    (wq, bq, wk, bk, wv, bv, wu, bu,
     g1, be1, w1, bf1, w2, bf2, g2, be2) = params
    B, T, K = x.shape
    HK = heads * K
    TQ = _query_tile(T)
    nq = T // TQ

    mm = matmul_dtype
    # Cast matmul weight operands up-front (halves DMA bytes + VMEM when bf16);
    # biases / LayerNorm params stay f32 (consumed on the f32 elementwise path).
    wq, wk, wv, wu, w1, w2 = (w.astype(mm) for w in (wq, wk, wv, wu, w1, w2))

    in_specs = [
        # Single full-sequence x block per batch element (constant across qi, so the
        # pipeline keeps it resident); query rows are sliced inside the kernel.
        pl.BlockSpec((pl.Squeezed(), T, K), lambda b, qi: (b, 0, 0)),
        _weight_spec((K, HK)), _weight_spec((1, HK)),          # Wq, bq
        _weight_spec((K, HK)), _weight_spec((1, HK)),          # Wk, bk
        _weight_spec((K, HK)), _weight_spec((1, HK)),          # Wv, bv
        _weight_spec((HK, K)), _weight_spec((1, K)),           # Wunify, bunify
        _weight_spec((1, K)), _weight_spec((1, K)),            # gamma1, beta1
        _weight_spec((K, 4 * K)), _weight_spec((1, 4 * K)),    # W1, b1
        _weight_spec((4 * K, K)), _weight_spec((1, K)),        # W2, b2
        _weight_spec((1, K)), _weight_spec((1, K)),            # gamma2, beta2
    ]

    return pl.pallas_call(
        functools.partial(transformer_block_kernel, heads=heads, q_tile=TQ),
        out_shape=jax.ShapeDtypeStruct((B, T, K), jnp.float32),
        grid=(B, nq),
        in_specs=in_specs,
        out_specs=pl.BlockSpec((pl.Squeezed(), TQ, K), lambda b, qi: (b, qi, 0)),
        scratch_shapes=[pltpu.VMEM((T, HK), mm),    # K cache (per batch element)
                        pltpu.VMEM((T, HK), mm)],   # V cache
        compiler_params=pltpu.CompilerParams(
            # batch axis parallel (megacore sharding); query-tile axis sequential so the
            # K/V scratch persists across qi for a given batch element.
            dimension_semantics=("parallel", "arbitrary"),
            vmem_limit_bytes=_vmem_limit_bytes(),
        ),
    )(x, wq, bq, wk, bk, wv, bv, wu, bu, g1, be1, w1, bf1, w2, bf2, g2, be2)


def reference_block(x, params, heads):
    """Pure-JAX reference reproducing the PyTorch forward exactly (f32)."""
    (wq, bq, wk, bk, wv, bv, wu, bu,
     g1, be1, w1, bf1, w2, bf2, g2, be2) = params
    B, T, K = x.shape
    H = heads
    scale = 1.0 / (K ** 0.25)
    q = (x @ wq + bq).reshape(B, T, H, K).transpose(0, 2, 1, 3) * scale
    k = (x @ wk + bk).reshape(B, T, H, K).transpose(0, 2, 1, 3) * scale
    v = (x @ wv + bv).reshape(B, T, H, K).transpose(0, 2, 1, 3)
    scores = jnp.einsum('bhtd,bhsd->bhts', q, k)
    probs = jax.nn.softmax(scores, axis=-1)
    attn = jnp.einsum('bhts,bhsd->bhtd', probs, v)
    attn = attn.transpose(0, 2, 1, 3).reshape(B, T, H * K)
    attn_out = attn @ wu + bu

    def ln(z, g, b):
        mu = jnp.mean(z, axis=-1, keepdims=True)
        var = jnp.mean((z - mu) ** 2, axis=-1, keepdims=True)
        return (z - mu) / jnp.sqrt(var + EPS) * g + b

    y = ln(attn_out + x, g1, be1)
    ff = jnp.maximum(y @ w1 + bf1, 0.0) @ w2 + bf2
    return ln(ff + y, g2, be2)


if __name__ == "__main__":
    B, T, K, HEADS = 2, 8, 32, 4
    HK = HEADS * K

    key = jax.random.PRNGKey(0)
    keys = jax.random.split(key, 16)

    def lin(kw, kb, din, dout):
        # deterministic init; weight stored as (in, out)
        w = jax.random.normal(kw, (din, dout), jnp.float32) * (1.0 / jnp.sqrt(din))
        b = jax.random.normal(kb, (1, dout), jnp.float32) * 0.02
        return w, b

    wq, bq = lin(keys[0], keys[1], K, HK)
    wk, bk = lin(keys[2], keys[3], K, HK)
    wv, bv = lin(keys[4], keys[5], K, HK)
    wu, bu = lin(keys[6], keys[7], HK, K)
    w1, bf1 = lin(keys[8], keys[9], K, 4 * K)
    w2, bf2 = lin(keys[10], keys[11], 4 * K, K)
    g1 = jnp.ones((1, K), jnp.float32)
    be1 = jnp.zeros((1, K), jnp.float32)
    g2 = jnp.ones((1, K), jnp.float32)
    be2 = jnp.zeros((1, K), jnp.float32)

    params = (wq, bq, wk, bk, wv, bv, wu, bu,
              g1, be1, w1, bf1, w2, bf2, g2, be2)

    x = jax.random.normal(keys[12], (B, T, K), jnp.float32)
    ref = reference_block(x, params, HEADS)

    # --- Exact path (f32 matmul operands): tight validation of the kernel math. ---
    out_f32 = jax.block_until_ready(
        transformer_block(x, params, HEADS, matmul_dtype=jnp.float32))
    assert out_f32.shape == (B, T, K)
    assert jnp.allclose(out_f32, ref, atol=2e-3, rtol=2e-3), \
        f"f32 path max abs err {jnp.max(jnp.abs(out_f32 - ref))}"

    # --- Fast path (bf16 matmul operands, f32 accumulation): production default. ---
    # bf16 operand rounding vs the f32 reference is only checked against a coarse
    # envelope; the exact-path assertion above is the real correctness gate.
    out_bf16 = jax.block_until_ready(transformer_block(x, params, HEADS))
    assert out_bf16.shape == (B, T, K)
    assert bool(jnp.all(jnp.isfinite(out_bf16)))
    assert float(jnp.max(jnp.abs(out_bf16 - ref))) < 0.2, \
        f"bf16 path max abs err {jnp.max(jnp.abs(out_bf16 - ref))}"

    print("KERNEL_OK")
</pallas_src>

<mosaic_0001>
module attributes {stable_mosaic.version = 11 : i64} {
  func.func @transformer_block_kernel(%arg0: i32, %arg1: i32, %arg2: memref<1x8x32xf32, #tpu.memory_space<vmem>>, %arg3: memref<32x128xf32, #tpu.memory_space<vmem>>, %arg4: memref<1x128xf32, #tpu.memory_space<vmem>>, %arg5: memref<32x128xf32, #tpu.memory_space<vmem>>, %arg6: memref<1x128xf32, #tpu.memory_space<vmem>>, %arg7: memref<32x128xf32, #tpu.memory_space<vmem>>, %arg8: memref<1x128xf32, #tpu.memory_space<vmem>>, %arg9: memref<128x32xf32, #tpu.memory_space<vmem>>, %arg10: memref<1x32xf32, #tpu.memory_space<vmem>>, %arg11: memref<1x32xf32, #tpu.memory_space<vmem>>, %arg12: memref<1x32xf32, #tpu.memory_space<vmem>>, %arg13: memref<32x128xf32, #tpu.memory_space<vmem>>, %arg14: memref<1x128xf32, #tpu.memory_space<vmem>>, %arg15: memref<128x32xf32, #tpu.memory_space<vmem>>, %arg16: memref<1x32xf32, #tpu.memory_space<vmem>>, %arg17: memref<1x32xf32, #tpu.memory_space<vmem>>, %arg18: memref<1x32xf32, #tpu.memory_space<vmem>>, %arg19: memref<1x8x32xf32, #tpu.memory_space<vmem>>, %arg20: memref<8x128xf32, #tpu.memory_space<vmem>>, %arg21: memref<8x128xf32, #tpu.memory_space<vmem>>) attributes {dimension_semantics = [#tpu.dimension_semantics<parallel>, #tpu.dimension_semantics<arbitrary>], iteration_bounds = array<i64: 2, 1>, scalar_prefetch = 0 : i64, scratch_operands = 2 : i64, tpu.core_type = #tpu.core_type<tc>, window_params = [{transform_indices = @transform_0, window_bounds = array<i64: 1, 8, 32>}, {pipeline_mode = #tpu.pipeline_mode<synchronous>, transform_indices = @transform_1, window_bounds = array<i64: 32, 128>}, {pipeline_mode = #tpu.pipeline_mode<synchronous>, transform_indices = @transform_2, window_bounds = array<i64: 1, 128>}, {pipeline_mode = #tpu.pipeline_mode<synchronous>, transform_indices = @transform_3, window_bounds = array<i64: 32, 128>}, {pipeline_mode = #tpu.pipeline_mode<synchronous>, transform_indices = @transform_4, window_bounds = array<i64: 1, 128>}, {pipeline_mode = #tpu.pipeline_mode<synchronous>, transform_indices = @transform_5, window_bounds = array<i64: 32, 128>}, {pipeline_mode = #tpu.pipeline_mode<synchronous>, transform_indices = @transform_6, window_bounds = array<i64: 1, 128>}, {pipeline_mode = #tpu.pipeline_mode<synchronous>, transform_indices = @transform_7, window_bounds = array<i64: 128, 32>}, {pipeline_mode = #tpu.pipeline_mode<synchronous>, transform_indices = @transform_8, window_bounds = array<i64: 1, 32>}, {pipeline_mode = #tpu.pipeline_mode<synchronous>, transform_indices = @transform_9, window_bounds = array<i64: 1, 32>}, {pipeline_mode = #tpu.pipeline_mode<synchronous>, transform_indices = @transform_10, window_bounds = array<i64: 1, 32>}, {pipeline_mode = #tpu.pipeline_mode<synchronous>, transform_indices = @transform_11, window_bounds = array<i64: 32, 128>}, {pipeline_mode = #tpu.pipeline_mode<synchronous>, transform_indices = @transform_12, window_bounds = array<i64: 1, 128>}, {pipeline_mode = #tpu.pipeline_mode<synchronous>, transform_indices = @transform_13, window_bounds = array<i64: 128, 32>}, {pipeline_mode = #tpu.pipeline_mode<synchronous>, transform_indices = @transform_14, window_bounds = array<i64: 1, 32>}, {pipeline_mode = #tpu.pipeline_mode<synchronous>, transform_indices = @transform_15, window_bounds = array<i64: 1, 32>}, {pipeline_mode = #tpu.pipeline_mode<synchronous>, transform_indices = @transform_16, window_bounds = array<i64: 1, 32>}, {transform_indices = @transform_17, window_bounds = array<i64: 1, 8, 32>}]} {
    %c0_i32 = arith.constant 0 : i32
    %0 = arith.cmpi eq, %arg1, %c0_i32 : i32
    %1 = arith.extui %0 : i1 to i32
    %c0_i32_0 = arith.constant 0 : i32
    %2 = arith.cmpi ne, %1, %c0_i32_0 : i32
    scf.if %2 {
      %c0_73 = arith.constant 0 : index
      %c0_74 = arith.constant 0 : index
      %c0_75 = arith.constant 0 : index
      %142 = vector.load %arg2[%c0_73, %c0_74, %c0_75] : memref<1x8x32xf32, #tpu.memory_space<vmem>>, vector<1x8x32xf32>
      %143 = vector.shape_cast %142 : vector<1x8x32xf32> to vector<8x32xf32>
      %c0_76 = arith.constant 0 : index
      %c0_77 = arith.constant 0 : index
      %144 = vector.load %arg5[%c0_76, %c0_77] : memref<32x128xf32, #tpu.memory_space<vmem>>, vector<32x128xf32>
      %cst_78 = arith.constant dense<0.000000e+00> : vector<8x128xf32>
      %145 = tpu.matmul %143, %144, %cst_78 {dimension_numbers = #tpu.dot_dimension_numbers<[1], [0], [0], [1], [0, 0, 1, 1], [], []>, precision = #tpu.contract_precision<fp32>} : vector<8x32xf32>, vector<32x128xf32>, vector<8x128xf32> -> vector<8x128xf32>
      %c0_79 = arith.constant 0 : index
      %c0_80 = arith.constant 0 : index
      %146 = vector.load %arg6[%c0_79, %c0_80] : memref<1x128xf32, #tpu.memory_space<vmem>>, vector<1x128xf32>
      %147 = vector.broadcast %146 : vector<1x128xf32> to vector<8x128xf32>
      %148 = arith.addf %145, %147 : vector<8x128xf32>
      %c0_81 = arith.constant 0 : index
      %c0_82 = arith.constant 0 : index
      %149 = vector.load %arg20[%c0_81, %c0_82] : memref<8x128xf32, #tpu.memory_space<vmem>>, vector<8x128xf32>
      tpu.vector_store %arg20[%c0_81, %c0_82], %148 {strides = array<i32>} : memref<8x128xf32, #tpu.memory_space<vmem>>, vector<8x128xf32>,
      %c0_83 = arith.constant 0 : index
      %c0_84 = arith.constant 0 : index
      %150 = vector.load %arg7[%c0_83, %c0_84] : memref<32x128xf32, #tpu.memory_space<vmem>>, vector<32x128xf32>
      %cst_85 = arith.constant dense<0.000000e+00> : vector<8x128xf32>
      %151 = tpu.matmul %143, %150, %cst_85 {dimension_numbers = #tpu.dot_dimension_numbers<[1], [0], [0], [1], [0, 0, 1, 1], [], []>, precision = #tpu.contract_precision<fp32>} : vector<8x32xf32>, vector<32x128xf32>, vector<8x128xf32> -> vector<8x128xf32>
      %c0_86 = arith.constant 0 : index
      %c0_87 = arith.constant 0 : index
      %152 = vector.load %arg8[%c0_86, %c0_87] : memref<1x128xf32, #tpu.memory_space<vmem>>, vector<1x128xf32>
      %153 = vector.broadcast %152 : vector<1x128xf32> to vector<8x128xf32>
      %154 = arith.addf %151, %153 : vector<8x128xf32>
      %c0_88 = arith.constant 0 : index
      %c0_89 = arith.constant 0 : index
      %155 = vector.load %arg21[%c0_88, %c0_89] : memref<8x128xf32, #tpu.memory_space<vmem>>, vector<8x128xf32>
      tpu.vector_store %arg21[%c0_88, %c0_89], %154 {strides = array<i32>} : memref<8x128xf32, #tpu.memory_space<vmem>>, vector<8x128xf32>,
    } else {
    }
    %c8_i32 = arith.constant 8 : i32
    %3 = arith.muli %arg1, %c8_i32 : i32
    %4 = tpu.assume_multiple %3, 8 : i32
    %c0 = arith.constant 0 : index
    %5 = arith.index_cast %4 : i32 to index
    %c0_1 = arith.constant 0 : index
    %6 = vector.load %arg2[%c0, %5, %c0_1] : memref<1x8x32xf32, #tpu.memory_space<vmem>>, vector<1x8x32xf32>
    %7 = vector.shape_cast %6 : vector<1x8x32xf32> to vector<8x32xf32>
    %c0_2 = arith.constant 0 : index
    %c0_3 = arith.constant 0 : index
    %8 = vector.load %arg3[%c0_2, %c0_3] : memref<32x128xf32, #tpu.memory_space<vmem>>, vector<32x128xf32>
    %cst = arith.constant dense<0.000000e+00> : vector<8x128xf32>
    %9 = tpu.matmul %7, %8, %cst {dimension_numbers = #tpu.dot_dimension_numbers<[1], [0], [0], [1], [0, 0, 1, 1], [], []>, precision = #tpu.contract_precision<fp32>} : vector<8x32xf32>, vector<32x128xf32>, vector<8x128xf32> -> vector<8x128xf32>
    %c0_4 = arith.constant 0 : index
    %c0_5 = arith.constant 0 : index
    %10 = vector.load %arg4[%c0_4, %c0_5] : memref<1x128xf32, #tpu.memory_space<vmem>>, vector<1x128xf32>
    %11 = vector.broadcast %10 : vector<1x128xf32> to vector<8x128xf32>
    %12 = arith.addf %9, %11 : vector<8x128xf32>
    %cst_6 = arith.constant 0.176776692 : f32
    %13 = vector.broadcast %cst_6 : f32 to vector<8x128xf32>
    %14 = arith.mulf %12, %13 : vector<8x128xf32>
    %15 = vector.extract_strided_slice %14 {offsets = [0, 0], sizes = [8, 32], strides = [1, 1]} : vector<8x128xf32> to vector<8x32xf32>
    %c0_7 = arith.constant 0 : index
    %c0_8 = arith.constant 0 : index
    %16 = vector.load %arg20[%c0_7, %c0_8] : memref<8x128xf32, #tpu.memory_space<vmem>>, vector<8x32xf32>
    %c0_9 = arith.constant 0 : index
    %c0_10 = arith.constant 0 : index
    %17 = vector.load %arg21[%c0_9, %c0_10] : memref<8x128xf32, #tpu.memory_space<vmem>>, vector<8x32xf32>
    %cst_11 = arith.constant dense<0.000000e+00> : vector<8x8xf32>
    %18 = tpu.matmul %15, %16, %cst_11 {dimension_numbers = #tpu.dot_dimension_numbers<[1], [1], [0], [0], [0, 0, 1, 0], [], []>, precision = #tpu.contract_precision<fp32>} : vector<8x32xf32>, vector<8x32xf32>, vector<8x8xf32> -> vector<8x8xf32>
    %cst_12 = arith.constant dense<0xFF800000> : vector<8xf32>
    %19 = vector.multi_reduction <maximumf>, %18, %cst_12 [1] : vector<8x8xf32> to vector<8xf32>
    %20 = vector.shape_cast %19 : vector<8xf32> to vector<8x1xf32>
    %21 = vector.broadcast %20 : vector<8x1xf32> to vector<8x8xf32>
    %22 = arith.subf %18, %21 : vector<8x8xf32>
    %23 = math.exp %22 : vector<8x8xf32>
    %cst_13 = arith.constant dense<0.000000e+00> : vector<8xf32>
    %24 = vector.multi_reduction <add>, %23, %cst_13 [1] : vector<8x8xf32> to vector<8xf32>
    %25 = vector.shape_cast %24 : vector<8xf32> to vector<8x1xf32>
    %26 = vector.broadcast %25 : vector<8x1xf32> to vector<8x8xf32>
    %27 = arith.divf %23, %26 : vector<8x8xf32>
    %cst_14 = arith.constant dense<0.000000e+00> : vector<8x32xf32>
    %28 = tpu.matmul %27, %17, %cst_14 {dimension_numbers = #tpu.dot_dimension_numbers<[1], [0], [0], [1], [0, 0, 1, 1], [], []>, precision = #tpu.contract_precision<fp32>} : vector<8x8xf32>, vector<8x32xf32>, vector<8x32xf32> -> vector<8x32xf32>
    %29 = vector.extract_strided_slice %14 {offsets = [0, 32], sizes = [8, 32], strides = [1, 1]} : vector<8x128xf32> to vector<8x32xf32>
    %c0_15 = arith.constant 0 : index
    %c32 = arith.constant 32 : index
    %30 = vector.load %arg20[%c0_15, %c32] : memref<8x128xf32, #tpu.memory_space<vmem>>, vector<8x32xf32>
    %c0_16 = arith.constant 0 : index
    %c32_17 = arith.constant 32 : index
    %31 = vector.load %arg21[%c0_16, %c32_17] : memref<8x128xf32, #tpu.memory_space<vmem>>, vector<8x32xf32>
    %cst_18 = arith.constant dense<0.000000e+00> : vector<8x8xf32>
    %32 = tpu.matmul %29, %30, %cst_18 {dimension_numbers = #tpu.dot_dimension_numbers<[1], [1], [0], [0], [0, 0, 1, 0], [], []>, precision = #tpu.contract_precision<fp32>} : vector<8x32xf32>, vector<8x32xf32>, vector<8x8xf32> -> vector<8x8xf32>
    %cst_19 = arith.constant dense<0xFF800000> : vector<8xf32>
    %33 = vector.multi_reduction <maximumf>, %32, %cst_19 [1] : vector<8x8xf32> to vector<8xf32>
    %34 = vector.shape_cast %33 : vector<8xf32> to vector<8x1xf32>
    %35 = vector.broadcast %34 : vector<8x1xf32> to vector<8x8xf32>
    %36 = arith.subf %32, %35 : vector<8x8xf32>
    %37 = math.exp %36 : vector<8x8xf32>
    %cst_20 = arith.constant dense<0.000000e+00> : vector<8xf32>
    %38 = vector.multi_reduction <add>, %37, %cst_20 [1] : vector<8x8xf32> to vector<8xf32>
    %39 = vector.shape_cast %38 : vector<8xf32> to vector<8x1xf32>
    %40 = vector.broadcast %39 : vector<8x1xf32> to vector<8x8xf32>
    %41 = arith.divf %37, %40 : vector<8x8xf32>
    %cst_21 = arith.constant dense<0.000000e+00> : vector<8x32xf32>
    %42 = tpu.matmul %41, %31, %cst_21 {dimension_numbers = #tpu.dot_dimension_numbers<[1], [0], [0], [1], [0, 0, 1, 1], [], []>, precision = #tpu.contract_precision<fp32>} : vector<8x8xf32>, vector<8x32xf32>, vector<8x32xf32> -> vector<8x32xf32>
    %43 = vector.extract_strided_slice %14 {offsets = [0, 64], sizes = [8, 32], strides = [1, 1]} : vector<8x128xf32> to vector<8x32xf32>
    %c0_22 = arith.constant 0 : index
    %c64 = arith.constant 64 : index
    %44 = vector.load %arg20[%c0_22, %c64] : memref<8x128xf32, #tpu.memory_space<vmem>>, vector<8x32xf32>
    %c0_23 = arith.constant 0 : index
    %c64_24 = arith.constant 64 : index
    %45 = vector.load %arg21[%c0_23, %c64_24] : memref<8x128xf32, #tpu.memory_space<vmem>>, vector<8x32xf32>
    %cst_25 = arith.constant dense<0.000000e+00> : vector<8x8xf32>
    %46 = tpu.matmul %43, %44, %cst_25 {dimension_numbers = #tpu.dot_dimension_numbers<[1], [1], [0], [0], [0, 0, 1, 0], [], []>, precision = #tpu.contract_precision<fp32>} : vector<8x32xf32>, vector<8x32xf32>, vector<8x8xf32> -> vector<8x8xf32>
    %cst_26 = arith.constant dense<0xFF800000> : vector<8xf32>
    %47 = vector.multi_reduction <maximumf>, %46, %cst_26 [1] : vector<8x8xf32> to vector<8xf32>
    %48 = vector.shape_cast %47 : vector<8xf32> to vector<8x1xf32>
    %49 = vector.broadcast %48 : vector<8x1xf32> to vector<8x8xf32>
    %50 = arith.subf %46, %49 : vector<8x8xf32>
    %51 = math.exp %50 : vector<8x8xf32>
    %cst_27 = arith.constant dense<0.000000e+00> : vector<8xf32>
    %52 = vector.multi_reduction <add>, %51, %cst_27 [1] : vector<8x8xf32> to vector<8xf32>
    %53 = vector.shape_cast %52 : vector<8xf32> to vector<8x1xf32>
    %54 = vector.broadcast %53 : vector<8x1xf32> to vector<8x8xf32>
    %55 = arith.divf %51, %54 : vector<8x8xf32>
    %cst_28 = arith.constant dense<0.000000e+00> : vector<8x32xf32>
    %56 = tpu.matmul %55, %45, %cst_28 {dimension_numbers = #tpu.dot_dimension_numbers<[1], [0], [0], [1], [0, 0, 1, 1], [], []>, precision = #tpu.contract_precision<fp32>} : vector<8x8xf32>, vector<8x32xf32>, vector<8x32xf32> -> vector<8x32xf32>
    %57 = vector.extract_strided_slice %14 {offsets = [0, 96], sizes = [8, 32], strides = [1, 1]} : vector<8x128xf32> to vector<8x32xf32>
    %c0_29 = arith.constant 0 : index
    %c96 = arith.constant 96 : index
    %58 = vector.load %arg20[%c0_29, %c96] : memref<8x128xf32, #tpu.memory_space<vmem>>, vector<8x32xf32>
    %c0_30 = arith.constant 0 : index
    %c96_31 = arith.constant 96 : index
    %59 = vector.load %arg21[%c0_30, %c96_31] : memref<8x128xf32, #tpu.memory_space<vmem>>, vector<8x32xf32>
    %cst_32 = arith.constant dense<0.000000e+00> : vector<8x8xf32>
    %60 = tpu.matmul %57, %58, %cst_32 {dimension_numbers = #tpu.dot_dimension_numbers<[1], [1], [0], [0], [0, 0, 1, 0], [], []>, precision = #tpu.contract_precision<fp32>} : vector<8x32xf32>, vector<8x32xf32>, vector<8x8xf32> -> vector<8x8xf32>
    %cst_33 = arith.constant dense<0xFF800000> : vector<8xf32>
    %61 = vector.multi_reduction <maximumf>, %60, %cst_33 [1] : vector<8x8xf32> to vector<8xf32>
    %62 = vector.shape_cast %61 : vector<8xf32> to vector<8x1xf32>
    %63 = vector.broadcast %62 : vector<8x1xf32> to vector<8x8xf32>
    %64 = arith.subf %60, %63 : vector<8x8xf32>
    %65 = math.exp %64 : vector<8x8xf32>
    %cst_34 = arith.constant dense<0.000000e+00> : vector<8xf32>
    %66 = vector.multi_reduction <add>, %65, %cst_34 [1] : vector<8x8xf32> to vector<8xf32>
    %67 = vector.shape_cast %66 : vector<8xf32> to vector<8x1xf32>
    %68 = vector.broadcast %67 : vector<8x1xf32> to vector<8x8xf32>
    %69 = arith.divf %65, %68 : vector<8x8xf32>
    %cst_35 = arith.constant dense<0.000000e+00> : vector<8x32xf32>
    %70 = tpu.matmul %69, %59, %cst_35 {dimension_numbers = #tpu.dot_dimension_numbers<[1], [0], [0], [1], [0, 0, 1, 1], [], []>, precision = #tpu.contract_precision<fp32>} : vector<8x8xf32>, vector<8x32xf32>, vector<8x32xf32> -> vector<8x32xf32>
    %71 = tpu.concatenate %28, %42, %56, %70 in 1 : vector<8x32xf32>, vector<8x32xf32>, vector<8x32xf32>, vector<8x32xf32> -> vector<8x128xf32>
    %c0_36 = arith.constant 0 : index
    %c0_37 = arith.constant 0 : index
    %72 = vector.load %arg9[%c0_36, %c0_37] : memref<128x32xf32, #tpu.memory_space<vmem>>, vector<128x32xf32>
    %cst_38 = arith.constant dense<0.000000e+00> : vector<8x32xf32>
    %73 = tpu.matmul %71, %72, %cst_38 {dimension_numbers = #tpu.dot_dimension_numbers<[1], [0], [0], [1], [0, 0, 1, 1], [], []>, precision = #tpu.contract_precision<fp32>} : vector<8x128xf32>, vector<128x32xf32>, vector<8x32xf32> -> vector<8x32xf32>
    %c0_39 = arith.constant 0 : index
    %c0_40 = arith.constant 0 : index
    %74 = vector.load %arg10[%c0_39, %c0_40] : memref<1x32xf32, #tpu.memory_space<vmem>>, vector<1x32xf32>
    %75 = vector.broadcast %74 : vector<1x32xf32> to vector<8x32xf32>
    %76 = arith.addf %73, %75 : vector<8x32xf32>
    %77 = arith.addf %76, %7 : vector<8x32xf32>
    %c0_41 = arith.constant 0 : index
    %c0_42 = arith.constant 0 : index
    %78 = vector.load %arg11[%c0_41, %c0_42] : memref<1x32xf32, #tpu.memory_space<vmem>>, vector<1x32xf32>
    %c0_43 = arith.constant 0 : index
    %c0_44 = arith.constant 0 : index
    %79 = vector.load %arg12[%c0_43, %c0_44] : memref<1x32xf32, #tpu.memory_space<vmem>>, vector<1x32xf32>
    %cst_45 = arith.constant dense<0.000000e+00> : vector<8xf32>
    %80 = vector.multi_reduction <add>, %77, %cst_45 [1] : vector<8x32xf32> to vector<8xf32>
    %81 = vector.shape_cast %80 : vector<8xf32> to vector<8x1xf32>
    %cst_46 = arith.constant 3.200000e+01 : f32
    %82 = vector.broadcast %cst_46 : f32 to vector<8x1xf32>
    %83 = arith.divf %81, %82 : vector<8x1xf32>
    %84 = vector.broadcast %83 : vector<8x1xf32> to vector<8x32xf32>
    %85 = arith.subf %77, %84 : vector<8x32xf32>
    %86 = arith.mulf %85, %85 : vector<8x32xf32>
    %cst_47 = arith.constant dense<0.000000e+00> : vector<8xf32>
    %87 = vector.multi_reduction <add>, %86, %cst_47 [1] : vector<8x32xf32> to vector<8xf32>
    %88 = vector.shape_cast %87 : vector<8xf32> to vector<8x1xf32>
    %cst_48 = arith.constant 3.200000e+01 : f32
    %89 = vector.broadcast %cst_48 : f32 to vector<8x1xf32>
    %90 = arith.divf %88, %89 : vector<8x1xf32>
    %91 = vector.broadcast %83 : vector<8x1xf32> to vector<8x32xf32>
    %92 = arith.subf %77, %91 : vector<8x32xf32>
    %cst_49 = arith.constant 9.99999974E-6 : f32
    %93 = vector.broadcast %cst_49 : f32 to vector<8x1xf32>
    %94 = arith.addf %90, %93 : vector<8x1xf32>
    %95 = math.rsqrt %94 : vector<8x1xf32>
    %96 = vector.broadcast %95 : vector<8x1xf32> to vector<8x32xf32>
    %97 = arith.mulf %92, %96 : vector<8x32xf32>
    %98 = vector.broadcast %78 : vector<1x32xf32> to vector<8x32xf32>
    %99 = arith.mulf %97, %98 : vector<8x32xf32>
    %100 = vector.broadcast %79 : vector<1x32xf32> to vector<8x32xf32>
    %101 = arith.addf %99, %100 : vector<8x32xf32>
    %c0_50 = arith.constant 0 : index
    %c0_51 = arith.constant 0 : index
    %102 = vector.load %arg13[%c0_50, %c0_51] : memref<32x128xf32, #tpu.memory_space<vmem>>, vector<32x128xf32>
    %cst_52 = arith.constant dense<0.000000e+00> : vector<8x128xf32>
    %103 = tpu.matmul %101, %102, %cst_52 {dimension_numbers = #tpu.dot_dimension_numbers<[1], [0], [0], [1], [0, 0, 1, 1], [], []>, precision = #tpu.contract_precision<fp32>} : vector<8x32xf32>, vector<32x128xf32>, vector<8x128xf32> -> vector<8x128xf32>
    %c0_53 = arith.constant 0 : index
    %c0_54 = arith.constant 0 : index
    %104 = vector.load %arg14[%c0_53, %c0_54] : memref<1x128xf32, #tpu.memory_space<vmem>>, vector<1x128xf32>
    %105 = vector.broadcast %104 : vector<1x128xf32> to vector<8x128xf32>
    %106 = arith.addf %103, %105 : vector<8x128xf32>
    %cst_55 = arith.constant 0.000000e+00 : f32
    %107 = vector.broadcast %cst_55 : f32 to vector<8x128xf32>
    %108 = arith.maximumf %106, %107 : vector<8x128xf32>
    %c0_56 = arith.constant 0 : index
    %c0_57 = arith.constant 0 : index
    %109 = vector.load %arg15[%c0_56, %c0_57] : memref<128x32xf32, #tpu.memory_space<vmem>>, vector<128x32xf32>
    %cst_58 = arith.constant dense<0.000000e+00> : vector<8x32xf32>
    %110 = tpu.matmul %108, %109, %cst_58 {dimension_numbers = #tpu.dot_dimension_numbers<[1], [0], [0], [1], [0, 0, 1, 1], [], []>, precision = #tpu.contract_precision<fp32>} : vector<8x128xf32>, vector<128x32xf32>, vector<8x32xf32> -> vector<8x32xf32>
    %c0_59 = arith.constant 0 : index
    %c0_60 = arith.constant 0 : index
    %111 = vector.load %arg16[%c0_59, %c0_60] : memref<1x32xf32, #tpu.memory_space<vmem>>, vector<1x32xf32>
    %112 = vector.broadcast %111 : vector<1x32xf32> to vector<8x32xf32>
    %113 = arith.addf %110, %112 : vector<8x32xf32>
    %114 = arith.addf %113, %101 : vector<8x32xf32>
    %c0_61 = arith.constant 0 : index
    %c0_62 = arith.constant 0 : index
    %115 = vector.load %arg17[%c0_61, %c0_62] : memref<1x32xf32, #tpu.memory_space<vmem>>, vector<1x32xf32>
    %c0_63 = arith.constant 0 : index
    %c0_64 = arith.constant 0 : index
    %116 = vector.load %arg18[%c0_63, %c0_64] : memref<1x32xf32, #tpu.memory_space<vmem>>, vector<1x32xf32>
    %cst_65 = arith.constant dense<0.000000e+00> : vector<8xf32>
    %117 = vector.multi_reduction <add>, %114, %cst_65 [1] : vector<8x32xf32> to vector<8xf32>
    %118 = vector.shape_cast %117 : vector<8xf32> to vector<8x1xf32>
    %cst_66 = arith.constant 3.200000e+01 : f32
    %119 = vector.broadcast %cst_66 : f32 to vector<8x1xf32>
    %120 = arith.divf %118, %119 : vector<8x1xf32>
    %121 = vector.broadcast %120 : vector<8x1xf32> to vector<8x32xf32>
    %122 = arith.subf %114, %121 : vector<8x32xf32>
    %123 = arith.mulf %122, %122 : vector<8x32xf32>
    %cst_67 = arith.constant dense<0.000000e+00> : vector<8xf32>
    %124 = vector.multi_reduction <add>, %123, %cst_67 [1] : vector<8x32xf32> to vector<8xf32>
    %125 = vector.shape_cast %124 : vector<8xf32> to vector<8x1xf32>
    %cst_68 = arith.constant 3.200000e+01 : f32
    %126 = vector.broadcast %cst_68 : f32 to vector<8x1xf32>
    %127 = arith.divf %125, %126 : vector<8x1xf32>
    %128 = vector.broadcast %120 : vector<8x1xf32> to vector<8x32xf32>
    %129 = arith.subf %114, %128 : vector<8x32xf32>
    %cst_69 = arith.constant 9.99999974E-6 : f32
    %130 = vector.broadcast %cst_69 : f32 to vector<8x1xf32>
    %131 = arith.addf %127, %130 : vector<8x1xf32>
    %132 = math.rsqrt %131 : vector<8x1xf32>
    %133 = vector.broadcast %132 : vector<8x1xf32> to vector<8x32xf32>
    %134 = arith.mulf %129, %133 : vector<8x32xf32>
    %135 = vector.broadcast %115 : vector<1x32xf32> to vector<8x32xf32>
    %136 = arith.mulf %134, %135 : vector<8x32xf32>
    %137 = vector.broadcast %116 : vector<1x32xf32> to vector<8x32xf32>
    %138 = arith.addf %136, %137 : vector<8x32xf32>
    %c0_70 = arith.constant 0 : index
    %c0_71 = arith.constant 0 : index
    %c0_72 = arith.constant 0 : index
    %139 = vector.load %arg19[%c0_70, %c0_71, %c0_72] : memref<1x8x32xf32, #tpu.memory_space<vmem>>, vector<1x8x32xf32>
    %140 = vector.shape_cast %139 : vector<1x8x32xf32> to vector<8x32xf32>
    %141 = vector.shape_cast %138 : vector<8x32xf32> to vector<1x8x32xf32>
    tpu.vector_store %arg19[%c0_70, %c0_71, %c0_72], %141 {strides = array<i32>} : memref<1x8x32xf32, #tpu.memory_space<vmem>>, vector<1x8x32xf32>,
    return
  }
  func.func @transform_0(%arg0: i32, %arg1: i32) -> (i32, i32, i32) {
    %c0_i32 = arith.constant 0 : i32
    %c0_i32_0 = arith.constant 0 : i32
    %c0_i32_1 = arith.constant 0 : i32
    return %arg0, %c0_i32, %c0_i32_0 : i32, i32, i32
  }
  func.func @transform_1(%arg0: i32, %arg1: i32) -> (i32, i32) {
    %c0_i32 = arith.constant 0 : i32
    %c0_i32_0 = arith.constant 0 : i32
    %c0_i32_1 = arith.constant 0 : i32
    return %c0_i32, %c0_i32_0 : i32, i32
  }
  func.func @transform_2(%arg0: i32, %arg1: i32) -> (i32, i32) {
    %c0_i32 = arith.constant 0 : i32
    %c0_i32_0 = arith.constant 0 : i32
    %c0_i32_1 = arith.constant 0 : i32
    return %c0_i32, %c0_i32_0 : i32, i32
  }
  func.func @transform_3(%arg0: i32, %arg1: i32) -> (i32, i32) {
    %c0_i32 = arith.constant 0 : i32
    %c0_i32_0 = arith.constant 0 : i32
    %c0_i32_1 = arith.constant 0 : i32
    return %c0_i32, %c0_i32_0 : i32, i32
  }
  func.func @transform_4(%arg0: i32, %arg1: i32) -> (i32, i32) {
    %c0_i32 = arith.constant 0 : i32
    %c0_i32_0 = arith.constant 0 : i32
    %c0_i32_1 = arith.constant 0 : i32
    return %c0_i32, %c0_i32_0 : i32, i32
  }
  func.func @transform_5(%arg0: i32, %arg1: i32) -> (i32, i32) {
    %c0_i32 = arith.constant 0 : i32
    %c0_i32_0 = arith.constant 0 : i32
    %c0_i32_1 = arith.constant 0 : i32
    return %c0_i32, %c0_i32_0 : i32, i32
  }
  func.func @transform_6(%arg0: i32, %arg1: i32) -> (i32, i32) {
    %c0_i32 = arith.constant 0 : i32
    %c0_i32_0 = arith.constant 0 : i32
    %c0_i32_1 = arith.constant 0 : i32
    return %c0_i32, %c0_i32_0 : i32, i32
  }
  func.func @transform_7(%arg0: i32, %arg1: i32) -> (i32, i32) {
    %c0_i32 = arith.constant 0 : i32
    %c0_i32_0 = arith.constant 0 : i32
    %c0_i32_1 = arith.constant 0 : i32
    return %c0_i32, %c0_i32_0 : i32, i32
  }
  func.func @transform_8(%arg0: i32, %arg1: i32) -> (i32, i32) {
    %c0_i32 = arith.constant 0 : i32
    %c0_i32_0 = arith.constant 0 : i32
    %c0_i32_1 = arith.constant 0 : i32
    return %c0_i32, %c0_i32_0 : i32, i32
  }
  func.func @transform_9(%arg0: i32, %arg1: i32) -> (i32, i32) {
    %c0_i32 = arith.constant 0 : i32
    %c0_i32_0 = arith.constant 0 : i32
    %c0_i32_1 = arith.constant 0 : i32
    return %c0_i32, %c0_i32_0 : i32, i32
  }
  func.func @transform_10(%arg0: i32, %arg1: i32) -> (i32, i32) {
    %c0_i32 = arith.constant 0 : i32
    %c0_i32_0 = arith.constant 0 : i32
    %c0_i32_1 = arith.constant 0 : i32
    return %c0_i32, %c0_i32_0 : i32, i32
  }
  func.func @transform_11(%arg0: i32, %arg1: i32) -> (i32, i32) {
    %c0_i32 = arith.constant 0 : i32
    %c0_i32_0 = arith.constant 0 : i32
    %c0_i32_1 = arith.constant 0 : i32
    return %c0_i32, %c0_i32_0 : i32, i32
  }
  func.func @transform_12(%arg0: i32, %arg1: i32) -> (i32, i32) {
    %c0_i32 = arith.constant 0 : i32
    %c0_i32_0 = arith.constant 0 : i32
    %c0_i32_1 = arith.constant 0 : i32
    return %c0_i32, %c0_i32_0 : i32, i32
  }
  func.func @transform_13(%arg0: i32, %arg1: i32) -> (i32, i32) {
    %c0_i32 = arith.constant 0 : i32
    %c0_i32_0 = arith.constant 0 : i32
    %c0_i32_1 = arith.constant 0 : i32
    return %c0_i32, %c0_i32_0 : i32, i32
  }
  func.func @transform_14(%arg0: i32, %arg1: i32) -> (i32, i32) {
    %c0_i32 = arith.constant 0 : i32
    %c0_i32_0 = arith.constant 0 : i32
    %c0_i32_1 = arith.constant 0 : i32
    return %c0_i32, %c0_i32_0 : i32, i32
  }
  func.func @transform_15(%arg0: i32, %arg1: i32) -> (i32, i32) {
    %c0_i32 = arith.constant 0 : i32
    %c0_i32_0 = arith.constant 0 : i32
    %c0_i32_1 = arith.constant 0 : i32
    return %c0_i32, %c0_i32_0 : i32, i32
  }
  func.func @transform_16(%arg0: i32, %arg1: i32) -> (i32, i32) {
    %c0_i32 = arith.constant 0 : i32
    %c0_i32_0 = arith.constant 0 : i32
    %c0_i32_1 = arith.constant 0 : i32
    return %c0_i32, %c0_i32_0 : i32, i32
  }
  func.func @transform_17(%arg0: i32, %arg1: i32) -> (i32, i32, i32) {
    %c0_i32 = arith.constant 0 : i32
    %c0_i32_0 = arith.constant 0 : i32
    return %arg0, %arg1, %c0_i32 : i32, i32, i32
  }
}

</mosaic_0001>

<bundles_post_ra>
// kernel: tpu_custom_call.1
= control target key start
LH: loop header
LB: loop body
LE: loop exit
PB: predicated region body
PF: predicated region fallthrough
CT: control target
= control target key end

     0   :  { %s12541_s0 = inlined_call_operand.hbm [shape: f32[2,8,32], index: 0, kind: input, shape index: {}]   ;;  %s12542_s1 = inlined_call_operand.hbm [shape: f32[32,128], index: 1, kind: input, shape index: {}]   ;;  %s12543_s2 = inlined_call_operand.hbm [shape: f32[1,128], index: 2, kind: input, shape index: {}]   ;;  %s12544_s3 = inlined_call_operand.hbm [shape: f32[32,128], index: 3, kind: input, shape index: {}]   ;;  %s12545_s4 = inlined_call_operand.hbm [shape: f32[1,128], index: 4, kind: input, shape index: {}]   ;;  %s12546_s5 = inlined_call_operand.hbm [shape: f32[32,128], index: 5, kind: input, shape index: {}]   ;;  %s12547_s6 = inlined_call_operand.hbm [shape: f32[1,128], index: 6, kind: input, shape index: {}]   ;;  %s12548_s7 = inlined_call_operand.hbm [shape: f32[128,32], index: 7, kind: input, shape index: {}]   ;;  %s12549_s8 = inlined_call_operand.hbm [shape: f32[1,32], index: 8, kind: input, shape index: {}]   ;;  %s12550_s9 = inlined_call_operand.hbm [shape: f32[1,32], index: 9, kind: input, shape index: {}]   ;;  %s12551_s10 = inlined_call_operand.hbm [shape: f32[1,32], index: 10, kind: input, shape index: {}]   ;;  %s12552_s11 = inlined_call_operand.hbm [shape: f32[32,128], index: 11, kind: input, shape index: {}]   ;;  %s12553_s12 = inlined_call_operand.hbm [shape: f32[1,128], index: 12, kind: input, shape index: {}]   ;;  %s12554_s13 = inlined_call_operand.hbm [shape: f32[128,32], index: 13, kind: input, shape index: {}]   ;;  %s12555_s14 = inlined_call_operand.hbm [shape: f32[1,32], index: 14, kind: input, shape index: {}]   ;;  %s12556_s15 = inlined_call_operand.hbm [shape: f32[1,32], index: 15, kind: input, shape index: {}]   ;;  %s12557_s16 = inlined_call_operand.hbm [shape: f32[1,32], index: 16, kind: input, shape index: {}]   ;;  %s12558_s17 = inlined_call_operand.hbm [shape: f32[2,8,32], index: 17, kind: output, shape index: {}]  }
   0x1   :  { %12577 = sst [smem:[#allocation50_spill]] %s12541_s0 }
   0x2   :  { %12578 = sst [smem:[#allocation51_spill]] %s12542_s1 }
   0x3   :  { %12579 = sst [smem:[#allocation52_spill]] %s12543_s2 }
   0x4   :  { %12580 = sst [smem:[#allocation53_spill]] %s12544_s3 }
   0x5   :  { %12581 = sst [smem:[#allocation54_spill]] %s12545_s4 }
   0x6   :  { %12582 = sst [smem:[#allocation55_spill]] %s12546_s5 }
   0x7   :  { %12583 = sst [smem:[#allocation56_spill]] %s12557_s16 }
   0x8   :  { %12584 = sst [smem:[#allocation57_spill]] %s12558_s17 }
   0x9   :  { %22 = vsyncpa [#allocation5], 0 }
   0xa   :  { %24 = vsyncpa [#allocation5 + $0x1], 0 }
   0xb   :  { %25 = vsyncpa [#allocation8], 0 }
   0xc   :  { %26 = vsyncpa [#allocation11], 0 }
   0xd   :  { %27 = vsyncpa [#allocation14], 0 }
   0xe   :  { %28 = vsyncpa [#allocation17], 0 }
   0xf   :  { %29 = vsyncpa [#allocation20], 0 }
  0x10   :  { %30 = vsyncpa [#allocation23], 0 }
  0x11   :  { %31 = vsyncpa [#allocation26], 0 }
  0x12   :  { %32 = vsyncpa [#allocation29], 0 }
  0x13   :  { %33 = vsyncpa [#allocation6], 0 }
  0x14   :  { %35 = vsyncpa [#allocation6 + $0x1], 0  ;;  %s11035_s24 = smov 0   ;;  %s11037_s25 = smov 0  }
  0x15   :  { %s11039_s26 = smov 0   ;;  %s11041_s27 = smov 0  }
  0x16   :  { %s11043_s28 = smov 0   ;;  %s11045_s29 = smov 0  }
  0x17 LB: > { %12585 = sst [smem:[#allocation42_spill]] %s10897_s24  ;;  %s12561_s0 = sadd.s32 4294967295, %s10917_s29   ;;  %s10917_s29 = sphi %s11045_s29, %s41_s29   ;;  %s10913_s28 = sphi %s11043_s28, %s12637_s28   ;;  %s10909_s27 = sphi %s11041_s27, %s12636_s27   ;;  %s10905_s26 = sphi %s11039_s26, %s12635_s26   ;;  %s10901_s25 = sphi %s11037_s25, %s12632_s25   ;;  %s10897_s24 = sphi %s11035_s24, %s12631_s24  }
  0x18   : > { %12586 = sst [smem:[#allocation43_spill]] %s10901_s25  ;;  %p8121_p0 = scmp.ge.s32.totalorder %s10917_s29, 1 }
  0x19   : > { %12587 = sst [smem:[#allocation44_spill]] %s10905_s26  ;;  %p11069_p1 = scmp.eq.s32.totalorder %s12561_s0, 0 }
  0x1a   : > { %12588 = sst [smem:[#allocation45_spill]] %s10909_s27  ;;  %p448_p2 = scmp.lt.s32.totalorder %s10917_s29, 3 }
  0x1b   : > { %12589 = sst [smem:[#allocation46_spill]] %s10913_s28  ;;  %s10919_s19 = smov [#allocation7]  }
  0x1c   : > { %12590 = sst [smem:[#allocation47_spill]] %s10917_s29  ;;  %p11074_p3 = pnand %p8121_p0, %p448_p2 }
  0x1d   : > { %s12591_s30 = scalar_select %p11069_p1, 1, 0 }
  0x1e   : > { %s12593_s18 = scalar_select %p11074_p3, 1, 0 }
  0x1f   : > { %12592 = sst [smem:[#allocation48_spill]] %s12591_s30  ;;  %s460_s1 = sshll.u32 %s10919_s19, 4  ;;  %s11078_s1 = int_to_ptr.vmem [resolvable:$true] %s460_s1 }
  0x20   : > { %12594 = sst [smem:[#allocation49_spill]] %s12593_s18  ;;  %p10141_p4 = pneg %p11074_p3 }
  0x21   : > { %s10920_s21 = smov [#allocation10]   ;;  %s10921_s23 = smov [#allocation13]  }
  0x22   : > { %p11085_p6 = pnand %p10141_p4, %p11069_p1  ;;  %s484_s22 = sshll.u32 %s10920_s21, 4  ;;  %s11089_s22 = int_to_ptr.vmem [resolvable:$true] %s484_s22 }
  0x23   : > { %s11091_s0 = sshll.u32 %s10921_s23, 4  ;;  %s12596_s27 = sld [smem:[#allocation51_spill]]  ;;  %s509_s0 = int_to_ptr.vmem [resolvable:$true] %s11091_s0 }
  0x24   : > { %p11101_p8 = pneg %p11085_p6 }
  0x29   : > { %s12597_s16 = smov %s12596_s27  ;;  %s10325_s24 = scalar_lea.hbm %s12596_s27, 512 }
  0x2a   : > { %p10326_p7 = scmp.ne.s32.totalorder %s12597_s16, %s10325_s24  ;;  %p10332_p11 = scmp.lt.u32.totalorder %s10325_s24, %s12597_s16 }
  0x2c   : > { %p10328_p9 = pnand %p11101_p8, %p10326_p7 }
  0x2e   : > { %p10329_p10 = pneg %p10328_p9 }
  0x30   : > { %p10334_p12 = pnand %p10332_p11, %p10329_p10 }
  0x32   : > { %10337 = shalt.err (!%p10334_p12)
}
  0x33   : > { %s10338_s17 = scalar_lea.vmem %s11078_s1, 512  ;;  %p10346_p4 = scmp.lt.s32.totalorder %s11078_s1, %s11078_s1 }
  0x34   : > { %p10339_p13 = scmp.ne.s32.totalorder %s11078_s1, %s10338_s17  ;;  %p10347_p5 = scmp.lt.s32.totalorder %s10338_s17, %s10338_s17 }
  0x36   : > { %p10341_p0 = pnand %p10339_p13, %p11101_p8  ;;  %p10348_p7 = por %p10347_p5, %p10346_p4 }
  0x38   : > { %p10342_p2 = pneg %p10341_p0 }
  0x3a   : > { %p10349_p9 = pnand %p10348_p7, %p10342_p2 }
  0x3c   : > { %10352 = shalt.err (!%p10349_p9)
}
  0x3d   : > { %s10922_s25 = smov 128   ;;  %s10923_s24 = smov 8  }
  0x3e   : > { %10144 = dma.hbm_to_vmem [thread:$0]  (!%p11085_p6), %s12597_s16, 512, %s11078_s1, [#allocation8], %s10922_s25, %s10922_s25, %s10923_s24  }
  0x3f   : > { %s12599_s3 = sld [smem:[#allocation53_spill]] }
  0x45   : > { %s10353_s23 = scalar_lea.hbm %s12599_s3, 512 }
  0x46   : > { %p10354_p5 = scmp.ne.s32.totalorder %s12599_s3, %s10353_s23  ;;  %p10360_p12 = scmp.lt.u32.totalorder %s10353_s23, %s12599_s3 }
  0x48   : > { %p10356_p10 = pnand %p10354_p5, %p11101_p8 }
  0x4a   : > { %p10357_p11 = pneg %p10356_p10 }
  0x4c   : > { %p10362_p13 = pnand %p10360_p12, %p10357_p11 }
  0x4e   : > { %10365 = shalt.err (!%p10362_p13)
}
  0x4f   : > { %s10366_s1 = scalar_lea.vmem %s11089_s22, 512  ;;  %p10374_p7 = scmp.lt.s32.totalorder %s11089_s22, %s11089_s22 }
  0x50   : > { %p10367_p0 = scmp.ne.s32.totalorder %s11089_s22, %s10366_s1  ;;  %p10375_p9 = scmp.lt.s32.totalorder %s10366_s1, %s10366_s1 }
  0x52   : > { %p10369_p2 = pnand %p10367_p0, %p11101_p8  ;;  %p10376_p5 = por %p10375_p9, %p10374_p7 }
  0x54   : > { %p10370_p4 = pneg %p10369_p2 }
  0x56   : > { %p10377_p10 = pnand %p10376_p5, %p10370_p4 }
  0x58   : > { %10380 = shalt.err (!%p10377_p10)
}
  0x59   : > { %10150 = dma.hbm_to_vmem [thread:$0]  (!%p11085_p6), %s12599_s3, 512, %s11089_s22, [#allocation11], %s10922_s25, %s10922_s25, %s10923_s24  }
  0x5a   : > { %s12600_s5 = sld [smem:[#allocation55_spill]] }
  0x60   : > { %s10381_s18 = scalar_lea.hbm %s12600_s5, 512 }
  0x61   : > { %p10382_p11 = scmp.ne.s32.totalorder %s12600_s5, %s10381_s18  ;;  %p10388_p0 = scmp.lt.u32.totalorder %s10381_s18, %s12600_s5 }
  0x63   : > { %p10384_p12 = pnand %p10382_p11, %p11101_p8 }
  0x65   : > { %p10385_p13 = pneg %p10384_p12 }
  0x67   : > { %p10390_p2 = pnand %p10388_p0, %p10385_p13 }
  0x69   : > { %10393 = shalt.err (!%p10390_p2)
}
  0x6a   : > { %s10394_s1 = scalar_lea.vmem %s509_s0, 512  ;;  %p10402_p5 = scmp.lt.s32.totalorder %s509_s0, %s509_s0 }
  0x6b   : > { %p10395_p4 = scmp.ne.s32.totalorder %s509_s0, %s10394_s1  ;;  %p10403_p10 = scmp.lt.s32.totalorder %s10394_s1, %s10394_s1 }
  0x6d   : > { %p10397_p7 = pnand %p10395_p4, %p11101_p8  ;;  %p10404_p3 = por %p10403_p10, %p10402_p5 }
  0x6f   : > { %p10398_p9 = pneg %p10397_p7 }
  0x71   : > { %p10405_p1 = pnand %p10404_p3, %p10398_p9 }
  0x73   : > { %10408 = shalt.err (!%p10405_p1)
}
  0x74   : > { %10156 = dma.hbm_to_vmem [thread:$0]  (!%p11085_p6), %s12600_s5, 512, %s509_s0, [#allocation14], %s10922_s25, %s10922_s25, %s10923_s24  }
  0x75   : > { %s10924_s28 = smov [#allocation16]   ;;  %s10925_s27 = smov [#allocation19]  }
  0x76   : > { %s532_s29 = sshll.u32 %s10924_s28, 4  ;;  %s557_s18 = sshll.u32 %s10925_s27, 4  ;;  %s533_s29 = int_to_ptr.vmem [resolvable:$true] %s532_s29  ;;  %s558_s18 = int_to_ptr.vmem [resolvable:$true] %s557_s18 }
  0x77   : > { %s10409_s23 = scalar_lea.hbm %s12548_s7, 2048 }
  0x78   : > { %p10410_p1 = scmp.ne.s32.totalorder %s12548_s7, %s10409_s23  ;;  %p10416_p12 = scmp.lt.u32.totalorder %s10409_s23, %s12548_s7 }
  0x7a   : > { %p10412_p3 = pnand %p10410_p1, %p11101_p8 }
  0x7c   : > { %p10413_p11 = pneg %p10412_p3 }
  0x7e   : > { %p10418_p13 = pnand %p10416_p12, %p10413_p11 }
  0x80   : > { %10421 = shalt.err (!%p10418_p13)
}
  0x81   : > { %s10422_s0 = scalar_lea.vmem %s533_s29, 2048  ;;  %p10430_p7 = scmp.lt.s32.totalorder %s533_s29, %s533_s29 }
  0x82   : > { %p10423_p0 = scmp.ne.s32.totalorder %s533_s29, %s10422_s0  ;;  %p10431_p9 = scmp.lt.s32.totalorder %s10422_s0, %s10422_s0 }
  0x84   : > { %p10425_p2 = pnand %p10423_p0, %p11101_p8  ;;  %p10432_p5 = por %p10431_p9, %p10430_p7 }
  0x86   : > { %p10426_p4 = pneg %p10425_p2 }
  0x88   : > { %p10433_p10 = pnand %p10432_p5, %p10426_p4 }
  0x8a   : > { %10436 = shalt.err (!%p10433_p10)
}
  0x8b   : > { %10162 = dma.hbm_to_vmem [thread:$0]  (!%p11085_p6), %s12548_s7, 2048, %s533_s29, [#allocation17], %s10922_s25, %s10922_s25, %s10923_s24  }
  0x8c   : > { %s10437_s19 = scalar_lea.hbm %s12550_s9, 16 }
  0x8d   : > { %p10438_p1 = scmp.ne.s32.totalorder %s12550_s9, %s10437_s19  ;;  %p10444_p12 = scmp.lt.u32.totalorder %s10437_s19, %s12550_s9 }
  0x8f   : > { %p10440_p3 = pnand %p10438_p1, %p11101_p8 }
  0x91   : > { %p10441_p11 = pneg %p10440_p3 }
  0x93   : > { %p10446_p13 = pnand %p10444_p12, %p10441_p11 }
  0x95   : > { %10449 = shalt.err (!%p10446_p13)
}
  0x96   : > { %s10450_s22 = scalar_lea.vmem %s558_s18, 16  ;;  %s10457_s29 = scalar_lea.vmem %s558_s18, 32 }
  0x97   : > { %p10451_p0 = scmp.ne.s32.totalorder %s558_s18, %s10450_s22  ;;  %p10458_p7 = scmp.lt.s32.totalorder %s558_s18, %s558_s18 }
  0x98   : > { %p10459_p9 = scmp.lt.s32.totalorder %s10457_s29, %s10450_s22 }
  0x99   : > { %p10453_p2 = pnand %p10451_p0, %p11101_p8 }
  0x9a   : > { %p10460_p5 = por %p10459_p9, %p10458_p7 }
  0x9b   : > { %p10454_p4 = pneg %p10453_p2 }
  0x9d   : > { %p10461_p10 = pnand %p10460_p5, %p10454_p4 }
  0x9f   : > { %10464 = shalt.err (!%p10461_p10)
}
  0xa0   : > { %10168 = dma.hbm_to_vmem [thread:$0]  (!%p11085_p6), %s12550_s9, 16, %s558_s18, [#allocation20]  }
  0xa1   : > { %s10926_s26 = smov [#allocation22]   ;;  %s10927_s27 = smov [#allocation25]  }
  0xa2   : > { %s578_s28 = sshll.u32 %s10926_s26, 4  ;;  %s602_s19 = sshll.u32 %s10927_s27, 4  ;;  %s579_s28 = int_to_ptr.vmem [resolvable:$true] %s578_s28  ;;  %s603_s19 = int_to_ptr.vmem [resolvable:$true] %s602_s19 }
  0xa3   : > { %s10465_s17 = scalar_lea.hbm %s12552_s11, 512 }
  0xa4   : > { %p10466_p1 = scmp.ne.s32.totalorder %s12552_s11, %s10465_s17  ;;  %p10472_p12 = scmp.lt.u32.totalorder %s10465_s17, %s12552_s11 }
  0xa6   : > { %p10468_p3 = pnand %p10466_p1, %p11101_p8 }
  0xa8   : > { %p10469_p11 = pneg %p10468_p3 }
  0xaa   : > { %p10474_p13 = pnand %p10472_p12, %p10469_p11 }
  0xac   : > { %10477 = shalt.err (!%p10474_p13)
}
  0xad   : > { %s10478_s18 = scalar_lea.vmem %s579_s28, 512  ;;  %p10486_p7 = scmp.lt.s32.totalorder %s579_s28, %s579_s28 }
  0xae   : > { %p10479_p0 = scmp.ne.s32.totalorder %s579_s28, %s10478_s18  ;;  %p10487_p9 = scmp.lt.s32.totalorder %s10478_s18, %s10478_s18 }
  0xb0   : > { %p10481_p2 = pnand %p10479_p0, %p11101_p8  ;;  %p10488_p5 = por %p10487_p9, %p10486_p7 }
  0xb2   : > { %p10482_p4 = pneg %p10481_p2 }
  0xb4   : > { %p10489_p10 = pnand %p10488_p5, %p10482_p4 }
  0xb6   : > { %10492 = shalt.err (!%p10489_p10)
}
  0xb7   : > { %10174 = dma.hbm_to_vmem [thread:$0]  (!%p11085_p6), %s12552_s11, 512, %s579_s28, [#allocation23], %s10922_s25, %s10922_s25, %s10923_s24  }
  0xb8   : > { %s10493_s23 = scalar_lea.hbm %s12554_s13, 2048 }
  0xb9   : > { %p10494_p1 = scmp.ne.s32.totalorder %s12554_s13, %s10493_s23  ;;  %p10500_p12 = scmp.lt.u32.totalorder %s10493_s23, %s12554_s13 }
  0xbb   : > { %p10496_p3 = pnand %p10494_p1, %p11101_p8 }
  0xbd   : > { %p10497_p11 = pneg %p10496_p3 }
  0xbf   : > { %p10502_p13 = pnand %p10500_p12, %p10497_p11 }
  0xc1   : > { %10505 = shalt.err (!%p10502_p13)
}
  0xc2   : > { %s10506_s0 = scalar_lea.vmem %s603_s19, 2048  ;;  %p10514_p7 = scmp.lt.s32.totalorder %s603_s19, %s603_s19 }
  0xc3   : > { %p10507_p0 = scmp.ne.s32.totalorder %s603_s19, %s10506_s0  ;;  %p10515_p9 = scmp.lt.s32.totalorder %s10506_s0, %s10506_s0 }
  0xc5   : > { %p10509_p2 = pnand %p10507_p0, %p11101_p8  ;;  %p10516_p5 = por %p10515_p9, %p10514_p7 }
  0xc7   : > { %p10510_p4 = pneg %p10509_p2 }
  0xc9   : > { %p10517_p10 = pnand %p10516_p5, %p10510_p4 }
  0xcb   : > { %10520 = shalt.err (!%p10517_p10)
}
  0xcc   : > { %10180 = dma.hbm_to_vmem [thread:$0]  (!%p11085_p6), %s12554_s13, 2048, %s603_s19, [#allocation26], %s10922_s25, %s10922_s25, %s10923_s24  }
  0xcd   : > { %s10928_s3 = smov [#allocation28]   ;;  %s10929_s27 = smov [#allocation9]  }
  0xce   : > { %s627_s26 = sshll.u32 %s10928_s3, 4  ;;  %s474_s21 = sshll.u32 %s10929_s27, 4  ;;  %s628_s26 = int_to_ptr.vmem [resolvable:$true] %s627_s26  ;;  %s475_s21 = int_to_ptr.vmem [resolvable:$true] %s474_s21 }
  0xcf   : > { %s10521_s1 = scalar_lea.hbm %s12556_s15, 16 }
  0xd0   : > { %p10522_p1 = scmp.ne.s32.totalorder %s12556_s15, %s10521_s1  ;;  %p10528_p12 = scmp.lt.u32.totalorder %s10521_s1, %s12556_s15 }
  0xd2   : > { %p10524_p3 = pnand %p10522_p1, %p11101_p8 }
  0xd4   : > { %p10525_p11 = pneg %p10524_p3 }
  0xd6   : > { %p10530_p13 = pnand %p10528_p12, %p10525_p11 }
  0xd8   : > { %10533 = shalt.err (!%p10530_p13)
}
  0xd9   : > { %s10534_s25 = scalar_lea.vmem %s628_s26, 16  ;;  %s10541_s24 = scalar_lea.vmem %s628_s26, 32 }
  0xda   : > { %p10535_p0 = scmp.ne.s32.totalorder %s628_s26, %s10534_s25  ;;  %p10542_p7 = scmp.lt.s32.totalorder %s628_s26, %s628_s26 }
  0xdb   : > { %p10543_p9 = scmp.lt.s32.totalorder %s10541_s24, %s10534_s25 }
  0xdc   : > { %p10537_p2 = pnand %p10535_p0, %p11101_p8 }
  0xdd   : > { %p10544_p5 = por %p10543_p9, %p10542_p7 }
  0xde   : > { %p10538_p4 = pneg %p10537_p2 }
  0xe0   : > { %p10545_p10 = pnand %p10544_p5, %p10538_p4 }
  0xe2   : > { %10548 = shalt.err (!%p10545_p10)
}
  0xe3   : > { %10186 = dma.hbm_to_vmem [thread:$0]  (!%p11085_p6), %s12556_s15, 16, %s628_s26, [#allocation29]  }
  0xe4   : > { %s12601_s2 = sld [smem:[#allocation52_spill]] }
  0xea   : > { %s10549_s23 = scalar_lea.hbm %s12601_s2, 16 }
  0xeb   : > { %p10550_p1 = scmp.ne.s32.totalorder %s12601_s2, %s10549_s23  ;;  %p10556_p12 = scmp.lt.u32.totalorder %s10549_s23, %s12601_s2 }
  0xed   : > { %p10552_p3 = pnand %p10550_p1, %p11101_p8 }
  0xef   : > { %p10553_p11 = pneg %p10552_p3 }
  0xf1   : > { %p10558_p13 = pnand %p10556_p12, %p10553_p11 }
  0xf3   : > { %10561 = shalt.err (!%p10558_p13)
}
  0xf4   : > { %s10562_s0 = scalar_lea.vmem %s475_s21, 16  ;;  %s10569_s26 = scalar_lea.vmem %s475_s21, 32 }
  0xf5   : > { %p10563_p0 = scmp.ne.s32.totalorder %s475_s21, %s10562_s0  ;;  %p10570_p7 = scmp.lt.s32.totalorder %s475_s21, %s475_s21 }
  0xf6   : > { %p10571_p9 = scmp.lt.s32.totalorder %s10569_s26, %s10562_s0 }
  0xf7   : > { %p10565_p2 = pnand %p10563_p0, %p11101_p8 }
  0xf8   : > { %p10572_p5 = por %p10571_p9, %p10570_p7 }
  0xf9   : > { %p10566_p4 = pneg %p10565_p2 }
  0xfb   : > { %p10573_p10 = pnand %p10572_p5, %p10566_p4 }
  0xfd   : > { %10576 = shalt.err (!%p10573_p10)
}
  0xfe   : > { %10147 = dma.hbm_to_vmem [thread:$0]  (!%p11085_p6), %s12601_s2, 16, %s475_s21, [#allocation8]  }
  0xff   : > { %s10930_s24 = smov [#allocation12]   ;;  %s10931_s18 = smov [#allocation15]  }
 0x100   : > { %s498_s19 = sshll.u32 %s10930_s24, 4  ;;  %s522_s3 = sshll.u32 %s10931_s18, 4  ;;  %s499_s19 = int_to_ptr.vmem [resolvable:$true] %s498_s19  ;;  %s523_s3 = int_to_ptr.vmem [resolvable:$true] %s522_s3 }
 0x101   : > { %s12602_s4 = sld [smem:[#allocation54_spill]] }
 0x107   : > { %s10577_s17 = scalar_lea.hbm %s12602_s4, 16 }
 0x108   : > { %p10578_p1 = scmp.ne.s32.totalorder %s12602_s4, %s10577_s17  ;;  %p10584_p12 = scmp.lt.u32.totalorder %s10577_s17, %s12602_s4 }
 0x10a   : > { %p10580_p3 = pnand %p10578_p1, %p11101_p8 }
 0x10c   : > { %p10581_p11 = pneg %p10580_p3 }
 0x10e   : > { %p10586_p13 = pnand %p10584_p12, %p10581_p11 }
 0x110   : > { %10589 = shalt.err (!%p10586_p13)
}
 0x111   : > { %s10590_s21 = scalar_lea.vmem %s499_s19, 16  ;;  %s10597_s26 = scalar_lea.vmem %s499_s19, 32 }
 0x112   : > { %p10591_p0 = scmp.ne.s32.totalorder %s499_s19, %s10590_s21  ;;  %p10598_p7 = scmp.lt.s32.totalorder %s499_s19, %s499_s19 }
 0x113   : > { %p10599_p9 = scmp.lt.s32.totalorder %s10597_s26, %s10590_s21 }
 0x114   : > { %p10593_p2 = pnand %p10591_p0, %p11101_p8 }
 0x115   : > { %p10600_p5 = por %p10599_p9, %p10598_p7 }
 0x116   : > { %p10594_p4 = pneg %p10593_p2 }
 0x118   : > { %p10601_p10 = pnand %p10600_p5, %p10594_p4 }
 0x11a   : > { %10604 = shalt.err (!%p10601_p10)
}
 0x11b   : > { %10153 = dma.hbm_to_vmem [thread:$0]  (!%p11085_p6), %s12602_s4, 16, %s499_s19, [#allocation11]  }
 0x11c   : > { %s10605_s27 = scalar_lea.hbm %s12547_s6, 16 }
 0x11d   : > { %p10606_p1 = scmp.ne.s32.totalorder %s12547_s6, %s10605_s27  ;;  %p10612_p12 = scmp.lt.u32.totalorder %s10605_s27, %s12547_s6 }
 0x11f   : > { %p10608_p3 = pnand %p10606_p1, %p11101_p8 }
 0x121   : > { %p10609_p11 = pneg %p10608_p3 }
 0x123   : > { %p10614_p13 = pnand %p10612_p12, %p10609_p11 }
 0x125   : > { %10617 = shalt.err (!%p10614_p13)
}
 0x126   : > { %s10618_s29 = scalar_lea.vmem %s523_s3, 16  ;;  %s10625_s19 = scalar_lea.vmem %s523_s3, 32 }
 0x127   : > { %p10619_p0 = scmp.ne.s32.totalorder %s523_s3, %s10618_s29  ;;  %p10626_p7 = scmp.lt.s32.totalorder %s523_s3, %s523_s3 }
 0x128   : > { %p10627_p9 = scmp.lt.s32.totalorder %s10625_s19, %s10618_s29 }
 0x129   : > { %p10621_p2 = pnand %p10619_p0, %p11101_p8 }
 0x12a   : > { %p10628_p5 = por %p10627_p9, %p10626_p7 }
 0x12b   : > { %p10622_p4 = pneg %p10621_p2 }
 0x12d   : > { %p10629_p10 = pnand %p10628_p5, %p10622_p4 }
 0x12f   : > { %10632 = shalt.err (!%p10629_p10)
}
 0x130   : > { %10159 = dma.hbm_to_vmem [thread:$0]  (!%p11085_p6), %s12547_s6, 16, %s523_s3, [#allocation14]  }
 0x131   : > { %s10932_s26 = smov [#allocation18]   ;;  %s10933_s25 = smov [#allocation21]  }
 0x132   : > { %s546_s28 = sshll.u32 %s10932_s26, 4  ;;  %s568_s24 = sshll.u32 %s10933_s25, 4  ;;  %s547_s28 = int_to_ptr.vmem [resolvable:$true] %s546_s28  ;;  %s569_s24 = int_to_ptr.vmem [resolvable:$true] %s568_s24 }
 0x133   : > { %s10633_s23 = scalar_lea.hbm %s12549_s8, 16 }
 0x134   : > { %p10634_p1 = scmp.ne.s32.totalorder %s12549_s8, %s10633_s23  ;;  %p10640_p12 = scmp.lt.u32.totalorder %s10633_s23, %s12549_s8 }
 0x136   : > { %p10636_p3 = pnand %p10634_p1, %p11101_p8 }
 0x138   : > { %p10637_p11 = pneg %p10636_p3 }
 0x13a   : > { %p10642_p13 = pnand %p10640_p12, %p10637_p11 }
 0x13c   : > { %10645 = shalt.err (!%p10642_p13)
}
 0x13d   : > { %s10646_s3 = scalar_lea.vmem %s547_s28, 16  ;;  %s10653_s19 = scalar_lea.vmem %s547_s28, 32 }
 0x13e   : > { %p10647_p0 = scmp.ne.s32.totalorder %s547_s28, %s10646_s3  ;;  %p10654_p7 = scmp.lt.s32.totalorder %s547_s28, %s547_s28 }
 0x13f   : > { %p10655_p9 = scmp.lt.s32.totalorder %s10653_s19, %s10646_s3 }
 0x140   : > { %p10649_p2 = pnand %p10647_p0, %p11101_p8 }
 0x141   : > { %p10656_p5 = por %p10655_p9, %p10654_p7 }
 0x142   : > { %p10650_p4 = pneg %p10649_p2 }
 0x144   : > { %p10657_p10 = pnand %p10656_p5, %p10650_p4 }
 0x146   : > { %10660 = shalt.err (!%p10657_p10)
}
 0x147   : > { %10165 = dma.hbm_to_vmem [thread:$0]  (!%p11085_p6), %s12549_s8, 16, %s547_s28, [#allocation17]  }
 0x148   : > { %s10661_s18 = scalar_lea.hbm %s12551_s10, 16 }
 0x149   : > { %p10662_p1 = scmp.ne.s32.totalorder %s12551_s10, %s10661_s18  ;;  %p10668_p12 = scmp.lt.u32.totalorder %s10661_s18, %s12551_s10 }
 0x14b   : > { %p10664_p3 = pnand %p10662_p1, %p11101_p8 }
 0x14d   : > { %p10665_p11 = pneg %p10664_p3 }
 0x14f   : > { %p10670_p13 = pnand %p10668_p12, %p10665_p11 }
 0x151   : > { %10673 = shalt.err (!%p10670_p13)
}
 0x152   : > { %s10674_s22 = scalar_lea.vmem %s569_s24, 16  ;;  %s10681_s28 = scalar_lea.vmem %s569_s24, 32 }
 0x153   : > { %p10675_p0 = scmp.ne.s32.totalorder %s569_s24, %s10674_s22  ;;  %p10682_p7 = scmp.lt.s32.totalorder %s569_s24, %s569_s24 }
 0x154   : > { %p10683_p9 = scmp.lt.s32.totalorder %s10681_s28, %s10674_s22 }
 0x155   : > { %p10677_p2 = pnand %p10675_p0, %p11101_p8 }
 0x156   : > { %p10684_p5 = por %p10683_p9, %p10682_p7 }
 0x157   : > { %p10678_p4 = pneg %p10677_p2 }
 0x159   : > { %p10685_p10 = pnand %p10684_p5, %p10678_p4 }
 0x15b   : > { %10688 = shalt.err (!%p10685_p10)
}
 0x15c   : > { %10171 = dma.hbm_to_vmem [thread:$0]  (!%p11085_p6), %s12551_s10, 16, %s569_s24, [#allocation20]  }
 0x15d   : > { %s10934_s19 = smov [#allocation24]   ;;  %s10935_s21 = smov [#allocation27]  }
 0x15e   : > { %s592_s0 = sshll.u32 %s10934_s19, 4  ;;  %s616_s26 = sshll.u32 %s10935_s21, 4  ;;  %s593_s0 = int_to_ptr.vmem [resolvable:$true] %s592_s0  ;;  %s617_s26 = int_to_ptr.vmem [resolvable:$true] %s616_s26 }
 0x15f   : > { %s10689_s27 = scalar_lea.hbm %s12553_s12, 16 }
 0x160   : > { %p10690_p1 = scmp.ne.s32.totalorder %s12553_s12, %s10689_s27  ;;  %p10696_p12 = scmp.lt.u32.totalorder %s10689_s27, %s12553_s12 }
 0x162   : > { %p10692_p3 = pnand %p10690_p1, %p11101_p8 }
 0x164   : > { %p10693_p11 = pneg %p10692_p3 }
 0x166   : > { %p10698_p13 = pnand %p10696_p12, %p10693_p11 }
 0x168   : > { %10701 = shalt.err (!%p10698_p13)
}
 0x169   : > { %s10702_s24 = scalar_lea.vmem %s593_s0, 16  ;;  %s10709_s28 = scalar_lea.vmem %s593_s0, 32 }
 0x16a   : > { %p10703_p0 = scmp.ne.s32.totalorder %s593_s0, %s10702_s24  ;;  %p10710_p7 = scmp.lt.s32.totalorder %s593_s0, %s593_s0 }
 0x16b   : > { %p10711_p9 = scmp.lt.s32.totalorder %s10709_s28, %s10702_s24 }
 0x16c   : > { %p10705_p2 = pnand %p10703_p0, %p11101_p8 }
 0x16d   : > { %p10712_p5 = por %p10711_p9, %p10710_p7 }
 0x16e   : > { %p10706_p4 = pneg %p10705_p2 }
 0x170   : > { %p10713_p10 = pnand %p10712_p5, %p10706_p4 }
 0x172   : > { %10716 = shalt.err (!%p10713_p10)
}
 0x173   : > { %10177 = dma.hbm_to_vmem [thread:$0]  (!%p11085_p6), %s12553_s12, 16, %s593_s0, [#allocation23]  }
 0x174   : > { %s10717_s25 = scalar_lea.hbm %s12555_s14, 16 }
 0x175   : > { %p10718_p1 = scmp.ne.s32.totalorder %s12555_s14, %s10717_s25  ;;  %p10724_p12 = scmp.lt.u32.totalorder %s10717_s25, %s12555_s14 }
 0x177   : > { %p10720_p3 = pnand %p10718_p1, %p11101_p8 }
 0x179   : > { %p10721_p11 = pneg %p10720_p3 }
 0x17b   : > { %p10726_p13 = pnand %p10724_p12, %p10721_p11 }
 0x17d   : > { %10729 = shalt.err (!%p10726_p13)
}
 0x17e   : > { %s10730_s1 = scalar_lea.vmem %s617_s26, 16  ;;  %s10737_s0 = scalar_lea.vmem %s617_s26, 32 }
 0x17f   : > { %p10731_p0 = scmp.ne.s32.totalorder %s617_s26, %s10730_s1  ;;  %p10738_p7 = scmp.lt.s32.totalorder %s617_s26, %s617_s26 }
 0x180   : > { %p10739_p9 = scmp.lt.s32.totalorder %s10737_s0, %s10730_s1 }
 0x181   : > { %p10733_p2 = pnand %p10731_p0, %p11101_p8 }
 0x182   : > { %p10740_p5 = por %p10739_p9, %p10738_p7 }
 0x183   : > { %p10734_p4 = pneg %p10733_p2 }
 0x185   : > { %p10741_p10 = pnand %p10740_p5, %p10734_p4 }
 0x187   : > { %10744 = shalt.err (!%p10741_p10)
}
 0x188   : > { %10183 = dma.hbm_to_vmem [thread:$0]  (!%p11085_p6), %s12555_s14, 16, %s617_s26, [#allocation26]  }
 0x189   : > { %s10936_s28 = smov [#allocation30]   ;;  %s12603_s21 = sld [smem:[#allocation56_spill]] }
 0x18a   : > { %s638_s29 = sshll.u32 %s10936_s28, 4  ;;  %s639_s29 = int_to_ptr.vmem [resolvable:$true] %s638_s29 }
 0x18f   : > { %s10745_s25 = scalar_lea.hbm %s12603_s21, 16 }
 0x190   : > { %p10746_p1 = scmp.ne.s32.totalorder %s12603_s21, %s10745_s25  ;;  %p10752_p12 = scmp.lt.u32.totalorder %s10745_s25, %s12603_s21 }
 0x192   : > { %p10748_p3 = pnand %p10746_p1, %p11101_p8 }
 0x194   : > { %p10749_p11 = pneg %p10748_p3 }
 0x196   : > { %p10754_p13 = pnand %p10752_p12, %p10749_p11 }
 0x198   : > { %10757 = shalt.err (!%p10754_p13)
}
 0x199   : > { %s10758_s26 = scalar_lea.vmem %s639_s29, 16  ;;  %s10765_s1 = scalar_lea.vmem %s639_s29, 32 }
 0x19a   : > { %p10759_p0 = scmp.ne.s32.totalorder %s639_s29, %s10758_s26  ;;  %p10766_p7 = scmp.lt.s32.totalorder %s639_s29, %s639_s29 }
 0x19b   : > { %p10767_p9 = scmp.lt.s32.totalorder %s10765_s1, %s10758_s26 }
 0x19c   : > { %p10761_p2 = pnand %p10759_p0, %p11101_p8 }
 0x19d   : > { %p10768_p5 = por %p10767_p9, %p10766_p7 }
 0x19e   : > { %p10762_p4 = pneg %p10761_p2 }
 0x1a0   : > { %p10769_p10 = pnand %p10768_p5, %p10762_p4 }
 0x1a2   : > { %10772 = shalt.err (!%p10769_p10)
}
 0x1a3   : > { %s12604_s24 = sld [smem:[#allocation47_spill]]  ;;  %s12605_s28 = sld [smem:[#allocation46_spill]] }
 0x1a4   : > { %s12606_s3 = sld [smem:[#allocation44_spill]]  ;;  %s12607_s19 = sld [smem:[#allocation43_spill]] }
 0x1a5   : > { %s12608_s30 = sld [smem:[#allocation42_spill]]  ;;  %s12609_s25 = sld [smem:[#allocation48_spill]] }
 0x1a6   : > { %10189 = dma.hbm_to_vmem [thread:$0]  (!%p11085_p6), %s12603_s21, 16, %s639_s29, [#allocation29]  }
 0x1a7   : > { %s12616_s2 = sld [smem:[#allocation50_spill]] }
 0x1a9   : > { %s8120_s18 = sadd.s32 4294967294, %s12604_s24   ;;  %s53_s27 = sadd.s32 1, %s12605_s28 }
 0x1aa   : > { %p55_p8 = scmp.ge.s32.totalorder %s53_s27, 2  ;;  %s60_s20 = sadd.s32 1, %s12606_s3 }
 0x1ab   : > { %p67_p1 = scmp.ne.s32.totalorder %s12606_s3, %s12607_s19  ;;  %p68_p3 = scmp.eq.s32.totalorder %s12604_s24, 0 }
 0x1ac   : > { %s12639_s27 = smov (%p55_p8, %s53_s27), 0  ;;  %p73_p12 = scmp.ne.s32.totalorder %s12607_s19, %s12608_s30 }
 0x1ad   : > { %p11424_p11 = por %p68_p3, %p67_p1  ;;  %s57_s29 = ssub.s32 %s12605_s28, %s12639_s27 }
 0x1ae   : > { %s12611_s17 = sadd.s32 4294967295, %s12604_s24   ;;  %p58_p13 = scmp.eq.s32.totalorder %s57_s29, 0 }
 0x1af   : > { %p435_p6 = scmp.eq.s32.totalorder %s12611_s17, 1  ;;  %p12612_p0 = scmp.ne.s32.totalorder %s12609_s25, 0 }
 0x1b0   : > { %p441_p7 = scmp.eq.s32.totalorder %s8120_s18, 1  ;;  %p10214_p5 = scmp.lt.s32.totalorder %s12604_s24, 2 }
 0x1b1   : > { %p11436_p2 = por %p12612_p0, %p73_p12  ;;  %p11440_p4 = por %p435_p6, %p67_p1 }
 0x1b2   : > { %s11445_s0 = scalar_select %p58_p13, %s12606_s3, %s60_s20  }
 0x1b3   : > { %s12614_s1 = scalar_select %p11440_p4, 1, 0 }
 0x1b4   : > { %p11447_p9 = por %p441_p7, %p73_p12  ;;  %s649_s19 = sand.u32 1, %s12606_s3  }
 0x1b5   : > { %s8140_s30 = sshll.u32 %s12605_s28, 7  ;;  %s8139_s29 = sshll.u32 %s649_s19, 3 }
 0x1b6   : > { %s12615_s22 = scalar_select %p11447_p9, 1, 0 }
 0x1b7   : > { %s11457_s4 = scalar_lea.hbm %s12616_s2, %s8140_s30  ;;  %s653_s18 = scalar_lea.vmem [#allocation4], %s8139_s29 }
 0x1b8   : > { %s660_s20 = sshll.u32 %s653_s18, 4  ;;  %p11461_p10 = pnand %p10214_p5, %p11424_p11  ;;  %s11465_s20 = int_to_ptr.vmem [resolvable:$true] %s660_s20 }
 0x1b9   : > { %s650_s24 = scalar_lea.sflag [#allocation5], %s649_s19  ;;  %s10773_s28 = scalar_lea.hbm %s11457_s4, 128 }
 0x1ba   : > { %p10774_p8 = scmp.ne.s32.totalorder %s11457_s4, %s10773_s28  ;;  %p10775_p1 = pneg %p11461_p10 }
 0x1bb   : > { %s10778_s23 = scalar_lea.hbm %s12616_s2, 256  ;;  %p10779_p11 = scmp.lt.u32.totalorder %s11457_s4, %s12616_s2 }
 0x1bc   : > { %p10776_p3 = pnand %p10775_p1, %p10774_p8  ;;  %p10780_p6 = scmp.lt.u32.totalorder %s10778_s23, %s10773_s28 }
 0x1bd   : > { %p10782_p0 = scmp.lt.u32.totalorder %s10773_s28, %s11457_s4 }
 0x1be   : > { %p10777_p12 = pneg %p10776_p3  ;;  %p10781_p13 = por %p10780_p6, %p10779_p11 }
 0x1c0   : > { %p10783_p7 = por %p10782_p0, %p10781_p13 }
 0x1c2   : > { %p10784_p5 = pnand %p10783_p7, %p10777_p12 }
 0x1c4   : > { %10787 = shalt.err (!%p10784_p5)
}
 0x1c5   : > { %s10788_s19 = scalar_lea.vmem %s11465_s20, 128  ;;  %s10937_s17 = smov [#allocation4]  }
 0x1c6   : > { %p10789_p8 = scmp.ne.s32.totalorder %s11465_s20, %s10788_s19  ;;  %s10793_s18 = sshll.u32 %s10937_s17, 4  ;;  %s10794_s18 = int_to_ptr.vmem [resolvable:$false] %s10793_s18 }
 0x1c7   : > { %s10795_s3 = scalar_lea.vmem %s10794_s18, 256  ;;  %p10796_p4 = scmp.lt.s32.totalorder %s11465_s20, %s10794_s18 }
 0x1c8   : > { %p10791_p3 = pnand %p10789_p8, %p10775_p1  ;;  %p10797_p11 = scmp.lt.s32.totalorder %s10795_s3, %s10788_s19 }
 0x1ca   : > { %p10792_p9 = pneg %p10791_p3  ;;  %p10798_p6 = por %p10797_p11, %p10796_p4 }
 0x1cc   : > { %p10799_p13 = pnand %p10798_p6, %p10792_p9 }
 0x1ce   : > { %10802 = shalt.err (!%p10799_p13)
}
 0x1cf   : > { %10193 = dma.hbm_to_vmem [thread:$0]  (!%p11461_p10), %s11457_s4, 128, %s11465_s20, %s650_s24  }
 0x1d0   : > { %s12618_s28 = sld [smem:[#allocation49_spill]] }
 0x1d6   : > { %p12619_p12 = scmp.ne.s32.totalorder %s12618_s28, 0 }
 0x1d7   : > { %s12620_s30 = sld [smem:[#allocation43_spill]] (!%p12619_p12) }
 0x1d8   : > { %669 = sbr.rel (%p12619_p12) target bundleno = 3514 (0xdba), region = 88 }
 0x1dd   : > { %s11495_s23 = sand.u32 (!%p12619_p12), 1, %s12620_s30  }
 0x1de   : > { %s8142_s29 = sshll.u32 (!%p12619_p12), %s11495_s23, 3  ;;  %s672_s25 = scalar_lea.sflag (!%p12619_p12), [#allocation5], %s11495_s23 }
 0x1df   : > { %s11501_s19 = scalar_lea.vmem [#allocation4], %s8142_s29 }
 0x1e0   : > { %10856 = dma.done.wait (%p11436_p2), %s672_s25, 128  }
 0x1e1   : > { %10858 = vsyncadd (%p11436_p2), %s672_s25, 4294967168  ;;  %s12621_s4 = sld [smem:[#allocation48_spill]] }
 0x1e7   : > { %p12622_p4 = scmp.ne.s32.totalorder %s12621_s4, 0 }
 0x1e9   : > { %10860 = dma.done.wait (%p12622_p4), [#allocation8], 528  }
 0x1ea   : > { %10862 = vsyncadd (%p12622_p4), [#allocation8], 4294966768 }
 0x1eb   : > { %10864 = dma.done.wait (%p12622_p4), [#allocation11], 528  }
 0x1ec   : > { %10866 = vsyncadd (%p12622_p4), [#allocation11], 4294966768 }
 0x1ed   : > { %10868 = dma.done.wait (%p12622_p4), [#allocation14], 528  }
 0x1ee   : > { %10870 = vsyncadd (%p12622_p4), [#allocation14], 4294966768 }
 0x1ef   : > { %10872 = dma.done.wait (%p12622_p4), [#allocation17], 2064  }
 0x1f0   : > { %10874 = vsyncadd (%p12622_p4), [#allocation17], 4294965232 }
 0x1f1   : > { %10876 = dma.done.wait (%p12622_p4), [#allocation20], 32  }
 0x1f2   : > { %10878 = vsyncadd (%p12622_p4), [#allocation20], 4294967264 }
 0x1f3   : > { %10880 = dma.done.wait (%p12622_p4), [#allocation23], 528  }
 0x1f4   : > { %10882 = vsyncadd (%p12622_p4), [#allocation23], 4294966768 }
 0x1f5   : > { %10884 = dma.done.wait (%p12622_p4), [#allocation26], 2064  }
 0x1f6   : > { %10886 = vsyncadd (%p12622_p4), [#allocation26], 4294965232 }
 0x1f7   : > { %10888 = dma.done.wait (%p12622_p4), [#allocation29], 32  }
 0x1f8   : > { %10890 = vsyncadd (%p12622_p4), [#allocation29], 4294967264  ;;  %v10938_v0 = vmov 0.0|0.0   ;;  %vm10939_vm0 = vmmov 0   ;;  %v10940_v1 = vmov 0.0   ;;  %vm806_vm1 = vcmask 261120  }
 0x1f9   : > { %9518 = vmatprep.subr.bf16.mxu0 %v10938_v0  ;;  %8602 = vmatprep.mubr.msk.f32.mxu0 %vm10939_vm0, %v10940_v1  ;;  %v795_v2 = vld [vmem:[#allocation10] sm:$0xff]  ;;  %v796_v3 = vld [vmem:[#allocation10 + $0x8] sm:$0xff]  ;;  %v797_v4 = vld [vmem:[#allocation10 + $0x10] sm:$0xff]  ;;  %s10941_s5 = smov 64   ;;  %s10942_s26 = smov 96   ;;  %vm2751_vm2 = vcmask 64512  }
 0x1fa   : > { %9560 = vmatprep.subr.bf16.mxu1 %v10938_v0  ;;  %8679 = vmatprep.mubr.msk.f32.mxu1 %vm10939_vm0, %v10940_v1  ;;  %v811_v5 = vand.u32 4294901760, %v795_v2  ;;  %v814_v6 = vand.u32 4294901760, %v796_v3  ;;  %v798_v7 = vld [vmem:[#allocation10 + $0x18] sm:$0xff]  ;;  %v817_v8 = vand.u32 4294901760, %v797_v4  ;;  %v11546_v10 = vld [vmem:[#allocation13] sm:$0xff]  ;;  %v11549_v13 = vld [vmem:[#allocation13 + $0x8] sm:$0xff] }
 0x1fb   : > { %v794_v9 = vld [vmem:[%s11501_s19] sm:$0xff]  ;;  %v820_v11 = vand.u32 4294901760, %v798_v7  ;;  %v1308_v14 = vand.u32 4294901760, %v11546_v10  ;;  %v1311_v21 = vand.u32 4294901760, %v11549_v13  ;;  %s10943_s20 = smov 32   ;;  %vm5977_vm3 = vcmask 523264  }
 0x1fc   : > { %v808_v12 = vsel %vm806_vm1, %v794_v9, 0  ;;  %v11552_v15 = vpack.c.bf16 %v814_v6, %v811_v5  ;;  %v11554_v16 = vsub.f32 %v795_v2, %v811_v5  ;;  %v11556_v17 = vsub.f32 %v796_v3, %v814_v6  ;;  %v11586_v30 = vld [vmem:[#allocation13 + $0x10] sm:$0xff]  ;;  %v11605_v38 = vld [vmem:[#allocation13 + $0x18] sm:$0xff]  ;;  %s12623_s24 = sld [smem:[#allocation45_spill]]  ;;  %s789_s18 = scalar_lea.vmem [#allocation31], %s8142_s29 }
 0x1fd   : > { %v11558_v18 = vsub.f32 %v797_v4, %v817_v8  ;;  %v11560_v19 = vsub.f32 %v798_v7, %v820_v11  ;;  %v11562_v20 = vand.u32 4294901760, %v808_v12  ;;  %v11566_v22 = vpack.c.bf16 %v820_v11, %v817_v8  ;;  %v1796_v11 = vld [vmem:[#allocation7] sm:$0xff]  ;;  %s7886_s3 = sshll.u32 %s789_s18, 4  ;;  %s12624_s25 = sld [smem:[#allocation57_spill]]  ;;  %s12493_s3 = int_to_ptr.vmem [resolvable:$true] %s7886_s3 }
 0x1fe   : > { %9520 = vmatpush3.bf16.msra.mxu0 %v11552_v15  ;;  %v892_v23 = vand.u32 4294901760, %v11554_v16  ;;  %v899_v24 = vand.u32 4294901760, %v11556_v17  ;;  %v11579_v28 = vsub.f32 %v11546_v10, %v1308_v14  ;;  %v11584_v29 = vsub.f32 %v11549_v13, %v1311_v21  ;;  %p12626_p9 = scmp.ne.s32.totalorder %s12614_s1, 0  ;;  %s10944_s29 = smov [#allocation31]  }
 0x1ff   : > { %v906_v25 = vand.u32 4294901760, %v11558_v18  ;;  %9521 = vmatprep.subr.bf16.mxu0 %v10938_v0  ;;  %v11573_v26 = vsub.f32 %v808_v12, %v11562_v20  ;;  %v913_v27 = vand.u32 4294901760, %v11560_v19  ;;  %v1314_v41 = vand.u32 4294901760, %v11586_v30  ;;  %v1797_v12 = vld [vmem:[#allocation7 + $0x8] sm:$0xff] }
 0x200   : > { %v893_v31 = vsub.f32 %v11554_v16, %v892_v23  ;;  %v900_v32 = vsub.f32 %v11556_v17, %v899_v24  ;;  %v1389_v36 = vand.u32 4294901760, %v11579_v28  ;;  %v1396_v37 = vand.u32 4294901760, %v11584_v29 }
 0x201   : > { %v907_v33 = vsub.f32 %v11558_v18, %v906_v25  ;;  %v11598_v34 = vand.u32 4294901760, %v11573_v26  ;;  %v914_v35 = vsub.f32 %v11560_v19, %v913_v27  ;;  %v1317_v48 = vand.u32 4294901760, %v11605_v38 }
 0x202   : > { %9523 = vmatpush3.bf16.msra.mxu0 %v11566_v22  ;;  %v894_v39 = vand.u32 4294901760, %v893_v31  ;;  %v901_v40 = vand.u32 4294901760, %v900_v32  ;;  %v1390_v44 = vsub.f32 %v11579_v28, %v1389_v36  ;;  %v1397_v45 = vsub.f32 %v11584_v29, %v1396_v37  ;;  %s8171_s17 = sshll.u32 %s12623_s24, 7 }
 0x203   : > { %v882_v42 = vsub.f32 %v11573_v26, %v11598_v34  ;;  %9524 = vmatprep.subr.bf16.mxu0 %v10938_v0  ;;  %v908_v43 = vand.u32 4294901760, %v907_v33  ;;  %v915_v47 = vand.u32 4294901760, %v914_v35  ;;  %v11620_v49 = vsub.f32 %v11586_v30, %v1314_v41  ;;  %s12491_s4 = scalar_lea.hbm %s12624_s25, %s8171_s17 }
 0x204   : > { %v9525_v46 = vpack.c.bf16 %v901_v40, %v894_v39  ;;  %v1391_v51 = vand.u32 4294901760, %v1390_v44  ;;  %v1398_v52 = vand.u32 4294901760, %v1397_v45  ;;  %v1409_v54 = vsub.f32 %v11605_v38, %v1317_v48 }
 0x205   : > { %v11622_v50 = vand.u32 4294901760, %v882_v42  ;;  %v1403_v53 = vand.u32 4294901760, %v11620_v49  ;;  %v9528_v56 = vpack.c.bf16 %v915_v47, %v908_v43  ;;  %v9531_v61 = vpack.c.bf16 %v11556_v17, %v11554_v16  ;;  %v1798_v16 = vld [vmem:[#allocation7 + $0x10] sm:$0xff]  ;;  %v1799_v17 = vld [vmem:[#allocation7 + $0x18] sm:$0xff] }
 0x206   : > { %v9561_v55 = vpack.c.bf16 %v1398_v52, %v1391_v51  ;;  %v1410_v58 = vand.u32 4294901760, %v1409_v54  ;;  %v9534_v2 = vpack.c.bf16 %v11560_v19, %v11558_v18  ;;  %v9567_v3 = vpack.c.bf16 %v11584_v29, %v11579_v28  ;;  %v8161_v51 = vld [vmem:[#allocation15] ss:$0 sm:$0xff] }
 0x207   : > { %8603 = vmatmul.mubr.f32.vlgmr.msra.gmra.mrb[0].mxu0 %v11622_v50  ;;  %v1404_v57 = vsub.f32 %v11620_v49, %v1403_v53  ;;  %v9570_v4 = vpack.c.bf16 %v1409_v54, %v11620_v49  ;;  %v9555_v5 = vpack.c.bf16 %v1311_v21, %v1308_v14  ;;  %v9543_v6 = vpack.c.bf16 %v899_v24, %v892_v23 }
 0x208   : > { %9526 = vmatpush3.bf16.msra.mxu0 %v9525_v46  ;;  %8613 = vmatprep.mubr.msk.f32.mxu0 %vm10939_vm0, %v10940_v1  ;;  %v1411_v60 = vsub.f32 %v1409_v54, %v1410_v58  ;;  %v9558_v7 = vpack.c.bf16 %v1317_v48, %v1314_v41  ;;  %v9546_v8 = vpack.c.bf16 %v913_v27, %v906_v25  ;;  %v1812_v13 = vand.u32 4294901760, %v1796_v11 }
 0x209   : > { %9527 = vmatprep.subr.bf16.mxu0 %v10938_v0  ;;  %9562 = vmatpush3.bf16.msra.mxu1 %v9561_v55  ;;  %v1405_v59 = vand.u32 4294901760, %v1404_v57  ;;  %v9579_v9 = vpack.c.bf16 %v1396_v37, %v1389_v36  ;;  %v9582_v10 = vpack.c.bf16 %v1410_v58, %v1403_v53  ;;  %v1815_v14 = vand.u32 4294901760, %v1797_v12 }
 0x20a   : > { %9563 = vmatprep.subr.bf16.mxu1 %v10938_v0  ;;  %v1412_v62 = vand.u32 4294901760, %v1411_v60  ;;  %v1892_v18 = vsub.f32 %v1796_v11, %v1812_v13  ;;  %v1818_v21 = vand.u32 4294901760, %v1798_v16  ;;  %vm5979_vm4 = vcmask 785408  }
 0x20b   : > { %v1899_v19 = vsub.f32 %v1797_v12, %v1815_v14  ;;  %v9591_v27 = vpack.c.bf16 %v1815_v14, %v1812_v13 }
 0x20c   : > { %9529 = vmatpush3.bf16.msra.mxu0 %v9528_v56  ;;  %v9564_v63 = vpack.c.bf16 %v1412_v62, %v1405_v59  ;;  %v1893_v24 = vand.u32 4294901760, %v1892_v18  ;;  %v8162_v56 = vld [vmem:[#allocation9] ss:$0 sm:$0xff] }
 0x20d   : > { %9530 = vmatprep.subr.bf16.mxu0 %v10938_v0  ;;  %v1900_v25 = vand.u32 4294901760, %v1899_v19  ;;  %v9603_v42 = vpack.c.bf16 %v1899_v19, %v1892_v18 }
 0x20e   : > { %9565 = vmatpush3.bf16.msra.mxu1 %v9564_v63  ;;  %v1894_v28 = vsub.f32 %v1892_v18, %v1893_v24 }
 0x20f   : > { %8614 = vmatmul.mubr.f32.vlgmr.msra.gmra.mrb[0].mxu0 %v11562_v20  ;;  %9566 = vmatprep.subr.bf16.mxu1 %v10938_v0  ;;  %v1901_v29 = vsub.f32 %v1899_v19, %v1900_v25  ;;  %v9615_v44 = vpack.c.bf16 %v1900_v25, %v1893_v24 }
 0x210   : > { %9532 = vmatpush3.bf16.msra.mxu0 %v9531_v61  ;;  %8624 = vmatprep.mubr.msk.f32.mxu0 %vm10939_vm0, %v10940_v1  ;;  %v1895_v33 = vand.u32 4294901760, %v1894_v28 }
 0x211   : > { %9533 = vmatprep.subr.bf16.mxu0 %v10938_v0  ;;  %8680 = vmatmul.mubr.f32.vlgmr.msra.gmra.mrb[0].mxu1 %v11562_v20  ;;  %v1902_v35 = vand.u32 4294901760, %v1901_v29 }
 0x212   : > { %9568 = vmatpush3.bf16.msra.mxu1 %v9567_v3  ;;  %8690 = vmatprep.mubr.msk.f32.mxu1 %vm10939_vm0, %v10940_v1 }
 0x213   : > { %9569 = vmatprep.subr.bf16.mxu1 %v10938_v0  ;;  %v9597_v38 = vpack.c.bf16 %v1902_v35, %v1895_v33 }
 0x214   : > { %9535 = vmatpush3.bf16.msra.mxu0 %v9534_v2 }
 0x215   : > { %9536 = vmatprep.subr.bf16.mxu0 %v10938_v0 }
 0x216   : > { %9571 = vmatpush3.bf16.msra.mxu1 %v9570_v4 }
 0x217   : > { %8625 = vmatmul.mubr.f32.vlgmr.msra.gmra.mrb[0].mxu0 %v11573_v26  ;;  %9572 = vmatprep.subr.bf16.mxu1 %v10938_v0 }
 0x218   : > { %9538 = vmatpush3.bf16.msra.mxu0 %v11552_v15  ;;  %8635 = vmatprep.mubr.msk.f32.mxu0 %vm10939_vm0, %v10940_v1 }
 0x219   : > { %9539 = vmatprep.subr.bf16.mxu0 %v10938_v0  ;;  %8691 = vmatmul.mubr.f32.vlgmr.msra.gmra.mrb[0].mxu1 %v11573_v26 }
 0x21a   : > { %9574 = vmatpush3.bf16.msra.mxu1 %v9555_v5  ;;  %8701 = vmatprep.mubr.msk.f32.mxu1 %vm10939_vm0, %v10940_v1 }
 0x21b   : > { %9575 = vmatprep.subr.bf16.mxu1 %v10938_v0 }
 0x21c   : > { %9541 = vmatpush3.bf16.msra.mxu0 %v11566_v22 }
 0x21d   : > { %9542 = vmatprep.subr.bf16.mxu0 %v10938_v0 }
 0x21e   : > { %9577 = vmatpush3.bf16.msra.mxu1 %v9558_v7 }
 0x21f   : > { %8636 = vmatmul.mubr.f32.vlgmr.msra.gmra.mrb[0].mxu0 %v11598_v34  ;;  %9578 = vmatprep.subr.bf16.mxu1 %v10938_v0 }
 0x220   : > { %9544 = vmatpush3.bf16.msra.mxu0 %v9543_v6  ;;  %8646 = vmatprep.mubr.msk.f32.mxu0 %vm10939_vm0, %v10940_v1 }
 0x221   : > { %9545 = vmatprep.subr.bf16.mxu0 %v10938_v0  ;;  %8702 = vmatmul.mubr.f32.vlgmr.msra.gmra.mrb[0].mxu1 %v11598_v34 }
 0x222   : > { %9580 = vmatpush3.bf16.msra.mxu1 %v9579_v9  ;;  %8712 = vmatprep.mubr.msk.f32.mxu1 %vm10939_vm0, %v10940_v1 }
 0x223   : > { %9581 = vmatprep.subr.bf16.mxu1 %v10938_v0 }
 0x224   : > { %9547 = vmatpush3.bf16.msra.mxu0 %v9546_v8 }
 0x225   : > { %9548 = vmatprep.subr.bf16.mxu0 %v10938_v0 }
 0x226   : > { %9583 = vmatpush3.bf16.msra.mxu1 %v9582_v10 }
 0x227   : > { %8647 = vmatmul.mubr.f32.vlgmr.msra.gmra.mrb[0].mxu0 %v11562_v20  ;;  %9584 = vmatprep.subr.bf16.mxu1 %v10938_v0 }
 0x228   : > { %9550 = vmatpush3.bf16.msra.mxu0 %v11552_v15  ;;  %8657 = vmatprep.mubr.msk.f32.mxu0 %vm10939_vm0, %v10940_v1  ;;  %v1821_v15 = vand.u32 4294901760, %v1799_v17 }
 0x229   : > { %9551 = vmatprep.subr.bf16.mxu0 %v10938_v0  ;;  %8713 = vmatmul.mubr.f32.vlgmr.msra.gmra.mrb[0].mxu1 %v11562_v20 }
 0x22a   : > { %9586 = vmatpush3.bf16.msra.mxu1 %v9555_v5  ;;  %8723 = vmatprep.mubr.msk.f32.mxu1 %vm10939_vm0, %v10940_v1  ;;  %v1913_v23 = vsub.f32 %v1799_v17, %v1821_v15  ;;  %v9594_v32 = vpack.c.bf16 %v1821_v15, %v1818_v21 }
 0x22b   : > { %9587 = vmatprep.subr.bf16.mxu1 %v10938_v0 }
 0x22c   : > { %9553 = vmatpush3.bf16.msra.mxu0 %v11566_v22  ;;  %v1906_v22 = vsub.f32 %v1798_v16, %v1818_v21  ;;  %v1914_v31 = vand.u32 4294901760, %v1913_v23 }
 0x22d   : > { %9554 = vmatprep.subr.bf16.mxu0 %v10938_v0 }
 0x22e   : > { %9589 = vmatpush3.bf16.msra.mxu1 %v9558_v7  ;;  %v1907_v30 = vand.u32 4294901760, %v1906_v22  ;;  %v1915_v37 = vsub.f32 %v1913_v23, %v1914_v31  ;;  %v9606_v43 = vpack.c.bf16 %v1913_v23, %v1906_v22 }
 0x22f   : > { %8658 = vmatmul.mubr.f32.vlgmr.msra.gmra.mrb[0].mxu0 %v11562_v20  ;;  %8792 = vmatprep.subr.mxu1 %v10940_v1 }
 0x230   : > { %9556 = vmatpush3.bf16.msra.mxu0 %v9555_v5  ;;  %8668 = vmatprep.mubr.msk.f32.mxu0 %vm10939_vm0, %v10940_v1  ;;  %v1908_v36 = vsub.f32 %v1906_v22, %v1907_v30  ;;  %v1916_v40 = vand.u32 4294901760, %v1915_v37  ;;  %v9618_v45 = vpack.c.bf16 %v1914_v31, %v1907_v30 }
 0x231   : > { %9557 = vmatprep.subr.bf16.mxu0 %v10938_v0  ;;  %8724 = vmatmul.mubr.f32.vlgmr.msra.gmra.mrb[0].mxu1 %v11562_v20 }
 0x232   : > { %8794 = vmatprep.mubr.msk.f32.mxu1 %vm10939_vm0, %v10940_v1  ;;  %v1909_v39 = vand.u32 4294901760, %v1908_v36 }
 0x234   : > { %9559 = vmatpush3.bf16.msra.mxu0 %v9558_v7  ;;  %v9600_v41 = vpack.c.bf16 %v1916_v40, %v1909_v39 }
 0x235   : > { %9590 = vmatprep.subr.bf16.mxu0 %v10938_v0 }
 0x237   : > { %8669 = vmatmul.mubr.f32.vlgmr.msra.gmra.mrb[2].mxu0 %v11622_v50 }
 0x238   : > { %9592 = vmatpush3.bf16.msra.mxu0 %v9591_v27  ;;  %8734 = vmatprep.mubr.msk.f32.mxu0 %vm10939_vm0, %v10940_v1 }
 0x239   : > { %9593 = vmatprep.subr.bf16.mxu0 %v10938_v0 }
 0x23c   : > { %9595 = vmatpush3.bf16.msra.mxu0 %v9594_v32 }
 0x23d   : > { %9596 = vmatprep.subr.bf16.mxu0 %v10938_v0 }
 0x23f   : > { %8735 = vmatmul.mubr.f32.vlgmr.msra.gmra.mrb[4].mxu0 %v11622_v50 }
 0x240   : > { %9598 = vmatpush3.bf16.msra.mxu0 %v9597_v38  ;;  %8745 = vmatprep.mubr.msk.f32.mxu0 %vm10939_vm0, %v10940_v1 }
 0x241   : > { %9599 = vmatprep.subr.bf16.mxu0 %v10938_v0 }
 0x244   : > { %9601 = vmatpush3.bf16.msra.mxu0 %v9600_v41 }
 0x245   : > { %9602 = vmatprep.subr.bf16.mxu0 %v10938_v0 }
 0x247   : > { %8746 = vmatmul.mubr.f32.vlgmr.msra.gmra.mrb[4].mxu0 %v11562_v20 }
 0x248   : > { %9604 = vmatpush3.bf16.msra.mxu0 %v9603_v42  ;;  %8756 = vmatprep.mubr.msk.f32.mxu0 %vm10939_vm0, %v10940_v1 }
 0x249   : > { %9605 = vmatprep.subr.bf16.mxu0 %v10938_v0 }
 0x24c   : > { %9607 = vmatpush3.bf16.msra.mxu0 %v9606_v43 }
 0x24d   : > { %9608 = vmatprep.subr.bf16.mxu0 %v10938_v0 }
 0x24f   : > { %8757 = vmatmul.mubr.f32.vlgmr.msra.gmra.mrb[4].mxu0 %v11573_v26  ;;  %v8160_v26 = vld [vmem:[#allocation12] ss:$0 sm:$0xff] }
 0x250   : > { %9610 = vmatpush3.bf16.msra.mxu0 %v9591_v27  ;;  %8767 = vmatprep.mubr.msk.f32.mxu0 %vm10939_vm0, %v10940_v1 }
 0x251   : > { %9611 = vmatprep.subr.bf16.mxu0 %v10938_v0 }
 0x254   : > { %9613 = vmatpush3.bf16.msra.mxu0 %v9594_v32 }
 0x255   : > { %9614 = vmatprep.subr.bf16.mxu0 %v10938_v0 }
 0x257   : > { %8768 = vmatmul.mubr.f32.vlgmr.msra.gmra.mrb[4].mxu0 %v11598_v34 }
 0x258   : > { %9616 = vmatpush3.bf16.msra.mxu0 %v9615_v44  ;;  %8778 = vmatprep.mubr.msk.f32.mxu0 %vm10939_vm0, %v10940_v1 }
 0x259   : > { %9617 = vmatprep.subr.bf16.mxu0 %v10938_v0 }
 0x25c   : > { %9619 = vmatpush3.bf16.msra.mxu0 %v9618_v45 }
 0x25d   : > { %9620 = vmatprep.subr.bf16.mxu0 %v10938_v0 }
 0x25f   : > { %8779 = vmatmul.mubr.f32.vlgmr.msra.gmra.mrb[4].mxu0 %v11562_v20 }
 0x260   : > { %9622 = vmatpush3.bf16.msra.mxu0 %v9591_v27  ;;  %8789 = vmatprep.mubr.msk.f32.mxu0 %vm10939_vm0, %v10940_v1 }
 0x261   : > { %9623 = vmatprep.subr.bf16.mxu0 %v10938_v0 }
 0x264   : > { %9625 = vmatpush3.bf16.msra.mxu0 %v9594_v32 }
 0x265   : > { %8852 = vmatprep.subr.mxu0 %v10940_v1 }
 0x267   : > { %8790 = vmatmul.mubr.f32.vlgmr.msra.gmra.mrb[4].mxu0 %v11562_v20 }
 0x268   : > { %8854 = vmatprep.mubr.msk.f32.mxu0 %vm10939_vm0, %v10940_v1 }
 0x302   : > { %v1291_v34 = vpop.f32.mrb[0].mxu0 }
 0x303   : > { %v9950_v46 = vadd.f32 %v8160_v26, %v1291_v34  ;;  %v8659_v47 = vpop.f32.mrb[1].mxu0 }
 0x304   : > { %v1788_v50 = vpop.f32.mrb[0].mxu1 }
 0x305   : > { %v2303_v48 = vsel %vm806_vm1, %v9950_v46, 0  ;;  %v8725_v52 = vpop.f32.mrb[1].mxu1 }
 0x306   : > { %v2306_v49 = vand.u32 4294901760, %v2303_v48 }
 0x308   : > { %8793 = vmatpush3.xpose.msra.mxu1 %v2306_v49  ;;  %v2383_v60 = vsub.f32 %v2303_v48, %v2306_v49 }
 0x309   : > { %8797 = vmatprep.subr.mxu1 %v10940_v1 }
 0x30a   : > { %v1382_v53 = vpop.f32.mrb[2].mxu0  ;;  %v2384_v2 = vand.u32 4294901760, %v2383_v60 }
 0x30b   : > { %v1383_v54 = vadd.f32 %v8161_v51, %v1382_v53  ;;  %v8670_v55 = vpop.f32.mrb[3].mxu0 }
 0x30c   : > { %v2385_v5 = vsub.f32 %v2383_v60, %v2384_v2 }
 0x30d   : > { %v11744_v20 = vadd.f32 %v1788_v50, %v1383_v54 }
 0x30e   : > { %v2386_v8 = vand.u32 4294901760, %v2385_v5 }
 0x30f   : > { %v11769_v9 = vand.u32 4294901760, %v11744_v20 }
 0x33a   : > { %v2292_v57 = vpop.f32.mrb[4].mxu0 }
 0x33b   : > { %v9953_v58 = vadd.f32 %v8162_v56, %v2292_v57  ;;  %v8791_v59 = vpop.f32.mrb[5].mxu0 }
 0x33d   : > { %v2296_v61 = vmul.f32 0.17677669, %v9953_v58 }
 0x33f   : > { %v2300_v62 = vsel %vm806_vm1, %v2296_v61, 0  ;;  %4130 = vrot.lane.b32.xlu1 %v2296_v61, %s10941_s5  ;;  %3212 = vrot.lane.b32.xlu0 %v2296_v61, %s10942_s26 }
 0x340   : > { %v2371_v63 = vand.u32 4294901760, %v2300_v62 }
 0x342   : > { %v2372_v3 = vsub.f32 %v2300_v62, %v2371_v63 }
 0x343   : > { %4132 = vrot.lane.b32.xlu1 %v9950_v46, %s10941_s5  ;;  %3214 = vrot.lane.b32.xlu0 %v9950_v46, %s10942_s26 }
 0x344   : > { %v2373_v4 = vand.u32 4294901760, %v2372_v3 }
 0x346   : > { %v2374_v6 = vsub.f32 %v2372_v3, %v2373_v4 }
 0x347   : > { %5049 = vrot.lane.b32.xlu1 %v9950_v46, %s10943_s20  ;;  %5047 = vrot.lane.b32.xlu0 %v2296_v61, %s10943_s20 }
 0x348   : > { %v2375_v7 = vand.u32 4294901760, %v2374_v6 }
 0x34a   : > { %8795 = vmatmul.mubr.f32.vlgmr.msra.gmra.mrb[2].mxu1 %v2375_v7 }
 0x34b   : > { %8798 = vmatpush3.xpose.msra.mxu1 %v2386_v8  ;;  %8799 = vmatprep.mubr.msk.f32.mxu1 %vm10939_vm0, %v10940_v1 }
 0x34c   : > { %8802 = vmatprep.subr.mxu1 %v10940_v1 }
 0x352   : > { %8800 = vmatmul.mubr.f32.vlgmr.msra.gmra.mrb[2].mxu1 %v2371_v63 }
 0x353   : > { %8803 = vmatpush3.xpose.msra.mxu1 %v2383_v60  ;;  %8804 = vmatprep.mubr.msk.f32.mxu1 %vm10939_vm0, %v10940_v1 }
 0x354   : > { %8807 = vmatprep.subr.mxu1 %v10940_v1 }
 0x35a   : > { %8805 = vmatmul.mubr.f32.vlgmr.msra.gmra.mrb[2].mxu1 %v2372_v3 }
 0x35b   : > { %8808 = vmatpush3.xpose.msra.mxu1 %v2306_v49  ;;  %8809 = vmatprep.mubr.msk.f32.mxu1 %vm10939_vm0, %v10940_v1 }
 0x35c   : > { %8812 = vmatprep.subr.mxu1 %v10940_v1 }
 0x362   : > { %8810 = vmatmul.mubr.f32.vlgmr.msra.gmra.mrb[2].mxu1 %v2373_v4 }
 0x363   : > { %8813 = vmatpush3.xpose.msra.mxu1 %v2384_v2  ;;  %8814 = vmatprep.mubr.msk.f32.mxu1 %vm10939_vm0, %v10940_v1 }
 0x364   : > { %8817 = vmatprep.subr.mxu1 %v10940_v1 }
 0x36a   : > { %8815 = vmatmul.mubr.f32.vlgmr.msra.gmra.mrb[2].mxu1 %v2371_v63 }
 0x36b   : > { %8818 = vmatpush3.xpose.msra.mxu1 %v2306_v49  ;;  %8819 = vmatprep.mubr.msk.f32.mxu1 %vm10939_vm0, %v10940_v1 }
 0x36c   : > { %8822 = vmatprep.subr.mxu1 %v10940_v1 }
 0x372   : > { %8820 = vmatmul.mubr.f32.vlgmr.msra.gmra.mrb[2].mxu1 %v2371_v63 }
 0x373   : > { %8823 = vmatpush3.msra.mxu1 %v11769_v9  ;;  %8824 = vmatprep.mubr.msk.f32.mxu1 %vm10939_vm0, %v10940_v1 }
 0x374   : > { %8827 = vmatprep.subr.mxu1 %v10940_v1 }
 0x3b1   : > { %v3213_v10 = vpop.permute.xlu0 %3212  ;;  %v4131_v25 = vpop.permute.xlu1 %4130 }
 0x3b2   : > { %v3216_v11 = vsel %vm806_vm1, %v3213_v10, 0  ;;  %v4134_v28 = vsel %vm806_vm1, %v4131_v25, 0 }
 0x3b3   : > { %v3286_v12 = vand.u32 4294901760, %v3216_v11  ;;  %v4204_v30 = vand.u32 4294901760, %v4134_v28 }
 0x3b5   : > { %v3287_v13 = vsub.f32 %v3216_v11, %v3286_v12  ;;  %v3215_v14 = vpop.permute.xlu0 %3214  ;;  %v4133_v27 = vpop.permute.xlu1 %4132  ;;  %v4205_v32 = vsub.f32 %v4134_v28, %v4204_v30 }
 0x3b6   : > { %v3218_v16 = vsel %vm806_vm1, %v3215_v14, 0  ;;  %v4136_v29 = vsel %vm806_vm1, %v4133_v27, 0 }
 0x3b7   : > { %v3288_v17 = vand.u32 4294901760, %v3287_v13  ;;  %v3221_v18 = vand.u32 4294901760, %v3218_v16  ;;  %v4139_v31 = vand.u32 4294901760, %v4136_v29  ;;  %v4206_v35 = vand.u32 4294901760, %v4205_v32 }
 0x3b9   : > { %v3289_v19 = vsub.f32 %v3287_v13, %v3288_v17  ;;  %v3298_v21 = vsub.f32 %v3218_v16, %v3221_v18  ;;  %8853 = vmatpush3.xpose.msra.mxu0 %v3221_v18  ;;  %v4216_v33 = vsub.f32 %v4136_v29, %v4139_v31  ;;  %v4207_v37 = vsub.f32 %v4205_v32, %v4206_v35  ;;  %v5048_v41 = vpop.permute.xlu0 %5047  ;;  %v5050_v42 = vpop.permute.xlu1 %5049 }
 0x3ba   : > { %8857 = vmatprep.subr.mxu0 %v10940_v1  ;;  %v5051_v43 = vsel %vm806_vm1, %v5048_v41, 0  ;;  %v5053_v44 = vsel %vm806_vm1, %v5050_v42, 0 }
 0x3bb   : > { %v3290_v15 = vand.u32 4294901760, %v3289_v19  ;;  %v3299_v22 = vand.u32 4294901760, %v3298_v21  ;;  %v4217_v36 = vand.u32 4294901760, %v4216_v33  ;;  %v4208_v39 = vand.u32 4294901760, %v4207_v37 }
 0x3bc   : > { %v5121_v45 = vand.u32 4294901760, %v5051_v43  ;;  %v5056_v26 = vand.u32 4294901760, %v5053_v44 }
 0x3bd   : > { %v3300_v23 = vsub.f32 %v3298_v21, %v3299_v22  ;;  %8855 = vmatmul.mubr.f32.vlgmr.msra.gmra.mrb[6].mxu0 %v3290_v15  ;;  %v4218_v38 = vsub.f32 %v4216_v33, %v4217_v36  ;;  %v2844_v15 = vsub.f32 %v11744_v20, %v11769_v9 }
 0x3be   : > { %8859 = vmatprep.mubr.msk.f32.mxu0 %vm10939_vm0, %v10940_v1  ;;  %v5122_v34 = vsub.f32 %v5051_v43, %v5121_v45  ;;  %v5133_v46 = vsub.f32 %v5053_v44, %v5056_v26 }
 0x3bf   : > { %v3301_v24 = vand.u32 4294901760, %v3300_v23  ;;  %v4219_v40 = vand.u32 4294901760, %v4218_v38 }
 0x3c0   : > { %v5123_v47 = vand.u32 4294901760, %v5122_v34  ;;  %v5134_v48 = vand.u32 4294901760, %v5133_v46 }
 0x3c1   : > { %8858 = vmatpush3.xpose.msra.mxu0 %v3301_v24  ;;  %v2845_v24 = vand.u32 4294901760, %v2844_v15 }
 0x3c2   : > { %8862 = vmatprep.subr.mxu0 %v10940_v1  ;;  %v5124_v49 = vsub.f32 %v5122_v34, %v5123_v47  ;;  %v5135_v50 = vsub.f32 %v5133_v46, %v5134_v48 }
 0x3c4   : > { %v5125_v51 = vand.u32 4294901760, %v5124_v49  ;;  %v5136_v52 = vand.u32 4294901760, %v5135_v50 }
 0x3c5   : > { %8860 = vmatmul.mubr.f32.vlgmr.msra.gmra.mrb[6].mxu0 %v3286_v12 }
 0x3c6   : > { %8863 = vmatpush3.xpose.msra.mxu0 %v3298_v21  ;;  %8864 = vmatprep.mubr.msk.f32.mxu0 %vm10939_vm0, %v10940_v1 }
 0x3c7   : > { %8867 = vmatprep.subr.mxu0 %v10940_v1 }
 0x3cd   : > { %8865 = vmatmul.mubr.f32.vlgmr.msra.gmra.mrb[6].mxu0 %v3287_v13 }
 0x3ce   : > { %8868 = vmatpush3.xpose.msra.mxu0 %v3221_v18  ;;  %8869 = vmatprep.mubr.msk.f32.mxu0 %vm10939_vm0, %v10940_v1 }
 0x3cf   : > { %8872 = vmatprep.subr.mxu0 %v10940_v1 }
 0x3d5   : > { %8870 = vmatmul.mubr.f32.vlgmr.msra.gmra.mrb[6].mxu0 %v3288_v17 }
 0x3d6   : > { %8873 = vmatpush3.xpose.msra.mxu0 %v3299_v22  ;;  %8874 = vmatprep.mubr.msk.f32.mxu0 %vm10939_vm0, %v10940_v1 }
 0x3d7   : > { %8877 = vmatprep.subr.mxu0 %v10940_v1 }
 0x3dd   : > { %8875 = vmatmul.mubr.f32.vlgmr.msra.gmra.mrb[6].mxu0 %v3286_v12 }
 0x3de   : > { %8878 = vmatpush3.xpose.msra.mxu0 %v3221_v18  ;;  %8879 = vmatprep.mubr.msk.f32.mxu0 %vm10939_vm0, %v10940_v1 }
 0x3df   : > { %8912 = vmatprep.subr.mxu0 %v10940_v1 }
 0x3e5   : > { %8880 = vmatmul.mubr.f32.vlgmr.msra.gmra.mrb[6].mxu0 %v3286_v12 }
 0x3e6   : > { %8913 = vmatpush3.xpose.msra.mxu0 %v4139_v31  ;;  %8914 = vmatprep.mubr.msk.f32.mxu0 %vm10939_vm0, %v10940_v1 }
 0x3e7   : > { %8917 = vmatprep.subr.mxu0 %v10940_v1 }
 0x3e9   : > { %8915 = vmatmul.mubr.f32.vlgmr.msra.gmra.mrb[8].mxu0 %v4208_v39 }
 0x3ea   : > { %8918 = vmatpush3.xpose.msra.mxu0 %v4219_v40  ;;  %8919 = vmatprep.mubr.msk.f32.mxu0 %vm10939_vm0, %v10940_v1 }
 0x3eb   : > { %8922 = vmatprep.subr.mxu0 %v10940_v1 }
 0x3f1   : > { %8920 = vmatmul.mubr.f32.vlgmr.msra.gmra.mrb[8].mxu0 %v4204_v30 }
 0x3f2   : > { %8923 = vmatpush3.xpose.msra.mxu0 %v4216_v33  ;;  %8924 = vmatprep.mubr.msk.f32.mxu0 %vm10939_vm0, %v10940_v1 }
 0x3f3   : > { %8927 = vmatprep.subr.mxu0 %v10940_v1 }
 0x3f9   : > { %8925 = vmatmul.mubr.f32.vlgmr.msra.gmra.mrb[8].mxu0 %v4205_v32 }
 0x3fa   : > { %8928 = vmatpush3.xpose.msra.mxu0 %v4139_v31  ;;  %8929 = vmatprep.mubr.msk.f32.mxu0 %vm10939_vm0, %v10940_v1 }
 0x3fb   : > { %8932 = vmatprep.subr.mxu0 %v10940_v1 }
 0x401   : > { %8930 = vmatmul.mubr.f32.vlgmr.msra.gmra.mrb[8].mxu0 %v4206_v35 }
 0x402   : > { %8933 = vmatpush3.xpose.msra.mxu0 %v4217_v36  ;;  %8934 = vmatprep.mubr.msk.f32.mxu0 %vm10939_vm0, %v10940_v1 }
 0x403   : > { %8937 = vmatprep.subr.mxu0 %v10940_v1 }
 0x409   : > { %8935 = vmatmul.mubr.f32.vlgmr.msra.gmra.mrb[8].mxu0 %v4204_v30 }
 0x40a   : > { %8938 = vmatpush3.xpose.msra.mxu0 %v4139_v31  ;;  %8939 = vmatprep.mubr.msk.f32.mxu0 %vm10939_vm0, %v10940_v1 }
 0x40b   : > { %8972 = vmatprep.subr.mxu0 %v10940_v1 }
 0x411   : > { %8940 = vmatmul.mubr.f32.vlgmr.msra.gmra.mrb[8].mxu0 %v4204_v30  ;;  %v2846_v30 = vsub.f32 %v2844_v15, %v2845_v24 }
 0x412   : > { %8973 = vmatpush3.xpose.msra.mxu0 %v5056_v26  ;;  %8974 = vmatprep.mubr.msk.f32.mxu0 %vm10939_vm0, %v10940_v1 }
 0x413   : > { %8977 = vmatprep.subr.mxu0 %v10940_v1  ;;  %v2847_v33 = vand.u32 4294901760, %v2846_v30 }
 0x415   : > { %8975 = vmatmul.mubr.f32.vlgmr.msra.gmra.mrb[10].mxu0 %v5125_v51 }
 0x416   : > { %8978 = vmatpush3.xpose.msra.mxu0 %v5136_v52  ;;  %8979 = vmatprep.mubr.msk.f32.mxu0 %vm10939_vm0, %v10940_v1 }
 0x417   : > { %8982 = vmatprep.subr.mxu0 %v10940_v1 }
 0x41d   : > { %8980 = vmatmul.mubr.f32.vlgmr.msra.gmra.mrb[10].mxu0 %v5121_v45 }
 0x41e   : > { %8983 = vmatpush3.xpose.msra.mxu0 %v5133_v46  ;;  %8984 = vmatprep.mubr.msk.f32.mxu0 %vm10939_vm0, %v10940_v1 }
 0x41f   : > { %8987 = vmatprep.subr.mxu0 %v10940_v1 }
 0x425   : > { %8985 = vmatmul.mubr.f32.vlgmr.msra.gmra.mrb[10].mxu0 %v5122_v34 }
 0x426   : > { %8988 = vmatpush3.xpose.msra.mxu0 %v5056_v26  ;;  %8989 = vmatprep.mubr.msk.f32.mxu0 %vm10939_vm0, %v10940_v1 }
 0x427   : > { %8992 = vmatprep.subr.mxu0 %v10940_v1 }
 0x42d   : > { %8990 = vmatmul.mubr.f32.vlgmr.msra.gmra.mrb[10].mxu0 %v5123_v47 }
 0x42e   : > { %8993 = vmatpush3.xpose.msra.mxu0 %v5134_v48  ;;  %8994 = vmatprep.mubr.msk.f32.mxu0 %vm10939_vm0, %v10940_v1 }
 0x42f   : > { %8997 = vmatprep.subr.mxu0 %v10940_v1 }
 0x435   : > { %8995 = vmatmul.mubr.f32.vlgmr.msra.gmra.mrb[10].mxu0 %v5121_v45 }
 0x436   : > { %8998 = vmatpush3.xpose.msra.mxu0 %v5056_v26  ;;  %8999 = vmatprep.mubr.msk.f32.mxu0 %vm10939_vm0, %v10940_v1 }
 0x437   : > { %9626 = vmatprep.subr.bf16.mxu0 %v10938_v0 }
 0x43d   : > { %9000 = vmatmul.mubr.f32.vlgmr.msra.gmra.mrb[10].mxu0 %v5121_v45 }
 0x43e   : > { %9064 = vmatprep.mubr.msk.f32.mxu0 %vm10939_vm0, %v10940_v1 }
 0x445   : > { %v2747_v53 = vpop.f32.mrb[2].mxu1 }
 0x446   : > { %v8821_v54 = vpop.f32.mrb[3].mxu1  ;;  %v2752_v55 = vsel %vm2751_vm2, %v2747_v53, -inf }
 0x447   : > { %2753 = vmax.xlane.f32.xlu0 %v2752_v55 }
 0x4b8   : > { %v3662_v56 = vpop.f32.mrb[6].mxu0 }
 0x4b9   : > { %v8881_v57 = vpop.f32.mrb[7].mxu0  ;;  %v3666_v58 = vsel %vm2751_vm2, %v3662_v56, -inf }
 0x4ba   : > { %3667 = vmax.xlane.f32.xlu1 %v3666_v58 }
 0x4d4   : > { %v2754_v59 = vpop.xlane.xlu0 %2753 }
 0x4d5   : > { %v2755_v60 = vsub.f32 %v2747_v53, %v2754_v59 }
 0x4d7   : > { %v2756_v61 = vmul.f32 1.442695, %v2755_v60 }
 0x4d9   : > { %10304 = vpow2.f32 %v2756_v61 }
 0x4e3   : > { %v10305_v62 = vpop.eup %10304 }
 0x4e4   : > { %v4580_v63 = vpop.f32.mrb[8].mxu0  ;;  %v2758_v2 = vsel %vm2751_vm2, %v10305_v62, 0.0 }
 0x4e5   : > { %2759 = vadd.xlane.f32.xlu0 %v2758_v2  ;;  %v8941_v3 = vpop.f32.mrb[9].mxu0  ;;  %v4584_v4 = vsel %vm2751_vm2, %v4580_v63, -inf }
 0x4e9   : > { %4585 = vmax.xlane.f32.xlu0 %v4584_v4 }
 0x510   : > { %v5497_v5 = vpop.f32.mrb[10].mxu0 }
 0x511   : > { %v9001_v6 = vpop.f32.mrb[11].mxu0  ;;  %v5501_v7 = vsel %vm2751_vm2, %v5497_v5, -inf }
 0x512   : > { %5502 = vmax.xlane.f32.xlu0 %v5501_v7 }
 0x547   : > { %v3668_v8 = vpop.xlane.xlu1 %3667 }
 0x548   : > { %v3669_v10 = vsub.f32 %v3662_v56, %v3668_v8 }
 0x54a   : > { %v3670_v11 = vmul.f32 1.442695, %v3669_v10 }
 0x54c   : > { %10306 = vpow2.f32 %v3670_v11 }
 0x556   : > { %v11840_v12 = vpop.eup %10306 }
 0x557   : > { %v3672_v13 = vsel %vm2751_vm2, %v11840_v12, 0.0 }
 0x558   : > { %3673 = vadd.xlane.f32.xlu1 %v3672_v13 }
 0x569   : > { %3678 = vrot.lane.b32.xlu1 %v11744_v20, %s10942_s26 }
 0x572   : > { %v2760_v14 = vpop.xlane.xlu0 %2759 }
 0x573   : > { %10308 = vrcp.f32 %v2760_v14 }
 0x576   : > { %v4586_v16 = vpop.xlane.xlu0 %4585 }
 0x577   : > { %v4587_v17 = vsub.f32 %v4580_v63, %v4586_v16 }
 0x579   : > { %v4588_v18 = vmul.f32 1.442695, %v4587_v17 }
 0x57b   : > { %10310 = vpow2.f32 %v4588_v18 }
 0x57d   : > { %v10309_v19 = vpop.eup %10308 }
 0x57e   : > { %v2762_v21 = vmul.f32 %v10309_v19, %v10305_v62 }
 0x580   : > { %v2764_v22 = vsel %vm2751_vm2, %v2762_v21, 0 }
 0x581   : > { %v2832_v23 = vand.u32 4294901760, %v2764_v22 }
 0x583   : > { %v2833_v25 = vsub.f32 %v2764_v22, %v2832_v23 }
 0x585   : > { %v11849_v27 = vpop.eup %10310  ;;  %v2834_v28 = vand.u32 4294901760, %v2833_v25 }
 0x586   : > { %v4590_v29 = vsel %vm2751_vm2, %v11849_v27, 0.0 }
 0x587   : > { %4591 = vadd.xlane.f32.xlu0 %v4590_v29  ;;  %v2835_v31 = vsub.f32 %v2833_v25, %v2834_v28 }
 0x589   : > { %v2836_v32 = vand.u32 4294901760, %v2835_v31  ;;  %v5984_v31 = vld [vmem:[#allocation16 + $0x18] sm:$0xff] }
 0x58b   : > { %8825 = vmatmul.mubr.f32.vlgmr.msra.gmra.mrb[4].mxu1 %v2836_v32 }
 0x58c   : > { %8828 = vmatpush3.msra.mxu1 %v2847_v33  ;;  %8829 = vmatprep.mubr.msk.f32.mxu1 %vm10939_vm0, %v10940_v1  ;;  %v5985_v33 = vld [vmem:[#allocation16 + $0x20] sm:$0xff] }
 0x58d   : > { %8832 = vmatprep.subr.mxu1 %v10940_v1 }
 0x593   : > { %8830 = vmatmul.mubr.f32.vlgmr.msra.gmra.mrb[4].mxu1 %v2832_v23 }
 0x594   : > { %8833 = vmatpush3.msra.mxu1 %v2844_v15  ;;  %8834 = vmatprep.mubr.msk.f32.mxu1 %vm10939_vm0, %v10940_v1 }
 0x595   : > { %8837 = vmatprep.subr.mxu1 %v10940_v1 }
 0x59b   : > { %8835 = vmatmul.mubr.f32.vlgmr.msra.gmra.mrb[4].mxu1 %v2833_v25  ;;  %v5981_v25 = vld [vmem:[#allocation16] sm:$0xff] }
 0x59c   : > { %8838 = vmatpush3.msra.mxu1 %v11769_v9  ;;  %8839 = vmatprep.mubr.msk.f32.mxu1 %vm10939_vm0, %v10940_v1  ;;  %v6005_v29 = vand.u32 4294901760, %v5981_v25 }
 0x59d   : > { %4595 = vrot.lane.b32.xlu0 %v11744_v20, %s10941_s5  ;;  %8842 = vmatprep.subr.mxu1 %v10940_v1 }
 0x59f   : > { %v5503_v35 = vpop.xlane.xlu0 %5502 }
 0x5a0   : > { %v5504_v36 = vsub.f32 %v5497_v5, %v5503_v35  ;;  %v5986_v35 = vld [vmem:[#allocation16 + $0x28] sm:$0xff] }
 0x5a1   : > { %5512 = vrot.lane.b32.xlu0 %v11744_v20, %s10943_s20 }
 0x5a2   : > { %v5505_v37 = vmul.f32 1.442695, %v5504_v36  ;;  %v6014_v36 = vand.u32 4294901760, %v5984_v31 }
 0x5a3   : > { %8840 = vmatmul.mubr.f32.vlgmr.msra.gmra.mrb[4].mxu1 %v2834_v28  ;;  %v5983_v28 = vld [vmem:[#allocation16 + $0x10] sm:$0xff] }
 0x5a4   : > { %10312 = vpow2.f32 %v5505_v37  ;;  %8843 = vmatpush3.msra.mxu1 %v2845_v24  ;;  %8844 = vmatprep.mubr.msk.f32.mxu1 %vm10939_vm0, %v10940_v1  ;;  %v6011_v32 = vand.u32 4294901760, %v5983_v28  ;;  %v6017_v37 = vand.u32 4294901760, %v5985_v33 }
 0x5a5   : > { %8847 = vmatprep.subr.mxu1 %v10940_v1 }
 0x5ab   : > { %8845 = vmatmul.mubr.f32.vlgmr.msra.gmra.mrb[4].mxu1 %v2832_v23 }
 0x5ac   : > { %8848 = vmatpush3.msra.mxu1 %v11769_v9  ;;  %8849 = vmatprep.mubr.msk.f32.mxu1 %vm10939_vm0, %v10940_v1 }
 0x5ad   : > { %8882 = vmatprep.subr.mxu1 %v10940_v1 }
 0x5ae   : > { %v11874_v38 = vpop.eup %10312 }
 0x5af   : > { %v5507_v20 = vsel %vm2751_vm2, %v11874_v38, 0.0 }
 0x5b0   : > { %5508 = vadd.xlane.f32.xlu1 %v5507_v20  ;;  %v11943_v20 = vld [vmem:[#allocation16 + $0x30] sm:$0xff] }
 0x5b3   : > { %8850 = vmatmul.mubr.f32.vlgmr.msra.gmra.mrb[4].mxu1 %v2832_v23 }
 0x5b4   : > { %8884 = vmatprep.mubr.msk.f32.mxu1 %vm10939_vm0, %v10940_v1 }
 0x5e5   : > { %v3674_v39 = vpop.xlane.xlu1 %3673 }
 0x5e6   : > { %10314 = vrcp.f32 %v3674_v39  ;;  %v11945_v39 = vsub.f32 %v5981_v25, %v6005_v29 }
 0x5e9   : > { %v3679_v40 = vpop.permute.xlu1 %3678 }
 0x5ea   : > { %v3685_v41 = vand.u32 4294901760, %v3679_v40 }
 0x5ec   : > { %8883 = vmatpush3.msra.mxu1 %v3685_v41  ;;  %v3762_v43 = vsub.f32 %v3679_v40, %v3685_v41 }
 0x5ed   : > { %8887 = vmatprep.subr.mxu1 %v10940_v1 }
 0x5ee   : > { %v3763_v26 = vand.u32 4294901760, %v3762_v43 }
 0x5f0   : > { %v10315_v9 = vpop.eup %10314  ;;  %v3764_v47 = vsub.f32 %v3762_v43, %v3763_v26 }
 0x5f1   : > { %v3676_v42 = vmul.f32 %v10315_v9, %v11840_v12 }
 0x5f2   : > { %v3765_v50 = vand.u32 4294901760, %v3764_v47 }
 0x5f3   : > { %v3682_v44 = vsel %vm2751_vm2, %v3676_v42, 0  ;;  %v5988_v42 = vld [vmem:[#allocation16 + $0x38] sm:$0xff] }
 0x5f4   : > { %v3750_v45 = vand.u32 4294901760, %v3682_v44 }
 0x5f6   : > { %v3751_v34 = vsub.f32 %v3682_v44, %v3750_v45  ;;  %v11955_v44 = vsub.f32 %v5985_v33, %v6017_v37 }
 0x5f8   : > { %v3752_v46 = vand.u32 4294901760, %v3751_v34 }
 0x5fa   : > { %v3753_v48 = vsub.f32 %v3751_v34, %v3752_v46 }
 0x5fc   : > { %v3754_v49 = vand.u32 4294901760, %v3753_v48  ;;  %v6023_v48 = vand.u32 4294901760, %v11943_v20 }
 0x5fe   : > { %8885 = vmatmul.mubr.f32.vlgmr.msra.gmra.mrb[6].mxu1 %v3754_v49 }
 0x5ff   : > { %8888 = vmatpush3.msra.mxu1 %v3765_v50  ;;  %8889 = vmatprep.mubr.msk.f32.mxu1 %vm10939_vm0, %v10940_v1  ;;  %v6126_v50 = vand.u32 4294901760, %v11955_v44 }
 0x600   : > { %8892 = vmatprep.subr.mxu1 %v10940_v1 }
 0x606   : > { %8890 = vmatmul.mubr.f32.vlgmr.msra.gmra.mrb[6].mxu1 %v3750_v45 }
 0x607   : > { %8893 = vmatpush3.msra.mxu1 %v3762_v43  ;;  %8894 = vmatprep.mubr.msk.f32.mxu1 %vm10939_vm0, %v10940_v1  ;;  %v11953_v43 = vsub.f32 %v5984_v31, %v6014_v36 }
 0x608   : > { %8897 = vmatprep.subr.mxu1 %v10940_v1 }
 0x609   : > { %v6119_v49 = vand.u32 4294901760, %v11953_v43 }
 0x60e   : > { %8895 = vmatmul.mubr.f32.vlgmr.msra.gmra.mrb[6].mxu1 %v3751_v34  ;;  %v6098_v34 = vand.u32 4294901760, %v11945_v39 }
 0x60f   : > { %8898 = vmatpush3.msra.mxu1 %v3685_v41  ;;  %8899 = vmatprep.mubr.msk.f32.mxu1 %vm10939_vm0, %v10940_v1 }
 0x610   : > { %8902 = vmatprep.subr.mxu1 %v10940_v1 }
 0x614   : > { %v4592_v51 = vpop.xlane.xlu0 %4591 }
 0x615   : > { %10316 = vrcp.f32 %v4592_v51 }
 0x616   : > { %8900 = vmatmul.mubr.f32.vlgmr.msra.gmra.mrb[6].mxu1 %v3752_v46 }
 0x617   : > { %8903 = vmatpush3.msra.mxu1 %v3763_v26  ;;  %8904 = vmatprep.mubr.msk.f32.mxu1 %vm10939_vm0, %v10940_v1  ;;  %v11959_v26 = vpack.c.bf16 %v6014_v36, %v6011_v32 }
 0x618   : > { %8907 = vmatprep.subr.mxu1 %v10940_v1  ;;  %v4596_v52 = vpop.permute.xlu0 %4595 }
 0x619   : > { %v4602_v53 = vand.u32 4294901760, %v4596_v52 }
 0x61b   : > { %v4679_v56 = vsub.f32 %v4596_v52, %v4602_v53  ;;  %v6026_v52 = vand.u32 4294901760, %v5988_v42 }
 0x61c   : > { %v5513_v5 = vpop.permute.xlu0 %5512 }
 0x61d   : > { %v4680_v59 = vand.u32 4294901760, %v4679_v56  ;;  %v5519_v7 = vand.u32 4294901760, %v5513_v5  ;;  %v12016_v31 = vpack.c.bf16 %v6026_v52, %v6023_v48 }
 0x61e   : > { %8905 = vmatmul.mubr.f32.vlgmr.msra.gmra.mrb[6].mxu1 %v3750_v45 }
 0x61f   : > { %v10317_v54 = vpop.eup %10316  ;;  %8908 = vmatpush3.msra.mxu1 %v3685_v41  ;;  %8909 = vmatprep.mubr.msk.f32.mxu1 %vm10939_vm0, %v10940_v1  ;;  %v4681_v62 = vsub.f32 %v4679_v56, %v4680_v59  ;;  %v5596_v11 = vsub.f32 %v5513_v5, %v5519_v7  ;;  %v11949_v41 = vsub.f32 %v5983_v28, %v6011_v32 }
 0x620   : > { %v4594_v55 = vmul.f32 %v10317_v54, %v11849_v27  ;;  %8942 = vmatprep.subr.mxu1 %v10940_v1  ;;  %v5982_v27 = vld [vmem:[#allocation16 + $0x8] sm:$0xff] }
 0x621   : > { %v4682_v3 = vand.u32 4294901760, %v4681_v62  ;;  %v5597_v14 = vand.u32 4294901760, %v5596_v11  ;;  %v6008_v30 = vand.u32 4294901760, %v5982_v27  ;;  %v6112_v47 = vand.u32 4294901760, %v11949_v41 }
 0x622   : > { %v4599_v57 = vsel %vm2751_vm2, %v4594_v55, 0 }
 0x623   : > { %v4667_v58 = vand.u32 4294901760, %v4599_v57  ;;  %v5598_v18 = vsub.f32 %v5596_v11, %v5597_v14  ;;  %v11947_v40 = vsub.f32 %v5982_v27, %v6008_v30  ;;  %v11951_v9 = vpack.c.bf16 %v6008_v30, %v6005_v29 }
 0x624   : > { %v6113_v55 = vsub.f32 %v11949_v41, %v6112_v47 }
 0x625   : > { %v4668_v60 = vsub.f32 %v4599_v57, %v4667_v58  ;;  %v5599_v21 = vand.u32 4294901760, %v5598_v18  ;;  %v6105_v46 = vand.u32 4294901760, %v11947_v40  ;;  %9628 = vmatpush3.bf16.msra.mxu0 %v11951_v9  ;;  %v6120_v57 = vsub.f32 %v11953_v43, %v6119_v49 }
 0x626   : > { %8910 = vmatmul.mubr.f32.vlgmr.msra.gmra.mrb[6].mxu1 %v3750_v45  ;;  %9629 = vmatprep.subr.bf16.mxu0 %v10938_v0 }
 0x627   : > { %8943 = vmatpush3.msra.mxu1 %v4602_v53  ;;  %8944 = vmatprep.mubr.msk.f32.mxu1 %vm10939_vm0, %v10940_v1  ;;  %v4669_v61 = vand.u32 4294901760, %v4668_v60  ;;  %v6106_v54 = vsub.f32 %v11947_v40, %v6105_v46  ;;  %v6121_v5 = vand.u32 4294901760, %v6120_v57 }
 0x628   : > { %8947 = vmatprep.subr.mxu1 %v10940_v1 }
 0x629   : > { %v4670_v63 = vsub.f32 %v4668_v60, %v4669_v61  ;;  %9631 = vmatpush3.bf16.msra.mxu0 %v11959_v26 }
 0x62a   : > { %9632 = vmatprep.subr.bf16.mxu0 %v10938_v0 }
 0x62b   : > { %v4671_v2 = vand.u32 4294901760, %v4670_v63  ;;  %v6107_v63 = vand.u32 4294901760, %v6106_v54 }
 0x62d   : > { %8945 = vmatmul.mubr.f32.vlgmr.msra.gmra.mrb[8].mxu1 %v4671_v2  ;;  %v6114_v2 = vand.u32 4294901760, %v6113_v55 }
 0x62e   : > { %8948 = vmatpush3.msra.mxu1 %v4682_v3  ;;  %8949 = vmatprep.mubr.msk.f32.mxu1 %vm10939_vm0, %v10940_v1 }
 0x62f   : > { %8952 = vmatprep.subr.mxu1 %v10940_v1 }
 0x635   : > { %8950 = vmatmul.mubr.f32.vlgmr.msra.gmra.mrb[8].mxu1 %v4667_v58 }
 0x636   : > { %8953 = vmatpush3.msra.mxu1 %v4679_v56  ;;  %8954 = vmatprep.mubr.msk.f32.mxu1 %vm10939_vm0, %v10940_v1  ;;  %v11980_v56 = vsub.f32 %v11943_v20, %v6023_v48  ;;  %v12026_v20 = vld [vmem:[#allocation16 + $0x78] sm:$0xff] }
 0x637   : > { %8957 = vmatprep.subr.mxu1 %v10940_v1 }
 0x638   : > { %v6140_v3 = vand.u32 4294901760, %v11980_v56 }
 0x63d   : > { %v5509_v4 = vpop.xlane.xlu1 %5508  ;;  %8955 = vmatmul.mubr.f32.vlgmr.msra.gmra.mrb[8].mxu1 %v4668_v60  ;;  %v11991_v60 = vsub.f32 %v5988_v42, %v6026_v52 }
 0x63e   : > { %10318 = vrcp.f32 %v5509_v4  ;;  %8958 = vmatpush3.msra.mxu1 %v4602_v53  ;;  %8959 = vmatprep.mubr.msk.f32.mxu1 %vm10939_vm0, %v10940_v1  ;;  %v5990_v4 = vld [vmem:[#allocation16 + $0x48] sm:$0xff] }
 0x63f   : > { %8962 = vmatprep.subr.mxu1 %v10940_v1 }
 0x645   : > { %8960 = vmatmul.mubr.f32.vlgmr.msra.gmra.mrb[8].mxu1 %v4669_v61  ;;  %v5989_v61 = vld [vmem:[#allocation16 + $0x40] sm:$0xff] }
 0x646   : > { %8963 = vmatpush3.msra.mxu1 %v4680_v59  ;;  %8964 = vmatprep.mubr.msk.f32.mxu1 %vm10939_vm0, %v10940_v1 }
 0x647   : > { %8967 = vmatprep.subr.mxu1 %v10940_v1 }
 0x648   : > { %v10319_v6 = vpop.eup %10318 }
 0x649   : > { %v5511_v8 = vmul.f32 %v10319_v6, %v11874_v38  ;;  %v6020_v38 = vand.u32 4294901760, %v5986_v35  ;;  %v6147_v6 = vand.u32 4294901760, %v11991_v60 }
 0x64b   : > { %v5516_v10 = vsel %vm2751_vm2, %v5511_v8, 0  ;;  %v11957_v45 = vsub.f32 %v5986_v35, %v6020_v38  ;;  %v6148_v18 = vsub.f32 %v11991_v60, %v6147_v6 }
 0x64c   : > { %v5584_v12 = vand.u32 4294901760, %v5516_v10 }
 0x64d   : > { %8965 = vmatmul.mubr.f32.vlgmr.msra.gmra.mrb[8].mxu1 %v4667_v58  ;;  %v6133_v51 = vand.u32 4294901760, %v11957_v45  ;;  %v6149_v29 = vand.u32 4294901760, %v6148_v18 }
 0x64e   : > { %8968 = vmatpush3.msra.mxu1 %v4602_v53  ;;  %8969 = vmatprep.mubr.msk.f32.mxu1 %vm10939_vm0, %v10940_v1  ;;  %v5585_v13 = vsub.f32 %v5516_v10, %v5584_v12  ;;  %v6099_v53 = vsub.f32 %v11945_v39, %v6098_v34  ;;  %v6141_v10 = vsub.f32 %v11980_v56, %v6140_v3 }
 0x64f   : > { %9002 = vmatprep.subr.mxu1 %v10940_v1  ;;  %v6134_v59 = vsub.f32 %v11957_v45, %v6133_v51 }
 0x650   : > { %v5586_v16 = vand.u32 4294901760, %v5585_v13  ;;  %v6100_v62 = vand.u32 4294901760, %v6099_v53  ;;  %v6142_v25 = vand.u32 4294901760, %v6141_v10 }
 0x652   : > { %v5587_v17 = vsub.f32 %v5585_v13, %v5586_v16  ;;  %v9651_v8 = vpack.c.bf16 %v6107_v63, %v6100_v62  ;;  %v6050_v63 = vand.u32 4294901760, %v12026_v20 }
 0x654   : > { %v5588_v19 = vand.u32 4294901760, %v5587_v17  ;;  %v6135_v17 = vand.u32 4294901760, %v6134_v59 }
 0x655   : > { %8970 = vmatmul.mubr.f32.vlgmr.msra.gmra.mrb[8].mxu1 %v4667_v58  ;;  %v6127_v58 = vsub.f32 %v11955_v44, %v6126_v50 }
 0x656   : > { %9003 = vmatpush3.msra.mxu1 %v5519_v7  ;;  %9004 = vmatprep.mubr.msk.f32.mxu1 %vm10939_vm0, %v10940_v1 }
 0x657   : > { %9007 = vmatprep.subr.mxu1 %v10940_v1 }
 0x659   : > { %9005 = vmatmul.mubr.f32.vlgmr.msra.gmra.mrb[10].mxu1 %v5588_v19  ;;  %v6032_v19 = vand.u32 4294901760, %v5990_v4 }
 0x65a   : > { %9008 = vmatpush3.msra.mxu1 %v5599_v21  ;;  %9009 = vmatprep.mubr.msk.f32.mxu1 %vm10939_vm0, %v10940_v1  ;;  %v12005_v21 = vld [vmem:[#allocation16 + $0x60] sm:$0xff] }
 0x65b   : > { %9012 = vmatprep.subr.mxu1 %v10940_v1  ;;  %v12014_v30 = vsub.f32 %v5990_v4, %v6032_v19  ;;  %v6041_v36 = vand.u32 4294901760, %v12005_v21 }
 0x65d   : > { %v6161_v53 = vand.u32 4294901760, %v12014_v30  ;;  %v12038_v57 = vsub.f32 %v12005_v21, %v6041_v36 }
 0x65f   : > { %v6162_v59 = vsub.f32 %v12014_v30, %v6161_v53 }
 0x661   : > { %9010 = vmatmul.mubr.f32.vlgmr.msra.gmra.mrb[10].mxu1 %v5584_v12  ;;  %v6163_v10 = vand.u32 4294901760, %v6162_v59 }
 0x662   : > { %9013 = vmatpush3.msra.mxu1 %v5596_v11  ;;  %9014 = vmatprep.mubr.msk.f32.mxu1 %vm10939_vm0, %v10940_v1  ;;  %v12000_v11 = vpack.c.bf16 %v6020_v38, %v6017_v37  ;;  %v12024_v38 = vld [vmem:[#allocation16 + $0x70] sm:$0xff] }
 0x663   : > { %9017 = vmatprep.subr.mxu1 %v10940_v1  ;;  %v6047_v62 = vand.u32 4294901760, %v12024_v38 }
 0x664   : > { %9634 = vmatpush3.bf16.msra.mxu0 %v12000_v11 }
 0x665   : > { %9635 = vmatprep.subr.bf16.mxu0 %v10938_v0 }
 0x668   : > { %9637 = vmatpush3.bf16.msra.mxu0 %v12016_v31 }
 0x669   : > { %9015 = vmatmul.mubr.f32.vlgmr.msra.gmra.mrb[10].mxu1 %v5585_v13  ;;  %v5992_v13 = vld [vmem:[#allocation16 + $0x58] sm:$0xff]  ;;  %9638 = vmatprep.subr.bf16.mxu0 %v10938_v0 }
 0x66a   : > { %9018 = vmatpush3.msra.mxu1 %v5519_v7  ;;  %9019 = vmatprep.mubr.msk.f32.mxu1 %vm10939_vm0, %v10940_v1  ;;  %v6038_v32 = vand.u32 4294901760, %v5992_v13 }
 0x66b   : > { %9022 = vmatprep.subr.mxu1 %v10940_v1 }
 0x66c   : > { %v12029_v48 = vsub.f32 %v5992_v13, %v6038_v32  ;;  %v12061_v13 = vsub.f32 %v12024_v38, %v6047_v62 }
 0x671   : > { %9020 = vmatmul.mubr.f32.vlgmr.msra.gmra.mrb[10].mxu1 %v5586_v16  ;;  %v6128_v16 = vand.u32 4294901760, %v6127_v58 }
 0x672   : > { %9023 = vmatpush3.msra.mxu1 %v5597_v14  ;;  %9024 = vmatprep.mubr.msk.f32.mxu1 %vm10939_vm0, %v10940_v1 }
 0x673   : > { %9027 = vmatprep.subr.mxu1 %v10940_v1  ;;  %v9657_v42 = vpack.c.bf16 %v6135_v17, %v6128_v16 }
 0x679   : > { %9025 = vmatmul.mubr.f32.vlgmr.msra.gmra.mrb[10].mxu1 %v5584_v12 }
 0x67a   : > { %9028 = vmatpush3.msra.mxu1 %v5519_v7  ;;  %9029 = vmatprep.mubr.msk.f32.mxu1 %vm10939_vm0, %v10940_v1  ;;  %v5991_v7 = vld [vmem:[#allocation16 + $0x50] sm:$0xff] }
 0x67b   : > { %9650 = vmatprep.subr.bf16.mxu1 %v10938_v0  ;;  %v6035_v28 = vand.u32 4294901760, %v5991_v7 }
 0x67d   : > { %v12020_v35 = vsub.f32 %v5991_v7, %v6035_v28  ;;  %v6182_v7 = vand.u32 4294901760, %v12038_v57  ;;  %v12068_v16 = vpack.c.bf16 %v6038_v32, %v6035_v28 }
 0x67f   : > { %v6168_v55 = vand.u32 4294901760, %v12020_v35  ;;  %v6183_v18 = vsub.f32 %v12038_v57, %v6182_v7 }
 0x681   : > { %9030 = vmatmul.mubr.f32.vlgmr.msra.gmra.mrb[10].mxu1 %v5584_v12  ;;  %v6029_v12 = vand.u32 4294901760, %v5989_v61 }
 0x682   : > { %9099 = vmatprep.mubr.msk.f32.mxu1 %vm10939_vm0, %v10940_v1  ;;  %9652 = vmatpush3.bf16.msra.mxu1 %v9651_v8 }
 0x683   : > { %v12010_v27 = vsub.f32 %v5989_v61, %v6029_v12  ;;  %9653 = vmatprep.subr.bf16.mxu1 %v10938_v0  ;;  %v12031_v52 = vpack.c.bf16 %v6032_v19, %v6029_v12  ;;  %v6175_v61 = vand.u32 4294901760, %v12029_v48 }
 0x685   : > { %v6154_v33 = vand.u32 4294901760, %v12010_v27  ;;  %v6176_v12 = vsub.f32 %v12029_v48, %v6175_v61  ;;  %9640 = vmatpush3.bf16.msra.mxu0 %v12031_v52 }
 0x686   : > { %v11940_v15 = vpop.f32.mrb[4].mxu1  ;;  %9641 = vmatprep.subr.bf16.mxu0 %v10938_v0 }
 0x687   : > { %v8851_v22 = vpop.f32.mrb[5].mxu1  ;;  %v6155_v54 = vsub.f32 %v12010_v27, %v6154_v33 }
 0x688   : > { %v12007_v22 = vld [vmem:[#allocation16 + $0x68] sm:$0xff] }
 0x689   : > { %v6044_v37 = vand.u32 4294901760, %v12007_v22  ;;  %v6156_v4 = vand.u32 4294901760, %v6155_v54  ;;  %9643 = vmatpush3.bf16.msra.mxu0 %v12068_v16 }
 0x68a   : > { %9644 = vmatprep.subr.bf16.mxu0 %v10938_v0 }
 0x68b   : > { %v12041_v58 = vsub.f32 %v12007_v22, %v6044_v37  ;;  %v9663_v21 = vpack.c.bf16 %v6163_v10, %v6156_v4  ;;  %v6177_v22 = vand.u32 4294901760, %v6176_v12  ;;  %v12096_v4 = vpack.c.bf16 %v6050_v63, %v6047_v62 }
 0x68c   : > { %v9684_v62 = vpack.c.bf16 %v11991_v60, %v11980_v56 }
 0x68d   : > { %v6189_v8 = vand.u32 4294901760, %v12041_v58 }
 0x68f   : > { %v6190_v19 = vsub.f32 %v12041_v58, %v6189_v8 }
 0x6f9   : > { %v4126_v23 = vpop.f32.mrb[6].mxu1 }
 0x6fa   : > { %v8911_v24 = vpop.f32.mrb[7].mxu1  ;;  %5965 = vrot.lane.b32.xlu0 %v4126_v23, %s10943_s20  ;;  %s10807_s20 = sshll.u32 %s10944_s29, 4  ;;  %s10808_s20 = int_to_ptr.vmem [resolvable:$false] %s10807_s20 }
 0x6fb   : > { %v9654_v24 = vpack.c.bf16 %v6121_v5, %v6114_v2  ;;  %v9660_v2 = vpack.c.bf16 %v6149_v29, %v6142_v25  ;;  %v6169_v5 = vsub.f32 %v12020_v35, %v6168_v55  ;;  %v6184_v25 = vand.u32 4294901760, %v6183_v18  ;;  %s10809_s24 = scalar_lea.vmem %s10808_s20, 256  ;;  %p10810_p0 = scmp.lt.s32.totalorder %s12493_s3, %s10808_s20 }
 0x6fc   : > { %v6191_v29 = vand.u32 4294901760, %v6190_v19  ;;  %v9693_v18 = vpack.c.bf16 %v12041_v58, %v12038_v57 }
 0x6fd   : > { %9655 = vmatpush3.bf16.msra.mxu1 %v9654_v24  ;;  %v6170_v17 = vand.u32 4294901760, %v6169_v5  ;;  %v9675_v5 = vpack.c.bf16 %v11947_v40, %v11945_v39  ;;  %v9729_v39 = vpack.c.bf16 %v6133_v51, %v6126_v50  ;;  %v9732_v40 = vpack.c.bf16 %v6147_v6, %v6140_v3 }
 0x6fe   : > { %9656 = vmatprep.subr.bf16.mxu1 %v10938_v0 }
 0x6ff   : > { %v9666_v28 = vpack.c.bf16 %v6177_v22, %v6170_v17  ;;  %v9690_v17 = vpack.c.bf16 %v12029_v48, %v12020_v35 }
 0x701   : > { %9658 = vmatpush3.bf16.msra.mxu1 %v9657_v42 }
 0x702   : > { %9659 = vmatprep.subr.bf16.mxu1 %v10938_v0 }
 0x705   : > { %9661 = vmatpush3.bf16.msra.mxu1 %v9660_v2  ;;  %v12092_v2 = vpack.c.bf16 %v6044_v37, %v6041_v36  ;;  %v9678_v36 = vpack.c.bf16 %v11953_v43, %v11949_v41  ;;  %v9681_v37 = vpack.c.bf16 %v11957_v45, %v11955_v44  ;;  %v9735_v41 = vpack.c.bf16 %v6161_v53, %v6154_v33 }
 0x706   : > { %9662 = vmatprep.subr.bf16.mxu1 %v10938_v0  ;;  %v9738_v43 = vpack.c.bf16 %v6175_v61, %v6168_v55  ;;  %v9741_v44 = vpack.c.bf16 %v6189_v8, %v6182_v7 }
 0x707   : > { %9646 = vmatpush3.bf16.msra.mxu0 %v12092_v2 }
 0x708   : > { %9647 = vmatprep.subr.bf16.mxu0 %v10938_v0 }
 0x709   : > { %9664 = vmatpush3.bf16.msra.mxu1 %v9663_v21 }
 0x70a   : > { %9665 = vmatprep.subr.bf16.mxu1 %v10938_v0 }
 0x70b   : > { %9649 = vmatpush3.bf16.msra.mxu0 %v12096_v4 }
 0x70c   : > { %9674 = vmatprep.subr.bf16.mxu0 %v10938_v0 }
 0x70d   : > { %9667 = vmatpush3.bf16.msra.mxu1 %v9666_v28 }
 0x70e   : > { %9668 = vmatprep.subr.bf16.mxu1 %v10938_v0 }
 0x728   : > { %v5043_v14 = vpop.f32.mrb[8].mxu1 }
 0x729   : > { %5969 = vrot.lane.b32.xlu0 %v5043_v14, %s10941_s5  ;;  %v8971_v23 = vpop.f32.mrb[9].mxu1  ;;  %v12064_v14 = vsub.f32 %v12026_v20, %v6050_v63  ;;  %v9669_v20 = vpack.c.bf16 %v6191_v29, %v6184_v25  ;;  %v9687_v63 = vpack.c.bf16 %v12014_v30, %v12010_v27  ;;  %s7872_s5 = scalar_lea.sflag [#allocation6], %s11495_s23 }
 0x72a   : > { %v6196_v23 = vand.u32 4294901760, %v12061_v13 }
 0x72b   : > { %v6203_v24 = vand.u32 4294901760, %v12064_v14  ;;  %9670 = vmatpush3.bf16.msra.mxu1 %v9669_v20  ;;  %v9696_v19 = vpack.c.bf16 %v12064_v14, %v12061_v13 }
 0x72c   : > { %v6197_v32 = vsub.f32 %v12061_v13, %v6196_v23  ;;  %9671 = vmatprep.subr.bf16.mxu1 %v10938_v0 }
 0x72d   : > { %v6204_v38 = vsub.f32 %v12064_v14, %v6203_v24  ;;  %v9744_v45 = vpack.c.bf16 %v6203_v24, %v6196_v23  ;;  %v6676_v14 = vld [vmem:[#allocation22] sm:$0xff]  ;;  %v6678_v23 = vld [vmem:[#allocation22 + $0x10] sm:$0xff] }
 0x72e   : > { %v6198_v42 = vand.u32 4294901760, %v6197_v32  ;;  %v6691_v24 = vand.u32 4294901760, %v6676_v14 }
 0x72f   : > { %v6205_v54 = vand.u32 4294901760, %v6204_v38 }
 0x731   : > { %v9672_v59 = vpack.c.bf16 %v6205_v54, %v6198_v42 }
 0x733   : > { %9673 = vmatpush3.bf16.msra.mxu1 %v9672_v59  ;;  %v9723_v59 = vpack.c.bf16 %v6105_v46, %v6098_v34  ;;  %v8163_v46 = vld [vmem:[#allocation18] ss:$0 sm:$0xff] }
 0x734   : > { %9698 = vmatprep.subr.bf16.mxu1 %v10938_v0 }
 0x754   : > { %v5960_v10 = vpop.f32.mrb[10].mxu1 }
 0x755   : > { %5973 = vrot.lane.b32.xlu0 %v5960_v10, %s10942_s26  ;;  %v9031_v12 = vpop.f32.mrb[11].mxu1  ;;  %s10803_s26 = scalar_lea.vmem %s12493_s3, 128 }
 0x756   : > { %p10804_p2 = scmp.ne.s32.totalorder %s12493_s3, %s10803_s26  ;;  %p10811_p7 = scmp.lt.s32.totalorder %s10809_s24, %s10803_s26 }
 0x758   : > { %p10805_p10 = pnand %p10804_p2, %p12626_p9  ;;  %p10812_p5 = por %p10811_p7, %p10810_p0 }
 0x75a   : > { %p10806_p1 = pneg %p10805_p10 }
 0x75c   : > { %p10813_p8 = pnand %p10812_p5, %p10806_p1 }
 0x76c   : > { %v5966_v21 = vpop.permute.xlu0 %5965 }
 0x76d   : > { %v5976_v25 = vsel %vm806_vm1, %v11940_v15, %v5966_v21 }
 0x79b   : > { %v5970_v22 = vpop.permute.xlu0 %5969 }
 0x79c   : > { %v5978_v28 = vsel %vm5977_vm3, %v5976_v25, %v5970_v22 }
 0x7c7   : > { %v5974_v29 = vpop.permute.xlu0 %5973 }
 0x7c8   : > { %v5980_v32 = vsel %vm5979_vm4, %v5978_v28, %v5974_v29 }
 0x7c9   : > { %v12119_v38 = vand.u32 4294901760, %v5980_v32 }
 0x7cb   : > { %v6086_v20 = vsub.f32 %v5980_v32, %v12119_v38  ;;  %9100 = vmatmul.mubr.f32.vlgmr.msra.gmra.mrb[12].mxu1 %v12119_v38 }
 0x7cc   : > { %9700 = vmatpush3.bf16.msra.mxu1 %v11951_v9  ;;  %9169 = vmatprep.mubr.msk.f32.mxu1 %vm10939_vm0, %v10940_v1 }
 0x7cd   : > { %v6087_v42 = vand.u32 4294901760, %v6086_v20  ;;  %9701 = vmatprep.subr.bf16.mxu1 %v10938_v0 }
 0x7cf   : > { %v6088_v54 = vsub.f32 %v6086_v20, %v6087_v42 }
 0x7d0   : > { %9703 = vmatpush3.bf16.msra.mxu1 %v11959_v26 }
 0x7d1   : > { %9704 = vmatprep.subr.bf16.mxu1 %v10938_v0  ;;  %v6089_v15 = vand.u32 4294901760, %v6088_v54 }
 0x7d3   : > { %9065 = vmatmul.mubr.f32.vlgmr.msra.gmra.mrb[12].mxu0 %v6089_v15 }
 0x7d4   : > { %9676 = vmatpush3.bf16.msra.mxu0 %v9675_v5  ;;  %9706 = vmatpush3.bf16.msra.mxu1 %v12000_v11  ;;  %v6697_v5 = vand.u32 4294901760, %v6678_v23 }
 0x7d5   : > { %9677 = vmatprep.subr.bf16.mxu0 %v10938_v0  ;;  %9707 = vmatprep.subr.bf16.mxu1 %v10938_v0 }
 0x7d6   : > { %9134 = vmatprep.mubr.msk.f32.mxu0 %vm10939_vm0, %v10940_v1 }
 0x7d8   : > { %9679 = vmatpush3.bf16.msra.mxu0 %v9678_v36  ;;  %9709 = vmatpush3.bf16.msra.mxu1 %v12016_v31  ;;  %v12226_v36 = vsub.f32 %v6676_v14, %v6691_v24 }
 0x7d9   : > { %9680 = vmatprep.subr.bf16.mxu0 %v10938_v0  ;;  %9710 = vmatprep.subr.bf16.mxu1 %v10938_v0 }
 0x7dc   : > { %9682 = vmatpush3.bf16.msra.mxu0 %v9681_v37  ;;  %9712 = vmatpush3.bf16.msra.mxu1 %v12031_v52 }
 0x7dd   : > { %9683 = vmatprep.subr.bf16.mxu0 %v10938_v0  ;;  %9713 = vmatprep.subr.bf16.mxu1 %v10938_v0 }
 0x7e0   : > { %9685 = vmatpush3.bf16.msra.mxu0 %v9684_v62  ;;  %9715 = vmatpush3.bf16.msra.mxu1 %v12068_v16  ;;  %v12230_v62 = vsub.f32 %v6678_v23, %v6697_v5 }
 0x7e1   : > { %9686 = vmatprep.subr.bf16.mxu0 %v10938_v0  ;;  %9716 = vmatprep.subr.bf16.mxu1 %v10938_v0 }
 0x7e2   : > { %v6786_v29 = vand.u32 4294901760, %v12230_v62 }
 0x7e4   : > { %9688 = vmatpush3.bf16.msra.mxu0 %v9687_v63  ;;  %9718 = vmatpush3.bf16.msra.mxu1 %v12092_v2 }
 0x7e5   : > { %9689 = vmatprep.subr.bf16.mxu0 %v10938_v0  ;;  %9719 = vmatprep.subr.bf16.mxu1 %v10938_v0 }
 0x7e8   : > { %9691 = vmatpush3.bf16.msra.mxu0 %v9690_v17  ;;  %9721 = vmatpush3.bf16.msra.mxu1 %v12096_v4 }
 0x7e9   : > { %9692 = vmatprep.subr.bf16.mxu0 %v10938_v0  ;;  %9746 = vmatprep.subr.bf16.mxu1 %v10938_v0 }
 0x7eb   : > { %9170 = vmatmul.mubr.f32.vlgmr.msra.gmra.mrb[14].mxu1 %v6087_v42 }
 0x7ec   : > { %9694 = vmatpush3.bf16.msra.mxu0 %v9693_v18  ;;  %9748 = vmatpush3.bf16.msra.mxu1 %v11951_v9  ;;  %v9726_v9 = vpack.c.bf16 %v6119_v49, %v6112_v47  ;;  %v6772_v18 = vand.u32 4294901760, %v12226_v36 }
 0x7ed   : > { %9695 = vmatprep.subr.bf16.mxu0 %v10938_v0  ;;  %9749 = vmatprep.subr.bf16.mxu1 %v10938_v0 }
 0x7ee   : > { %9239 = vmatprep.mubr.msk.f32.mxu1 %vm10939_vm0, %v10940_v1  ;;  %v6773_v21 = vsub.f32 %v12226_v36, %v6772_v18 }
 0x7f0   : > { %9697 = vmatpush3.bf16.msra.mxu0 %v9696_v19  ;;  %9751 = vmatpush3.bf16.msra.mxu1 %v11959_v26  ;;  %v6774_v25 = vand.u32 4294901760, %v6773_v21  ;;  %v8164_v21 = vld [vmem:[#allocation19] ss:$0 sm:$0xff] }
 0x7f1   : > { %9722 = vmatprep.subr.bf16.mxu0 %v10938_v0  ;;  %9752 = vmatprep.subr.bf16.mxu1 %v10938_v0 }
 0x7f3   : > { %9135 = vmatmul.mubr.f32.vlgmr.msra.gmra.mrb[14].mxu0 %v6086_v20  ;;  %v6787_v20 = vsub.f32 %v12230_v62, %v6786_v29 }
 0x7f4   : > { %9724 = vmatpush3.bf16.msra.mxu0 %v9723_v59  ;;  %9754 = vmatpush3.bf16.msra.mxu1 %v12000_v11 }
 0x7f5   : > { %9725 = vmatprep.subr.bf16.mxu0 %v10938_v0  ;;  %9755 = vmatprep.subr.bf16.mxu1 %v10938_v0  ;;  %v6788_v54 = vand.u32 4294901760, %v6787_v20 }
 0x7f6   : > { %9204 = vmatprep.mubr.msk.f32.mxu0 %vm10939_vm0, %v10940_v1 }
 0x7f8   : > { %9727 = vmatpush3.bf16.msra.mxu0 %v9726_v9  ;;  %9757 = vmatpush3.bf16.msra.mxu1 %v12016_v31 }
 0x7f9   : > { %9728 = vmatprep.subr.bf16.mxu0 %v10938_v0  ;;  %9758 = vmatprep.subr.bf16.mxu1 %v10938_v0 }
 0x7fc   : > { %9730 = vmatpush3.bf16.msra.mxu0 %v9729_v39  ;;  %9760 = vmatpush3.bf16.msra.mxu1 %v12031_v52  ;;  %v10324_v52 = vld [vmem:[%s11501_s19] sm:$0xff]  ;;  %s12625_s19 = smov %s12624_s25 }
 0x7fd   : > { %9731 = vmatprep.subr.bf16.mxu0 %v10938_v0  ;;  %9761 = vmatprep.subr.bf16.mxu1 %v10938_v0 }
 0x800   : > { %9733 = vmatpush3.bf16.msra.mxu0 %v9732_v40  ;;  %9763 = vmatpush3.bf16.msra.mxu1 %v12068_v16  ;;  %v6677_v16 = vld [vmem:[#allocation22 + $0x8] sm:$0xff] }
 0x801   : > { %9734 = vmatprep.subr.bf16.mxu0 %v10938_v0  ;;  %9764 = vmatprep.subr.bf16.mxu1 %v10938_v0 }
 0x804   : > { %9736 = vmatpush3.bf16.msra.mxu0 %v9735_v41  ;;  %9766 = vmatpush3.bf16.msra.mxu1 %v12092_v2  ;;  %v6694_v2 = vand.u32 4294901760, %v6677_v16 }
 0x805   : > { %9737 = vmatprep.subr.bf16.mxu0 %v10938_v0  ;;  %9767 = vmatprep.subr.bf16.mxu1 %v10938_v0 }
 0x806   : > { %v12224_v12 = vpack.c.bf16 %v6694_v2, %v6691_v24  ;;  %v12228_v37 = vsub.f32 %v6677_v16, %v6694_v2 }
 0x808   : > { %9739 = vmatpush3.bf16.msra.mxu0 %v9738_v43  ;;  %9769 = vmatpush3.bf16.msra.mxu1 %v12096_v4  ;;  %v6679_v4 = vld [vmem:[#allocation22 + $0x18] sm:$0xff]  ;;  %v6779_v19 = vand.u32 4294901760, %v12228_v37  ;;  %v9783_v9 = vpack.c.bf16 %v12228_v37, %v12226_v36  ;;  %v7176_v43 = vld [vmem:[#allocation25] sm:$0xff] }
 0x809   : > { %9740 = vmatprep.subr.bf16.mxu0 %v10938_v0  ;;  %9806 = vmatprep.subr.bf16.mxu1 %v10938_v0  ;;  %v6700_v10 = vand.u32 4294901760, %v6679_v4 }
 0x80a   : > { %v6780_v22 = vsub.f32 %v12228_v37, %v6779_v19  ;;  %v12256_v40 = vpack.c.bf16 %v6779_v19, %v6772_v18  ;;  %v7186_v37 = vld [vmem:[#allocation25 + $0x50] sm:$0xff] }
 0x80b   : > { %9240 = vmatmul.mubr.f32.vlgmr.msra.gmra.mrb[16].mxu1 %v12119_v38  ;;  %v12232_v63 = vsub.f32 %v6679_v4, %v6700_v10  ;;  %v12235_v17 = vpack.c.bf16 %v6700_v10, %v6697_v5 }
 0x80c   : > { %9742 = vmatpush3.bf16.msra.mxu0 %v9741_v44  ;;  %9340 = vmatprep.mubr.msk.f32.mxu1 %vm10939_vm0, %v10940_v1  ;;  %v6781_v28 = vand.u32 4294901760, %v6780_v22  ;;  %v7177_v44 = vld [vmem:[#allocation25 + $0x8] sm:$0xff] }
 0x80d   : > { %9743 = vmatprep.subr.bf16.mxu0 %v10938_v0  ;;  %v6793_v32 = vand.u32 4294901760, %v12232_v63  ;;  %v9786_v39 = vpack.c.bf16 %v12232_v63, %v12230_v62  ;;  %v7187_v62 = vld [vmem:[#allocation25 + $0x58] sm:$0xff] }
 0x80f   : > { %v6794_v42 = vsub.f32 %v12232_v63, %v6793_v32  ;;  %v12258_v41 = vpack.c.bf16 %v6793_v32, %v6786_v29 }
 0x810   : > { %9745 = vmatpush3.bf16.msra.mxu0 %v9744_v45  ;;  %v7200_v45 = vand.u32 4294901760, %v7176_v43 }
 0x811   : > { %9770 = vmatprep.subr.bf16.mxu0 %v10938_v0  ;;  %v6795_v15 = vand.u32 4294901760, %v6794_v42 }
 0x813   : > { %9205 = vmatmul.mubr.f32.vlgmr.msra.gmra.mrb[16].mxu0 %v12119_v38  ;;  %v12246_v38 = vpack.c.bf16 %v6781_v28, %v6774_v25  ;;  %v12250_v59 = vpack.c.bf16 %v6795_v15, %v6788_v54  ;;  %v8165_v25 = vld [vmem:[#allocation21] ss:$0 sm:$0xff] }
 0x814   : > { %9250 = vmatprep.mubr.msk.f32.mxu0 %vm10939_vm0, %v10940_v1  ;;  %9772 = vmatpush3.bf16.msra.mxu0 %v12224_v12 }
 0x815   : > { %9773 = vmatprep.subr.bf16.mxu0 %v10938_v0 }
 0x818   : > { %9775 = vmatpush3.bf16.msra.mxu0 %v12235_v17 }
 0x819   : > { %9776 = vmatprep.subr.bf16.mxu0 %v10938_v0 }
 0x89e   : > { %v6242_v26 = vpop.f32.mrb[12].mxu1 }
 0x89f   : > { %v9101_v34 = vpop.f32.mrb[13].mxu1 }
 0x8a0   : > { %v7178_v34 = vld [vmem:[#allocation25 + $0x10] sm:$0xff] }
 0x8a6   : > { %v6091_v47 = vpop.f32.mrb[12].mxu0 }
 0x8a7   : > { %v6092_v49 = vadd.f32 %v8163_v46, %v6091_v47  ;;  %v9066_v50 = vpop.f32.mrb[13].mxu0  ;;  %v7179_v46 = vld [vmem:[#allocation25 + $0x18] sm:$0xff]  ;;  %v12260_v47 = vsub.f32 %v7176_v43, %v7200_v45 }
 0x8a8   : > { %v7206_v50 = vand.u32 4294901760, %v7178_v34 }
 0x8a9   : > { %v6243_v51 = vadd.f32 %v6242_v26, %v6092_v49  ;;  %v7203_v26 = vand.u32 4294901760, %v7177_v44 }
 0x8ab   : > { %v12262_v49 = vsub.f32 %v7177_v44, %v7203_v26  ;;  %v7189_v44 = vld [vmem:[#allocation25 + $0x68] sm:$0xff] }
 0x8be   : > { %v6435_v56 = vpop.f32.mrb[14].mxu1 }
 0x8bf   : > { %v9171_v60 = vpop.f32.mrb[15].mxu1 }
 0x8c6   : > { %v6346_v3 = vpop.f32.mrb[14].mxu0 }
 0x8c7   : > { %v6347_v6 = vadd.f32 %v6346_v3, %v6243_v51  ;;  %v9136_v11 = vpop.f32.mrb[15].mxu0  ;;  %v7209_v51 = vand.u32 4294901760, %v7179_v46  ;;  %v12268_v3 = vpack.c.bf16 %v7203_v26, %v7200_v45  ;;  %v7239_v26 = vand.u32 4294901760, %v7189_v44 }
 0x8c8   : > { %v7181_v11 = vld [vmem:[#allocation25 + $0x28] sm:$0xff] }
 0x8c9   : > { %v6436_v27 = vadd.f32 %v6435_v56, %v6347_v6  ;;  %v12264_v56 = vsub.f32 %v7178_v34, %v7206_v50  ;;  %v12266_v60 = vsub.f32 %v7179_v46, %v7209_v51  ;;  %v7180_v6 = vld [vmem:[#allocation25 + $0x20] sm:$0xff]  ;;  %9808 = vmatpush3.bf16.msra.mxu1 %v12268_v3  ;;  %v7383_v46 = vsub.f32 %v7189_v44, %v7239_v26 }
 0x8ca   : > { %9809 = vmatprep.subr.bf16.mxu1 %v10938_v0 }
 0x8cb   : > { %v9858_v36 = vpack.c.bf16 %v12266_v60, %v12264_v56  ;;  %v7314_v44 = vand.u32 4294901760, %v12266_v60 }
 0x8de   : > { %v6641_v30 = vpop.f32.mrb[16].mxu1 }
 0x8df   : > { %v9241_v31 = vpop.f32.mrb[17].mxu1 }
 0x8e6   : > { %v6554_v33 = vpop.f32.mrb[16].mxu0 }
 0x8e7   : > { %v6555_v35 = vadd.f32 %v6554_v33, %v6436_v27  ;;  %v9206_v53 = vpop.f32.mrb[17].mxu0  ;;  %v7212_v27 = vand.u32 4294901760, %v7180_v6 }
 0x8e8   : > { %v7182_v53 = vld [vmem:[#allocation25 + $0x30] sm:$0xff] }
 0x8e9   : > { %v6642_v48 = vadd.f32 %v6641_v30, %v6555_v35  ;;  %v7215_v30 = vand.u32 4294901760, %v7181_v11  ;;  %v12272_v31 = vsub.f32 %v7180_v6, %v7212_v27  ;;  %v12276_v35 = vpack.c.bf16 %v7209_v51, %v7206_v50  ;;  %v7190_v50 = vld [vmem:[#allocation25 + $0x70] sm:$0xff]  ;;  %v7191_v51 = vld [vmem:[#allocation25 + $0x78] sm:$0xff] }
 0x8eb   : > { %v6645_v55 = vadd.f32 %v10324_v52, %v6642_v48  ;;  %v12274_v33 = vsub.f32 %v7181_v11, %v7215_v30  ;;  %v7183_v48 = vld [vmem:[#allocation25 + $0x38] sm:$0xff]  ;;  %9811 = vmatpush3.bf16.msra.mxu1 %v12276_v35  ;;  %v7218_v52 = vand.u32 4294901760, %v7182_v53  ;;  %v7242_v11 = vand.u32 4294901760, %v7190_v50 }
 0x8ec   : > { %9812 = vmatprep.subr.bf16.mxu1 %v10938_v0 }
 0x8ed   : > { %v6648_v57 = vsel %vm806_vm1, %v6645_v55, 0.0 }
 0x8ee   : > { %6649 = vadd.xlane.f32.xlu0 %v6648_v57  ;;  %v12280_v57 = vsub.f32 %v7182_v53, %v7218_v52  ;;  %v7390_v53 = vsub.f32 %v7190_v50, %v7242_v11  ;;  %v7315_v50 = vsub.f32 %v12266_v60, %v7314_v44 }
 0x97b   : > { %v6650_v58 = vpop.xlane.xlu0 %6649 }
 0x97c   : > { %v6652_v61 = vmul.f32 0.03125, %v6650_v58 }
 0x97e   : > { %v12219_v7 = vsub.f32 %v6645_v55, %v6652_v61  ;;  %v7221_v55 = vand.u32 4294901760, %v7183_v48  ;;  %v12284_v61 = vpack.c.bf16 %v7215_v30, %v7212_v27  ;;  %v7245_v27 = vand.u32 4294901760, %v7191_v51 }
 0x980   : > { %v6654_v8 = vmul.f32 %v12219_v7, %v12219_v7  ;;  %v12282_v58 = vsub.f32 %v7183_v48, %v7221_v55  ;;  %9814 = vmatpush3.bf16.msra.mxu1 %v12284_v61  ;;  %v12292_v2 = vpack.c.bf16 %v7221_v55, %v7218_v52  ;;  %v7397_v48 = vsub.f32 %v7191_v51, %v7245_v27 }
 0x981   : > { %9815 = vmatprep.subr.bf16.mxu1 %v10938_v0  ;;  %v7321_v51 = vand.u32 4294901760, %v12272_v31 }
 0x982   : > { %v6655_v13 = vsel %vm806_vm1, %v6654_v8, 0.0  ;;  %v7184_v8 = vld [vmem:[#allocation25 + $0x40] sm:$0xff]  ;;  %v9864_v63 = vpack.c.bf16 %v12282_v58, %v12280_v57  ;;  %v9876_v52 = vpack.c.bf16 %v7397_v48, %v7390_v53 }
 0x983   : > { %6656 = vadd.xlane.f32.xlu1 %v6655_v13  ;;  %v7185_v13 = vld [vmem:[#allocation25 + $0x48] sm:$0xff]  ;;  %v7224_v14 = vand.u32 4294901760, %v7184_v8 }
 0x984   : > { %v7227_v16 = vand.u32 4294901760, %v7185_v13  ;;  %9817 = vmatpush3.bf16.msra.mxu1 %v12292_v2 }
 0x985   : > { %v12288_v23 = vsub.f32 %v7184_v8, %v7224_v14  ;;  %9818 = vmatprep.subr.bf16.mxu1 %v10938_v0  ;;  %v12373_v8 = vpack.c.bf16 %v7245_v27, %v7242_v11  ;;  %v7316_v27 = vand.u32 4294901760, %v7315_v50 }
 0x986   : > { %v12290_v24 = vsub.f32 %v7185_v13, %v7227_v16  ;;  %v12296_v4 = vpack.c.bf16 %v7227_v16, %v7224_v14  ;;  %v7384_v14 = vand.u32 4294901760, %v7383_v46 }
 0x988   : > { %9820 = vmatpush3.bf16.msra.mxu1 %v12296_v4 }
 0x989   : > { %9821 = vmatprep.subr.bf16.mxu1 %v10938_v0 }
 0xa10   : > { %v6657_v5 = vpop.xlane.xlu1 %6656 }
 0xa11   : > { %v6658_v10 = vmul.f32 0.03125, %v6657_v5  ;;  %v7391_v5 = vand.u32 4294901760, %v7390_v53 }
 0xa13   : > { %v6659_v18 = vadd.f32 1e-05, %v6658_v10  ;;  %v7398_v10 = vand.u32 4294901760, %v7397_v48 }
 0xa15   : > { %10320 = vrsqrt.f32 %v6659_v18 }
 0xa1f   : > { %v10321_v19 = vpop.eup %10320 }
 0xa20   : > { %v6661_v22 = vmul.f32 %v10321_v19, %v12219_v7  ;;  %v9855_v7 = vpack.c.bf16 %v12262_v49, %v12260_v47  ;;  %v7385_v19 = vsub.f32 %v7383_v46, %v7384_v14 }
 0xa22   : > { %v6668_v28 = vmul.f32 %v8164_v21, %v6661_v22  ;;  %v12379_v21 = vpack.c.bf16 %v7398_v10, %v7391_v5 }
 0xa24   : > { %v12301_v29 = vadd.f32 %v8165_v25, %v6668_v28  ;;  %v7386_v25 = vand.u32 4294901760, %v7385_v19  ;;  %v7392_v28 = vsub.f32 %v7390_v53, %v7391_v5  ;;  %v7322_v53 = vsub.f32 %v12272_v31, %v7321_v51 }
 0xa26   : > { %v6688_v32 = vsel %vm806_vm1, %v12301_v29, 0 }
 0xa27   : > { %v6759_v20 = vand.u32 4294901760, %v6688_v32 }
 0xa29   : > { %v6760_v42 = vsub.f32 %v6688_v32, %v6759_v20  ;;  %v7399_v32 = vsub.f32 %v7397_v48, %v7398_v10 }
 0xa2b   : > { %v6761_v54 = vand.u32 4294901760, %v6760_v42 }
 0xa2d   : > { %v6762_v15 = vsub.f32 %v6760_v42, %v6761_v54 }
 0xa2f   : > { %v6763_v43 = vand.u32 4294901760, %v6762_v15 }
 0xa31   : > { %9251 = vmatmul.mubr.f32.vlgmr.msra.gmra.mrb[18].mxu0 %v6763_v43  ;;  %v8166_v43 = vld [vmem:[#allocation24] ss:$0 sm:$0xff] }
 0xa32   : > { %9778 = vmatpush3.bf16.msra.mxu0 %v12246_v38  ;;  %9261 = vmatprep.mubr.msk.f32.mxu0 %vm10939_vm0, %v10940_v1  ;;  %v7233_v38 = vand.u32 4294901760, %v7187_v62 }
 0xa33   : > { %9779 = vmatprep.subr.bf16.mxu0 %v10938_v0 }
 0xa36   : > { %9781 = vmatpush3.bf16.msra.mxu0 %v12250_v59  ;;  %v9867_v59 = vpack.c.bf16 %v12290_v24, %v12288_v23 }
 0xa37   : > { %9782 = vmatprep.subr.bf16.mxu0 %v10938_v0 }
 0xa39   : > { %9262 = vmatmul.mubr.f32.vlgmr.msra.gmra.mrb[18].mxu0 %v6759_v20 }
 0xa3a   : > { %9784 = vmatpush3.bf16.msra.mxu0 %v9783_v9  ;;  %9272 = vmatprep.mubr.msk.f32.mxu0 %vm10939_vm0, %v10940_v1 }
 0xa3b   : > { %9785 = vmatprep.subr.bf16.mxu0 %v10938_v0 }
 0xa3e   : > { %9787 = vmatpush3.bf16.msra.mxu0 %v9786_v39  ;;  %v12356_v39 = vsub.f32 %v7187_v62, %v7233_v38  ;;  %v7300_v62 = vand.u32 4294901760, %v12262_v49 }
 0xa3f   : > { %9788 = vmatprep.subr.bf16.mxu0 %v10938_v0 }
 0xa41   : > { %9273 = vmatmul.mubr.f32.vlgmr.msra.gmra.mrb[18].mxu0 %v6760_v42  ;;  %v7393_v42 = vand.u32 4294901760, %v7392_v28  ;;  %v7356_v28 = vand.u32 4294901760, %v12290_v24 }
 0xa42   : > { %9790 = vmatpush3.bf16.msra.mxu0 %v12224_v12  ;;  %9283 = vmatprep.mubr.msk.f32.mxu0 %vm10939_vm0, %v10940_v1 }
 0xa43   : > { %9791 = vmatprep.subr.bf16.mxu0 %v10938_v0 }
 0xa46   : > { %9793 = vmatpush3.bf16.msra.mxu0 %v12235_v17 }
 0xa47   : > { %9794 = vmatprep.subr.bf16.mxu0 %v10938_v0 }
 0xa49   : > { %9284 = vmatmul.mubr.f32.vlgmr.msra.gmra.mrb[18].mxu0 %v6761_v54  ;;  %v7400_v54 = vand.u32 4294901760, %v7399_v32 }
 0xa4a   : > { %9796 = vmatpush3.bf16.msra.mxu0 %v12256_v40  ;;  %9294 = vmatprep.mubr.msk.f32.mxu0 %vm10939_vm0, %v10940_v1 }
 0xa4b   : > { %9797 = vmatprep.subr.bf16.mxu0 %v10938_v0  ;;  %v12383_v15 = vpack.c.bf16 %v7400_v54, %v7393_v42  ;;  %v7357_v54 = vsub.f32 %v12290_v24, %v7356_v28 }
 0xa4e   : > { %9799 = vmatpush3.bf16.msra.mxu0 %v12258_v41  ;;  %v7188_v41 = vld [vmem:[#allocation25 + $0x60] sm:$0xff] }
 0xa4f   : > { %9800 = vmatprep.subr.bf16.mxu0 %v10938_v0  ;;  %v7236_v45 = vand.u32 4294901760, %v7188_v41 }
 0xa51   : > { %9295 = vmatmul.mubr.f32.vlgmr.msra.gmra.mrb[18].mxu0 %v6759_v20  ;;  %v7376_v34 = vsub.f32 %v7188_v41, %v7236_v45  ;;  %v12368_v55 = vpack.c.bf16 %v7239_v26, %v7236_v45  ;;  %v7307_v41 = vand.u32 4294901760, %v12264_v56 }
 0xa52   : > { %9802 = vmatpush3.bf16.msra.mxu0 %v12224_v12  ;;  %9305 = vmatprep.mubr.msk.f32.mxu0 %vm10939_vm0, %v10940_v1  ;;  %v9861_v12 = vpack.c.bf16 %v12274_v33, %v12272_v31 }
 0xa53   : > { %9803 = vmatprep.subr.bf16.mxu0 %v10938_v0  ;;  %v9873_v6 = vpack.c.bf16 %v7383_v46, %v7376_v34  ;;  %v7377_v13 = vand.u32 4294901760, %v7376_v34  ;;  %v7308_v46 = vsub.f32 %v12264_v56, %v7307_v41 }
 0xa55   : > { %v12377_v16 = vpack.c.bf16 %v7384_v14, %v7377_v13  ;;  %v7378_v18 = vsub.f32 %v7376_v34, %v7377_v13  ;;  %v7309_v60 = vand.u32 4294901760, %v7308_v46  ;;  %v7335_v13 = vand.u32 4294901760, %v12280_v57 }
 0xa56   : > { %9805 = vmatpush3.bf16.msra.mxu0 %v12235_v17  ;;  %v7230_v17 = vand.u32 4294901760, %v7186_v37  ;;  %v7342_v14 = vand.u32 4294901760, %v12282_v58 }
 0xa57   : > { %9854 = vmatprep.subr.bf16.mxu0 %v10938_v0  ;;  %v7379_v22 = vand.u32 4294901760, %v7378_v18  ;;  %v7336_v10 = vsub.f32 %v12280_v57, %v7335_v13  ;;  %v9834_v19 = vpack.c.bf16 %v7316_v27, %v7309_v60 }
 0xa58   : > { %v12354_v9 = vsub.f32 %v7186_v37, %v7230_v17  ;;  %v12363_v30 = vpack.c.bf16 %v7233_v38, %v7230_v17  ;;  %v7293_v37 = vand.u32 4294901760, %v12260_v47  ;;  %v7301_v38 = vsub.f32 %v12262_v49, %v7300_v62 }
 0xa59   : > { %9306 = vmatmul.mubr.f32.vlgmr.msra.gmra.mrb[18].mxu0 %v6759_v20  ;;  %v12381_v20 = vpack.c.bf16 %v7386_v25, %v7379_v22  ;;  %v9906_v49 = vpack.c.bf16 %v7314_v44, %v7307_v41  ;;  %v7343_v18 = vsub.f32 %v12282_v58, %v7342_v14  ;;  %v7323_v22 = vand.u32 4294901760, %v7322_v53  ;;  %v8169_v53 = vld [vmem:[#allocation30] ss:$0 sm:$0xff] }
 0xa5a   : > { %9856 = vmatpush3.bf16.msra.mxu0 %v9855_v7  ;;  %9410 = vmatprep.mubr.msk.f32.mxu0 %vm10939_vm0, %v10940_v1  ;;  %v9870_v40 = vpack.c.bf16 %v12356_v39, %v12354_v9  ;;  %v7294_v17 = vsub.f32 %v12260_v47, %v7293_v37  ;;  %v7302_v34 = vand.u32 4294901760, %v7301_v38  ;;  %v7349_v25 = vand.u32 4294901760, %v12288_v23 }
 0xa5b   : > { %9857 = vmatprep.subr.bf16.mxu0 %v10938_v0  ;;  %9823 = vmatpush3.bf16.msra.mxu1 %v12363_v30  ;;  %v7337_v57 = vand.u32 4294901760, %v7336_v10  ;;  %v7344_v32 = vand.u32 4294901760, %v7343_v18 }
 0xa5c   : > { %9824 = vmatprep.subr.bf16.mxu1 %v10938_v0  ;;  %v7295_v26 = vand.u32 4294901760, %v7294_v17  ;;  %v7350_v42 = vsub.f32 %v12288_v23, %v7349_v25 }
 0xa5e   : > { %9859 = vmatpush3.bf16.msra.mxu0 %v9858_v36  ;;  %v9831_v56 = vpack.c.bf16 %v7302_v34, %v7295_v26 }
 0xa5f   : > { %9860 = vmatprep.subr.bf16.mxu0 %v10938_v0  ;;  %9826 = vmatpush3.bf16.msra.mxu1 %v12368_v55 }
 0xa60   : > { %9827 = vmatprep.subr.bf16.mxu1 %v10938_v0 }
 0xa62   : > { %9862 = vmatpush3.bf16.msra.mxu0 %v9861_v12 }
 0xa63   : > { %9863 = vmatprep.subr.bf16.mxu0 %v10938_v0  ;;  %9829 = vmatpush3.bf16.msra.mxu1 %v12373_v8 }
 0xa64   : > { %9830 = vmatprep.subr.bf16.mxu1 %v10938_v0 }
 0xa66   : > { %9865 = vmatpush3.bf16.msra.mxu0 %v9864_v63 }
 0xa67   : > { %9866 = vmatprep.subr.bf16.mxu0 %v10938_v0 }
 0xa6a   : > { %9868 = vmatpush3.bf16.msra.mxu0 %v9867_v59 }
 0xa6b   : > { %9869 = vmatprep.subr.bf16.mxu0 %v10938_v0 }
 0xa6e   : > { %9871 = vmatpush3.bf16.msra.mxu0 %v9870_v40  ;;  %v9903_v40 = vpack.c.bf16 %v7300_v62, %v7293_v37  ;;  %v7351_v37 = vand.u32 4294901760, %v7350_v42  ;;  %v7358_v62 = vand.u32 4294901760, %v7357_v54 }
 0xa6f   : > { %9872 = vmatprep.subr.bf16.mxu0 %v10938_v0 }
 0xa70   : > { %v9843_v17 = vpack.c.bf16 %v7358_v62, %v7351_v37 }
 0xa72   : > { %9874 = vmatpush3.bf16.msra.mxu0 %v9873_v6  ;;  %v7328_v6 = vand.u32 4294901760, %v12274_v33 }
 0xa73   : > { %9875 = vmatprep.subr.bf16.mxu0 %v10938_v0 }
 0xa74   : > { %v7329_v48 = vsub.f32 %v12274_v33, %v7328_v6  ;;  %v9909_v5 = vpack.c.bf16 %v7328_v6, %v7321_v51  ;;  %v9912_v33 = vpack.c.bf16 %v7342_v14, %v7335_v13 }
 0xa76   : > { %9877 = vmatpush3.bf16.msra.mxu0 %v9876_v52  ;;  %v7330_v31 = vand.u32 4294901760, %v7329_v48 }
 0xa77   : > { %9902 = vmatprep.subr.bf16.mxu0 %v10938_v0 }
 0xa78   : > { %v9837_v58 = vpack.c.bf16 %v7330_v31, %v7323_v22 }
 0xb2c   : > { %v7171_v7 = vpop.f32.mrb[18].mxu0 }
 0xb2d   : > { %v9954_v36 = vadd.f32 %v8166_v43, %v7171_v7  ;;  %v9307_v12 = vpop.f32.mrb[19].mxu0  ;;  %v9915_v43 = vpack.c.bf16 %v7356_v28, %v7349_v25  ;;  %v7363_v7 = vand.u32 4294901760, %v12354_v9 }
 0xb2e   : > { %v9840_v12 = vpack.c.bf16 %v7344_v32, %v7337_v57 }
 0xb2f   : > { %v7175_v63 = vmax.f32 %v9954_v36, 0.0  ;;  %v7370_v36 = vand.u32 4294901760, %v12356_v39 }
 0xb31   : > { %v12389_v59 = vand.u32 4294901760, %v7175_v63  ;;  %v7371_v23 = vsub.f32 %v12356_v39, %v7370_v36  ;;  %v9918_v24 = vpack.c.bf16 %v7370_v36, %v7363_v7 }
 0xb33   : > { %v12394_v45 = vsub.f32 %v7175_v63, %v12389_v59  ;;  %v7364_v63 = vsub.f32 %v12354_v9, %v7363_v7  ;;  %v8167_v9 = vld [vmem:[#allocation27] ss:$0 sm:$0xff] }
 0xb35   : > { %v7282_v47 = vand.u32 4294901760, %v12394_v45  ;;  %9411 = vmatmul.mubr.f32.vlgmr.msra.gmra.mrb[20].mxu0 %v12394_v45  ;;  %v7365_v38 = vand.u32 4294901760, %v7364_v63 }
 0xb36   : > { %9904 = vmatpush3.bf16.msra.mxu0 %v9903_v40  ;;  %9480 = vmatprep.mubr.msk.f32.mxu0 %vm10939_vm0, %v10940_v1  ;;  %v7372_v40 = vand.u32 4294901760, %v7371_v23 }
 0xb37   : > { %v7283_v11 = vsub.f32 %v12394_v45, %v7282_v47  ;;  %9905 = vmatprep.subr.bf16.mxu0 %v10938_v0 }
 0xb38   : > { %v9846_v41 = vpack.c.bf16 %v7372_v40, %v7365_v38 }
 0xb39   : > { %v7284_v52 = vand.u32 4294901760, %v7283_v11 }
 0xb3a   : > { %9907 = vmatpush3.bf16.msra.mxu0 %v9906_v49 }
 0xb3b   : > { %9341 = vmatmul.mubr.f32.vlgmr.msra.gmra.mrb[18].mxu1 %v7284_v52  ;;  %9908 = vmatprep.subr.bf16.mxu0 %v10938_v0 }
 0xb3c   : > { %9832 = vmatpush3.bf16.msra.mxu1 %v9831_v56  ;;  %9375 = vmatprep.mubr.msk.f32.mxu1 %vm10939_vm0, %v10940_v1 }
 0xb3d   : > { %9833 = vmatprep.subr.bf16.mxu1 %v10938_v0 }
 0xb3e   : > { %9910 = vmatpush3.bf16.msra.mxu0 %v9909_v5 }
 0xb3f   : > { %9911 = vmatprep.subr.bf16.mxu0 %v10938_v0 }
 0xb40   : > { %9835 = vmatpush3.bf16.msra.mxu1 %v9834_v19 }
 0xb41   : > { %9836 = vmatprep.subr.bf16.mxu1 %v10938_v0 }
 0xb42   : > { %9913 = vmatpush3.bf16.msra.mxu0 %v9912_v33 }
 0xb43   : > { %9914 = vmatprep.subr.bf16.mxu0 %v10938_v0 }
 0xb44   : > { %9838 = vmatpush3.bf16.msra.mxu1 %v9837_v58 }
 0xb45   : > { %9839 = vmatprep.subr.bf16.mxu1 %v10938_v0 }
 0xb46   : > { %9916 = vmatpush3.bf16.msra.mxu0 %v9915_v43 }
 0xb47   : > { %9917 = vmatprep.subr.bf16.mxu0 %v10938_v0 }
 0xb48   : > { %9841 = vmatpush3.bf16.msra.mxu1 %v9840_v12 }
 0xb49   : > { %9842 = vmatprep.subr.bf16.mxu1 %v10938_v0 }
 0xb4a   : > { %9919 = vmatpush3.bf16.msra.mxu0 %v9918_v24 }
 0xb4b   : > { %9920 = vmatprep.subr.bf16.mxu0 %v10938_v0 }
 0xb4c   : > { %9844 = vmatpush3.bf16.msra.mxu1 %v9843_v17 }
 0xb4d   : > { %9845 = vmatprep.subr.bf16.mxu1 %v10938_v0 }
 0xb4e   : > { %9922 = vmatpush3.bf16.msra.mxu0 %v12377_v16 }
 0xb4f   : > { %9923 = vmatprep.subr.bf16.mxu0 %v10938_v0 }
 0xb50   : > { %9847 = vmatpush3.bf16.msra.mxu1 %v9846_v41 }
 0xb51   : > { %9848 = vmatprep.subr.bf16.mxu1 %v10938_v0 }
 0xb52   : > { %9925 = vmatpush3.bf16.msra.mxu0 %v12379_v21 }
 0xb54   : > { %9850 = vmatpush3.bf16.msra.mxu1 %v12381_v20 }
 0xb55   : > { %9481 = vmatmul.mubr.f32.vlgmr.msra.gmra.mrb[22].mxu0 %v12389_v59  ;;  %9851 = vmatprep.subr.bf16.mxu1 %v10938_v0 }
 0xb58   : > { %9853 = vmatpush3.bf16.msra.mxu1 %v12383_v15 }
 0xb59   : > { %9878 = vmatprep.subr.bf16.mxu1 %v10938_v0 }
 0xb5b   : > { %9376 = vmatmul.mubr.f32.vlgmr.msra.gmra.mrb[20].mxu1 %v12389_v59 }
 0xb5c   : > { %9880 = vmatpush3.bf16.msra.mxu1 %v12268_v3  ;;  %9445 = vmatprep.mubr.msk.f32.mxu1 %vm10939_vm0, %v10940_v1 }
 0xb5d   : > { %9881 = vmatprep.subr.bf16.mxu1 %v10938_v0 }
 0xb60   : > { %9883 = vmatpush3.bf16.msra.mxu1 %v12276_v35 }
 0xb61   : > { %9884 = vmatprep.subr.bf16.mxu1 %v10938_v0 }
 0xb64   : > { %9886 = vmatpush3.bf16.msra.mxu1 %v12284_v61 }
 0xb65   : > { %9887 = vmatprep.subr.bf16.mxu1 %v10938_v0 }
 0xb68   : > { %9889 = vmatpush3.bf16.msra.mxu1 %v12292_v2 }
 0xb69   : > { %9890 = vmatprep.subr.bf16.mxu1 %v10938_v0 }
 0xb6c   : > { %9892 = vmatpush3.bf16.msra.mxu1 %v12296_v4 }
 0xb6d   : > { %9893 = vmatprep.subr.bf16.mxu1 %v10938_v0 }
 0xb70   : > { %9895 = vmatpush3.bf16.msra.mxu1 %v12363_v30 }
 0xb71   : > { %9896 = vmatprep.subr.bf16.mxu1 %v10938_v0 }
 0xb74   : > { %9898 = vmatpush3.bf16.msra.mxu1 %v12368_v55 }
 0xb75   : > { %9899 = vmatprep.subr.bf16.mxu1 %v10938_v0 }
 0xb78   : > { %9901 = vmatpush3.bf16.msra.mxu1 %v12373_v8 }
 0xb79   : > { %9926 = vmatprep.subr.bf16.mxu1 %v10938_v0 }
 0xb7b   : > { %9446 = vmatmul.mubr.f32.vlgmr.msra.gmra.mrb[22].mxu1 %v7282_v47 }
 0xb7c   : > { %9928 = vmatpush3.bf16.msra.mxu1 %v12268_v3  ;;  %9515 = vmatprep.mubr.msk.f32.mxu1 %vm10939_vm0, %v10940_v1 }
 0xb7d   : > { %9929 = vmatprep.subr.bf16.mxu1 %v10938_v0 }
 0xb80   : > { %9931 = vmatpush3.bf16.msra.mxu1 %v12276_v35 }
 0xb81   : > { %9932 = vmatprep.subr.bf16.mxu1 %v10938_v0 }
 0xb84   : > { %9934 = vmatpush3.bf16.msra.mxu1 %v12284_v61 }
 0xb85   : > { %9935 = vmatprep.subr.bf16.mxu1 %v10938_v0 }
 0xb88   : > { %9937 = vmatpush3.bf16.msra.mxu1 %v12292_v2 }
 0xb89   : > { %9938 = vmatprep.subr.bf16.mxu1 %v10938_v0 }
 0xb8c   : > { %9940 = vmatpush3.bf16.msra.mxu1 %v12296_v4 }
 0xb8d   : > { %9941 = vmatprep.subr.bf16.mxu1 %v10938_v0 }
 0xb90   : > { %9943 = vmatpush3.bf16.msra.mxu1 %v12363_v30 }
 0xb91   : > { %9944 = vmatprep.subr.bf16.mxu1 %v10938_v0 }
 0xb94   : > { %9946 = vmatpush3.bf16.msra.mxu1 %v12368_v55 }
 0xb95   : > { %9947 = vmatprep.subr.bf16.mxu1 %v10938_v0 }
 0xb98   : > { %9949 = vmatpush3.bf16.msra.mxu1 %v12373_v8 }
 0xb9b   : > { %9516 = vmatmul.mubr.f32.vlgmr.msra.gmra.mrb[24].mxu1 %v12389_v59 }
 0xc08   : > { %v7541_v1 = vpop.f32.mrb[20].mxu0 }
 0xc09   : > { %v9412_v3 = vpop.f32.mrb[21].mxu0 }
 0xc0e   : > { %v7286_v35 = vpop.f32.mrb[18].mxu1 }
 0xc0f   : > { %v9342_v61 = vpop.f32.mrb[19].mxu1  ;;  %v7287_v39 = vadd.f32 %v8167_v9, %v7286_v35 }
 0xc28   : > { %v7749_v2 = vpop.f32.mrb[22].mxu0 }
 0xc29   : > { %v9482_v4 = vpop.f32.mrb[23].mxu0 }
 0xc2e   : > { %v7437_v16 = vpop.f32.mrb[20].mxu1 }
 0xc2f   : > { %v7438_v30 = vadd.f32 %v7437_v16, %v7287_v39  ;;  %v9377_v21 = vpop.f32.mrb[21].mxu1 }
 0xc31   : > { %v7542_v20 = vadd.f32 %v7541_v1, %v7438_v30 }
 0xc4e   : > { %v7630_v15 = vpop.f32.mrb[22].mxu1 }
 0xc4f   : > { %v7631_v55 = vadd.f32 %v7630_v15, %v7542_v20  ;;  %v9447_v44 = vpop.f32.mrb[23].mxu1 }
 0xc51   : > { %v7750_v0 = vadd.f32 %v7749_v2, %v7631_v55 }
 0xc6e   : > { %v7836_v45 = vpop.f32.mrb[24].mxu1 }
 0xc6f   : > { %v7837_v8 = vadd.f32 %v7836_v45, %v7750_v0  ;;  %v9517_v26 = vpop.f32.mrb[25].mxu1 }
 0xc71   : > { %v7840_v59 = vadd.f32 %v7837_v8, %v12301_v29  ;;  %v8168_v29 = vld [vmem:[#allocation28] ss:$0 sm:$0xff] }
 0xc73   : > { %v7843_v34 = vsel %vm806_vm1, %v7840_v59, 0.0 }
 0xc74   : > { %7844 = vadd.xlane.f32.xlu1 %v7843_v34 }
 0xd01   : > { %v7845_v46 = vpop.xlane.xlu1 %7844 }
 0xd02   : > { %v7846_v50 = vmul.f32 0.03125, %v7845_v46 }
 0xd04   : > { %v7847_v47 = vsub.f32 %v7840_v59, %v7846_v50 }
 0xd06   : > { %v7848_v49 = vmul.f32 %v7847_v47, %v7847_v47 }
 0xd08   : > { %v7849_v51 = vsel %vm806_vm1, %v7848_v49, 0.0 }
 0xd09   : > { %7850 = vadd.xlane.f32.xlu1 %v7849_v51 }
 0xd96   : > { %v7851_v6 = vpop.xlane.xlu1 %7850 }
 0xd97   : > { %v7852_v11 = vmul.f32 0.03125, %v7851_v6 }
 0xd99   : > { %v7853_v56 = vadd.f32 1e-05, %v7852_v11 }
 0xd9b   : > { %10322 = vrsqrt.f32 %v7853_v56 }
 0xda5   : > { %v10323_v60 = vpop.eup %10322 }
 0xda6   : > { %v7855_v27 = vmul.f32 %v10323_v60, %v7847_v47 }
 0xda8   : > { %v7862_v48 = vmul.f32 %v8168_v29, %v7855_v27 }
 0xdaa   : > { %v7869_v52 = vadd.f32 %v8169_v53, %v7862_v48 }
 0xdac   : > { %7870 = vst.msk [vmem:[%s789_s18] sm:$0xff] %vm806_vm1, %v7869_v52 }
 0xdad   : > { %10816 = shalt.err (!%p10813_p8)
}
 0xdae   : > { %s10817_s23 = scalar_lea.hbm %s12491_s4, 128  ;;  %s10821_s28 = scalar_lea.hbm %s12625_s19, 256 }
 0xdaf   : > { %p10818_p3 = scmp.ne.s32.totalorder %s12491_s4, %s10817_s23  ;;  %p10822_p13 = scmp.lt.u32.totalorder %s12491_s4, %s12625_s19 }
 0xdb0   : > { %p10823_p12 = scmp.lt.u32.totalorder %s10821_s28, %s10817_s23  ;;  %p10825_p2 = scmp.lt.u32.totalorder %s10817_s23, %s12491_s4 }
 0xdb1   : > { %p10819_p11 = pnand %p10818_p3, %p12626_p9 }
 0xdb2   : > { %p10824_p4 = por %p10823_p12, %p10822_p13 }
 0xdb3   : > { %p10820_p6 = pneg %p10819_p11 }
 0xdb4   : > { %p10826_p10 = por %p10825_p2, %p10824_p4 }
 0xdb6   : > { %p10827_p1 = pnand %p10826_p10, %p10820_p6 }
 0xdb8   : > { %10830 = shalt.err (!%p10827_p1)
}
 0xdb9   : > { %10139 = dma.vmem_to_hbm [thread:$0]  (%p12626_p9), %s12493_s3, 128, %s12491_s4, %s7872_s5  }
 0xdba PF: > { %s12627_s26 = sld [smem:[#allocation42_spill]]  ;;  %s12628_s29 = sld [smem:[#allocation47_spill]] }
 0xdbb   : > { %p12629_p0 = scmp.ne.s32.totalorder %s12615_s22, 0 }
 0xdc0   : > { %s7898_s20 = sand.u32 1, %s12627_s26   ;;  %p12630_p7 = scmp.ge.s32.totalorder %s12628_s29, 2 }
 0xdc1   : > { %s7899_s24 = scalar_lea.sflag [#allocation6], %s7898_s20 }
 0xdc2   : > { %p10195_p5 = pnand %p12630_p7, %p12629_p0 }
 0xdc4   : > { %10892 = dma.done.wait (!%p10195_p5), %s7899_s24, 128  }
 0xdc5   : > { %10894 = vsyncadd (!%p10195_p5), %s7899_s24, 4294967168  ;;  %s41_s29 = sadd.s32 1, %s12628_s29   ;;  %s12631_s24 = sld [smem:[#allocation43_spill]] }
 0xdc6   : > { %p38_p8 = scmp.ge.s32.totalorder %s41_s29, 4   ;;  %s12632_s25 = sld [smem:[#allocation44_spill]] }
 0xdc7   : > { %s12633_s1 = sld [smem:[#allocation46_spill]]  ;;  %s12634_s23 = smov %s12639_s27 }
 0xdc8   : > { %s12635_s26 = smov %s11445_s0  ;;  %s12637_s28 = smov %s12634_s23 }
 0xdc9   :  { %40 = sbr.rel (!%p38_p8) target bundleno = 23 (0x17), region = 202 }
 0xdcd   : > { %s12636_s27 = smov %s12633_s1 }
 0xdd0   :  { %7904 = vsyncpa [#allocation5], 1 }
 0xdd1   :  { %7906 = vsyncpa [#allocation5 + $0x1], 1 }
 0xdd2   :  { %7907 = vsyncpa [#allocation8], 1 }
 0xdd3   :  { %7908 = vsyncpa [#allocation11], 1 }
 0xdd4   :  { %7909 = vsyncpa [#allocation14], 1 }
 0xdd5   :  { %7910 = vsyncpa [#allocation17], 1 }
 0xdd6   :  { %7911 = vsyncpa [#allocation20], 1 }
 0xdd7   :  { %7912 = vsyncpa [#allocation23], 1 }
 0xdd8   :  { %7913 = vsyncpa [#allocation26], 1 }
 0xdd9   :  { %7914 = vsyncpa [#allocation29], 1 }
 0xdda   :  { %7915 = vsyncpa [#allocation6], 1 }
 0xddb   :  { %7917 = vsyncpa [#allocation6 + $0x1], 1 }

</bundles_post_ra>
